<compile_context>
chip_gen: v7x
topology: tpu7x:2x2x1
jax: 0.10.0
libtpu: 0.0.40
codegen_flags: <defaults>
</compile_context>

<pallas_src>
import functools

import jax
import jax.numpy as jnp
from jax import lax
from jax.experimental import pallas as pl
from jax.experimental.pallas import tpu as pltpu


def _gat_kernel(x_ref, wcat_ref, wsrc_ref, wtrg_ref, seg_ref, idx_ref, bias_ref,
                out_ref,
                fused_ref, ssrc_ref, strg_ref, neigh_ref, m_ref,
                *, N, H, F_out, TILE_E, has_pad):
    HF = H * F_out
    f32 = jnp.float32
    tile = pl.program_id(0)
    n_tiles = pl.num_programs(0)
    contract0 = (((0,), (0,)), ((), ()))   # contract dim 0 of both operands

    # ---- one-time init: fused node projections, score tables, shift, zeros ---
    @pl.when(tile == 0)
    def _init():
        x = x_ref[...]                                            # (N, F_in)
        # [linear_proj | skip_proj] in one wide MXU pass           (N, 2*HF)
        fused_ref[...] = jnp.dot(x, wcat_ref[...], preferred_element_type=f32)
        # per-head scores with (W * a) @ seg folded into the weights (N, H)
        ssrc = jnp.dot(x, wsrc_ref[...], preferred_element_type=f32)
        strg = jnp.dot(x, wtrg_ref[...], preferred_element_type=f32)
        ssrc_ref[...] = ssrc
        strg_ref[...] = strg
        # upper bound on max_e leakyrelu(ssrc[src_e] + strg[trg_e]); softmax is
        # shift-invariant so any upper bound gives the reference result.
        m_vec = (jnp.max(ssrc, axis=0, keepdims=True)
                 + jnp.max(strg, axis=0, keepdims=True))          # (1, H)
        m_vec = jnp.where(m_vec > 0, m_vec, 0.2 * m_vec)
        m_ref[...] = jnp.max(m_vec, axis=1, keepdims=True)        # (1, 1)
        neigh_ref[...] = jnp.zeros_like(neigh_ref)
        out_ref[...] = jnp.zeros_like(out_ref)

    # ---- per-tile gather/scatter one-hots, node-major (N, TILE_E) ------------
    src = idx_ref[0:1, :]                                         # (1, TILE_E)
    trg = idx_ref[1:2, :]                                         # (1, TILE_E)
    node_iota = lax.broadcasted_iota(jnp.int32, (N, TILE_E), 0)
    S = (node_iota == src).astype(f32)                            # src one-hot
    T = (node_iota == trg).astype(f32)                            # trg one-hot

    # edge scores in (H, TILE_E): lane axis = edges, elementwise work is tiny
    e = (lax.dot_general(ssrc_ref[...], S, contract0, preferred_element_type=f32)
         + lax.dot_general(strg_ref[...], T, contract0, preferred_element_type=f32))
    e = jnp.where(e > 0, e, 0.2 * e)                              # LeakyReLU(0.2)
    exp_e = jnp.exp(e - m_ref[...])                               # (H, TILE_E)
    if has_pad:
        # padded edges carry index N -> all-zero one-hot columns; zero their
        # exp so they can never overflow / NaN-pollute the scatter matmuls.
        exp_e = exp_e * (src < N).astype(f32)

    # expand per-head attention weights to per-feature columns     (TILE_E, HF)
    exp_full = lax.dot_general(exp_e, seg_ref[...], contract0,
                               preferred_element_type=f32)
    # lift projected features to edges, weight, scatter-add to target nodes
    proj = fused_ref[:, 0:HF]                                     # (N, HF)
    lifted = lax.dot_general(S, proj, contract0, preferred_element_type=f32)
    out_ref[...] += jnp.dot(T, lifted * exp_full, preferred_element_type=f32)
    # per-target-node softmax denominator (already expanded to HF columns)
    neigh_ref[...] += jnp.dot(T, exp_full, preferred_element_type=f32)

    # ---- finalize: normalize, skip connection, bias, ELU ---------------------
    @pl.when(tile == n_tiles - 1)
    def _finalize():
        out = out_ref[...] / (neigh_ref[...] + 1e-16)             # softmax norm
        out = out + fused_ref[:, HF:2 * HF]                       # skip_proj(x)
        out = out + bias_ref[...]
        out_ref[...] = jnp.where(out > 0, out,
                                 jnp.exp(jnp.minimum(out, 0.0)) - 1.0)   # ELU


def gat_layer_pallas(x, edge_index, w_t, a_src, a_trg, skip_w_t, bias):
    """x: (N, F_in) f32; edge_index: (2, E) int32.

    w_t, skip_w_t: (F_in, H*F_out); a_src/a_trg: (1, H, F_out); bias: (H*F_out,).
    Returns (N, H*F_out) float32 (concat=True, ELU activation, eval mode).
    """
    N, F_in = x.shape
    E = edge_index.shape[1]
    _, H, F_out = a_src.shape
    HF = H * F_out

    # ---- zero-runtime-cost parameter transforms (wrapper side) ---------------
    # segment matrix seg[h*F_out + f, h] = 1    (HF, H)
    seg = (jnp.arange(HF)[:, None] // F_out ==
           jnp.arange(H)[None, :]).astype(jnp.float32)
    a_src_flat = a_src.reshape(1, HF).astype(jnp.float32)
    a_trg_flat = a_trg.reshape(1, HF).astype(jnp.float32)
    # ((x@W) * a).reshape(N,H,F).sum(-1) == x @ ((W * a) @ seg)
    w_ssrc = (w_t.astype(jnp.float32) * a_src_flat) @ seg          # (F_in, H)
    w_strg = (w_t.astype(jnp.float32) * a_trg_flat) @ seg          # (F_in, H)
    w_cat = jnp.concatenate([w_t, skip_w_t], axis=1).astype(jnp.float32)  # (F_in, 2HF)
    bias_row = bias.reshape(1, HF).astype(jnp.float32)
    seg_t = seg.T                                                  # (H, HF) constant

    # ---- edge tiling: lane-dense (2, E_pad), padded with out-of-range index N
    TILE_E = 512
    E_pad = ((E + TILE_E - 1) // TILE_E) * TILE_E
    pad = E_pad - E
    idx = edge_index.astype(jnp.int32)
    if pad:
        idx = jnp.concatenate([idx, jnp.full((2, pad), N, jnp.int32)], axis=1)
    n_tiles = E_pad // TILE_E

    kernel = functools.partial(_gat_kernel, N=N, H=H, F_out=F_out,
                               TILE_E=TILE_E, has_pad=(pad != 0))

    full_map = lambda t: (0, 0)
    edge_map = lambda t: (0, t)

    return pl.pallas_call(
        kernel,
        out_shape=jax.ShapeDtypeStruct((N, HF), jnp.float32),
        grid=(n_tiles,),                           # single edge-tile axis
        in_specs=[
            pl.BlockSpec((N, F_in), full_map),          # x
            pl.BlockSpec((F_in, 2 * HF), full_map),     # [W_proj | W_skip]
            pl.BlockSpec((F_in, H), full_map),          # W_ssrc
            pl.BlockSpec((F_in, H), full_map),          # W_strg
            pl.BlockSpec((H, HF), full_map),            # seg_t (head->feat)
            pl.BlockSpec((2, TILE_E), edge_map),        # [src; trg] index tile
            pl.BlockSpec((1, HF), full_map),            # bias
        ],
        out_specs=pl.BlockSpec((N, HF), full_map),      # resident accumulator
        scratch_shapes=[
            pltpu.VMEM((N, 2 * HF), jnp.float32),   # fused [proj | skip]
            pltpu.VMEM((N, H), jnp.float32),        # per-node src scores
            pltpu.VMEM((N, H), jnp.float32),        # per-node trg scores
            pltpu.VMEM((N, HF), jnp.float32),       # softmax denominator (expanded)
            pltpu.VMEM((1, 1), jnp.float32),        # stability shift m
        ],
        compiler_params=pltpu.CompilerParams(
            dimension_semantics=("arbitrary",),
            vmem_limit_bytes=32 * 1024 * 1024),
    )(x.astype(jnp.float32), w_cat, w_ssrc, w_strg, seg_t, idx, bias_row)


def gat_layer_ref(x, edge_index, w_t, a_src, a_trg, skip_w_t, bias):
    """Pure-JAX reference mirroring GATLayer.forward (eval mode)."""
    N = x.shape[0]
    _, H, F_out = a_src.shape
    src = edge_index[0]
    trg = edge_index[1]

    proj = (x @ w_t).reshape(N, H, F_out)
    s_src = (proj * a_src).sum(-1)                            # (N, H)
    s_trg = (proj * a_trg).sum(-1)                            # (N, H)

    e = s_src[src] + s_trg[trg]                               # (E, H)
    e = jnp.where(e > 0, e, 0.2 * e)
    e = e - e.max()
    ex = jnp.exp(e)
    den = jnp.zeros((N, H), jnp.float32).at[trg].add(ex)
    att = ex / (den[trg] + 1e-16)                             # (E, H)

    lifted = proj[src]                                        # (E, H, F_out)
    weighted = lifted * att[..., None]
    out3 = jnp.zeros((N, H, F_out), jnp.float32).at[trg].add(weighted)
    out3 = out3 + (x @ skip_w_t).reshape(N, H, F_out)         # skip_proj branch
    out = out3.reshape(N, H * F_out) + bias
    return jnp.where(out > 0, out, jnp.exp(jnp.minimum(out, 0.0)) - 1.0)


if __name__ == "__main__":
    # Small shapes: N nodes, E edges, F_in input feats, H heads, F_out per head.
    # F_out*H != F_in so the skip_proj branch is exercised; E is NOT a multiple
    # of TILE_E so both the padding path and multi-tile accumulation are hit.
    N, E, F_in, H, F_out = 64, 1000, 48, 4, 32
    HF = H * F_out

    key = jax.random.PRNGKey(0)
    kx, ke1, ke2, kw, ka1, ka2, ks = jax.random.split(key, 7)

    x = jax.random.normal(kx, (N, F_in), jnp.float32)
    src = jax.random.randint(ke1, (E,), 0, N, jnp.int32)
    trg = jax.random.randint(ke2, (E,), 0, N, jnp.int32)
    edge_index = jnp.stack([src, trg], axis=0)                # (2, E)

    # Deterministic Xavier-uniform-style parameter init (shapes per __init__).
    b_lin = (6.0 / (F_in + HF)) ** 0.5
    w_t = jax.random.uniform(kw, (F_in, HF), jnp.float32, -b_lin, b_lin)
    skip_w_t = jax.random.uniform(ks, (F_in, HF), jnp.float32, -b_lin, b_lin)
    b_sc = (6.0 / (H * F_out + F_out)) ** 0.5
    a_src = jax.random.uniform(ka1, (1, H, F_out), jnp.float32, -b_sc, b_sc)
    a_trg = jax.random.uniform(ka2, (1, H, F_out), jnp.float32, -b_sc, b_sc)
    bias = jnp.zeros((HF,), jnp.float32)

    out = gat_layer_pallas(x, edge_index, w_t, a_src, a_trg, skip_w_t, bias)
    out = jax.block_until_ready(out)

    ref = gat_layer_ref(x, edge_index, w_t, a_src, a_trg, skip_w_t, bias)
    assert out.shape == (N, HF) and out.dtype == jnp.float32
    assert jnp.allclose(out, ref, rtol=1e-4, atol=1e-4), \
        f"max abs err {jnp.max(jnp.abs(out - ref))}"

    print("KERNEL_OK")
</pallas_src>

<mosaic_0001>
module attributes {stable_mosaic.version = 11 : i64} {
  func.func @_gat_kernel(%arg0: i32, %arg1: memref<64x48xf32, #tpu.memory_space<vmem>>, %arg2: memref<48x256xf32, #tpu.memory_space<vmem>>, %arg3: memref<48x4xf32, #tpu.memory_space<vmem>>, %arg4: memref<48x4xf32, #tpu.memory_space<vmem>>, %arg5: memref<4x128xf32, #tpu.memory_space<vmem>>, %arg6: memref<2x512xi32, #tpu.memory_space<vmem>>, %arg7: memref<1x128xf32, #tpu.memory_space<vmem>>, %arg8: memref<64x128xf32, #tpu.memory_space<vmem>>, %arg9: memref<64x256xf32, #tpu.memory_space<vmem>>, %arg10: memref<64x4xf32, #tpu.memory_space<vmem>>, %arg11: memref<64x4xf32, #tpu.memory_space<vmem>>, %arg12: memref<64x128xf32, #tpu.memory_space<vmem>>, %arg13: memref<1x1xf32, #tpu.memory_space<vmem>>) attributes {dimension_semantics = [#tpu.dimension_semantics<arbitrary>], iteration_bounds = array<i64: 2>, scalar_prefetch = 0 : i64, scratch_operands = 5 : i64, tpu.core_type = #tpu.core_type<tc>, window_params = [{pipeline_mode = #tpu.pipeline_mode<synchronous>, transform_indices = @transform_0, window_bounds = array<i64: 64, 48>}, {pipeline_mode = #tpu.pipeline_mode<synchronous>, transform_indices = @transform_1, window_bounds = array<i64: 48, 256>}, {pipeline_mode = #tpu.pipeline_mode<synchronous>, transform_indices = @transform_2, window_bounds = array<i64: 48, 4>}, {pipeline_mode = #tpu.pipeline_mode<synchronous>, transform_indices = @transform_3, window_bounds = array<i64: 48, 4>}, {pipeline_mode = #tpu.pipeline_mode<synchronous>, transform_indices = @transform_4, window_bounds = array<i64: 4, 128>}, {transform_indices = @transform_5, window_bounds = array<i64: 2, 512>}, {pipeline_mode = #tpu.pipeline_mode<synchronous>, transform_indices = @transform_6, window_bounds = array<i64: 1, 128>}, {pipeline_mode = #tpu.pipeline_mode<synchronous>, transform_indices = @transform_7, window_bounds = array<i64: 64, 128>}]} {
    %c0_i32 = arith.constant 0 : i32
    %0 = arith.cmpi eq, %arg0, %c0_i32 : i32
    %1 = arith.extui %0 : i1 to i32
    %c0_i32_0 = arith.constant 0 : i32
    %2 = arith.cmpi ne, %1, %c0_i32_0 : i32
    scf.if %2 {
      %c0_29 = arith.constant 0 : index
      %c0_30 = arith.constant 0 : index
      %50 = vector.load %arg1[%c0_29, %c0_30] : memref<64x48xf32, #tpu.memory_space<vmem>>, vector<64x48xf32>
      %c0_31 = arith.constant 0 : index
      %c0_32 = arith.constant 0 : index
      %51 = vector.load %arg2[%c0_31, %c0_32] : memref<48x256xf32, #tpu.memory_space<vmem>>, vector<48x256xf32>
      %cst_33 = arith.constant dense<0.000000e+00> : vector<64x256xf32>
      %52 = tpu.matmul %50, %51, %cst_33 {dimension_numbers = #tpu.dot_dimension_numbers<[1], [0], [0], [1], [0, 0, 1, 1], [], []>} : vector<64x48xf32>, vector<48x256xf32>, vector<64x256xf32> -> vector<64x256xf32>
      %c0_34 = arith.constant 0 : index
      %c0_35 = arith.constant 0 : index
      %53 = vector.load %arg9[%c0_34, %c0_35] : memref<64x256xf32, #tpu.memory_space<vmem>>, vector<64x256xf32>
      tpu.vector_store %arg9[%c0_34, %c0_35], %52 {strides = array<i32>} : memref<64x256xf32, #tpu.memory_space<vmem>>, vector<64x256xf32>,
      %c0_36 = arith.constant 0 : index
      %c0_37 = arith.constant 0 : index
      %54 = vector.load %arg3[%c0_36, %c0_37] : memref<48x4xf32, #tpu.memory_space<vmem>>, vector<48x4xf32>
      %cst_38 = arith.constant dense<0.000000e+00> : vector<64x4xf32>
      %55 = tpu.matmul %50, %54, %cst_38 {dimension_numbers = #tpu.dot_dimension_numbers<[1], [0], [0], [1], [0, 0, 1, 1], [], []>} : vector<64x48xf32>, vector<48x4xf32>, vector<64x4xf32> -> vector<64x4xf32>
      %c0_39 = arith.constant 0 : index
      %c0_40 = arith.constant 0 : index
      %56 = vector.load %arg4[%c0_39, %c0_40] : memref<48x4xf32, #tpu.memory_space<vmem>>, vector<48x4xf32>
      %cst_41 = arith.constant dense<0.000000e+00> : vector<64x4xf32>
      %57 = tpu.matmul %50, %56, %cst_41 {dimension_numbers = #tpu.dot_dimension_numbers<[1], [0], [0], [1], [0, 0, 1, 1], [], []>} : vector<64x48xf32>, vector<48x4xf32>, vector<64x4xf32> -> vector<64x4xf32>
      %c0_42 = arith.constant 0 : index
      %c0_43 = arith.constant 0 : index
      %58 = vector.load %arg10[%c0_42, %c0_43] : memref<64x4xf32, #tpu.memory_space<vmem>>, vector<64x4xf32>
      tpu.vector_store %arg10[%c0_42, %c0_43], %55 {strides = array<i32>} : memref<64x4xf32, #tpu.memory_space<vmem>>, vector<64x4xf32>,
      %c0_44 = arith.constant 0 : index
      %c0_45 = arith.constant 0 : index
      %59 = vector.load %arg11[%c0_44, %c0_45] : memref<64x4xf32, #tpu.memory_space<vmem>>, vector<64x4xf32>
      tpu.vector_store %arg11[%c0_44, %c0_45], %57 {strides = array<i32>} : memref<64x4xf32, #tpu.memory_space<vmem>>, vector<64x4xf32>,
      %cst_46 = arith.constant dense<0xFF800000> : vector<4xf32>
      %60 = vector.multi_reduction <maximumf>, %55, %cst_46 [0] : vector<64x4xf32> to vector<4xf32>
      %61 = vector.shape_cast %60 : vector<4xf32> to vector<1x4xf32>
      %cst_47 = arith.constant dense<0xFF800000> : vector<4xf32>
      %62 = vector.multi_reduction <maximumf>, %57, %cst_47 [0] : vector<64x4xf32> to vector<4xf32>
      %63 = vector.shape_cast %62 : vector<4xf32> to vector<1x4xf32>
      %64 = arith.addf %61, %63 : vector<1x4xf32>
      %cst_48 = arith.constant 0.000000e+00 : f32
      %65 = vector.broadcast %cst_48 : f32 to vector<1x4xf32>
      %66 = arith.cmpf ogt, %64, %65 : vector<1x4xf32>
      %cst_49 = arith.constant 2.000000e-01 : f32
      %67 = vector.broadcast %cst_49 : f32 to vector<1x4xf32>
      %68 = arith.mulf %67, %64 : vector<1x4xf32>
      %69 = arith.select %66, %64, %68 : vector<1x4xi1>, vector<1x4xf32>
      %cst_50 = arith.constant dense<0xFF800000> : vector<1xf32>
      %70 = vector.multi_reduction <maximumf>, %69, %cst_50 [1] : vector<1x4xf32> to vector<1xf32>
      %71 = vector.shape_cast %70 : vector<1xf32> to vector<1x1xf32>
      %c0_51 = arith.constant 0 : index
      %c0_52 = arith.constant 0 : index
      %72 = vector.load %arg13[%c0_51, %c0_52] : memref<1x1xf32, #tpu.memory_space<vmem>>, vector<1x1xf32>
      tpu.vector_store %arg13[%c0_51, %c0_52], %71 {strides = array<i32>} : memref<1x1xf32, #tpu.memory_space<vmem>>, vector<1x1xf32>,
      %cst_53 = arith.constant 0.000000e+00 : f32
      %73 = vector.broadcast %cst_53 : f32 to vector<64x128xf32>
      %c0_54 = arith.constant 0 : index
      %c0_55 = arith.constant 0 : index
      %74 = vector.load %arg12[%c0_54, %c0_55] : memref<64x128xf32, #tpu.memory_space<vmem>>, vector<64x128xf32>
      tpu.vector_store %arg12[%c0_54, %c0_55], %73 {strides = array<i32>} : memref<64x128xf32, #tpu.memory_space<vmem>>, vector<64x128xf32>,
      %cst_56 = arith.constant 0.000000e+00 : f32
      %75 = vector.broadcast %cst_56 : f32 to vector<64x128xf32>
      %c0_57 = arith.constant 0 : index
      %c0_58 = arith.constant 0 : index
      %76 = vector.load %arg8[%c0_57, %c0_58] : memref<64x128xf32, #tpu.memory_space<vmem>>, vector<64x128xf32>
      tpu.vector_store %arg8[%c0_57, %c0_58], %75 {strides = array<i32>} : memref<64x128xf32, #tpu.memory_space<vmem>>, vector<64x128xf32>,
    } else {
    }
    %c0 = arith.constant 0 : index
    %c0_1 = arith.constant 0 : index
    %3 = vector.load %arg6[%c0, %c0_1] : memref<2x512xi32, #tpu.memory_space<vmem>>, vector<1x512xi32>
    %c1 = arith.constant 1 : index
    %c0_2 = arith.constant 0 : index
    %4 = vector.load %arg6[%c1, %c0_2] : memref<2x512xi32, #tpu.memory_space<vmem>>, vector<1x512xi32>
    %5 = tpu.iota {dimensions = array<i32: 0>} : vector<64x512xi32>
    %6 = vector.broadcast %3 : vector<1x512xi32> to vector<64x512xi32>
    %7 = arith.cmpi eq, %5, %6 : vector<64x512xi32>
    %8 = arith.extui %7 : vector<64x512xi1> to vector<64x512xi32>
    %9 = arith.sitofp %8 : vector<64x512xi32> to vector<64x512xf32>
    %10 = vector.broadcast %4 : vector<1x512xi32> to vector<64x512xi32>
    %11 = arith.cmpi eq, %5, %10 : vector<64x512xi32>
    %12 = arith.extui %11 : vector<64x512xi1> to vector<64x512xi32>
    %13 = arith.sitofp %12 : vector<64x512xi32> to vector<64x512xf32>
    %c0_3 = arith.constant 0 : index
    %c0_4 = arith.constant 0 : index
    %14 = vector.load %arg10[%c0_3, %c0_4] : memref<64x4xf32, #tpu.memory_space<vmem>>, vector<64x4xf32>
    %cst = arith.constant dense<0.000000e+00> : vector<4x512xf32>
    %15 = tpu.matmul %14, %9, %cst {dimension_numbers = #tpu.dot_dimension_numbers<[0], [0], [1], [1], [0, 1, 1, 1], [], []>} : vector<64x4xf32>, vector<64x512xf32>, vector<4x512xf32> -> vector<4x512xf32>
    %c0_5 = arith.constant 0 : index
    %c0_6 = arith.constant 0 : index
    %16 = vector.load %arg11[%c0_5, %c0_6] : memref<64x4xf32, #tpu.memory_space<vmem>>, vector<64x4xf32>
    %cst_7 = arith.constant dense<0.000000e+00> : vector<4x512xf32>
    %17 = tpu.matmul %16, %13, %cst_7 {dimension_numbers = #tpu.dot_dimension_numbers<[0], [0], [1], [1], [0, 1, 1, 1], [], []>} : vector<64x4xf32>, vector<64x512xf32>, vector<4x512xf32> -> vector<4x512xf32>
    %18 = arith.addf %15, %17 : vector<4x512xf32>
    %cst_8 = arith.constant 0.000000e+00 : f32
    %19 = vector.broadcast %cst_8 : f32 to vector<4x512xf32>
    %20 = arith.cmpf ogt, %18, %19 : vector<4x512xf32>
    %cst_9 = arith.constant 2.000000e-01 : f32
    %21 = vector.broadcast %cst_9 : f32 to vector<4x512xf32>
    %22 = arith.mulf %21, %18 : vector<4x512xf32>
    %23 = arith.select %20, %18, %22 : vector<4x512xi1>, vector<4x512xf32>
    %c0_10 = arith.constant 0 : index
    %c0_11 = arith.constant 0 : index
    %24 = vector.load %arg13[%c0_10, %c0_11] : memref<1x1xf32, #tpu.memory_space<vmem>>, vector<1x1xf32>
    %25 = vector.broadcast %24 : vector<1x1xf32> to vector<4x512xf32>
    %26 = arith.subf %23, %25 : vector<4x512xf32>
    %27 = math.exp %26 : vector<4x512xf32>
    %c64_i32 = arith.constant 64 : i32
    %28 = vector.broadcast %c64_i32 : i32 to vector<1x512xi32>
    %29 = arith.cmpi slt, %3, %28 : vector<1x512xi32>
    %30 = arith.extui %29 : vector<1x512xi1> to vector<1x512xi32>
    %31 = arith.sitofp %30 : vector<1x512xi32> to vector<1x512xf32>
    %32 = vector.broadcast %31 : vector<1x512xf32> to vector<4x512xf32>
    %33 = arith.mulf %27, %32 : vector<4x512xf32>
    %c0_12 = arith.constant 0 : index
    %c0_13 = arith.constant 0 : index
    %34 = vector.load %arg5[%c0_12, %c0_13] : memref<4x128xf32, #tpu.memory_space<vmem>>, vector<4x128xf32>
    %cst_14 = arith.constant dense<0.000000e+00> : vector<512x128xf32>
    %35 = tpu.matmul %33, %34, %cst_14 {dimension_numbers = #tpu.dot_dimension_numbers<[0], [0], [1], [1], [0, 1, 1, 1], [], []>} : vector<4x512xf32>, vector<4x128xf32>, vector<512x128xf32> -> vector<512x128xf32>
    %c0_15 = arith.constant 0 : index
    %c0_16 = arith.constant 0 : index
    %36 = vector.load %arg9[%c0_15, %c0_16] : memref<64x256xf32, #tpu.memory_space<vmem>>, vector<64x128xf32>
    %cst_17 = arith.constant dense<0.000000e+00> : vector<512x128xf32>
    %37 = tpu.matmul %9, %36, %cst_17 {dimension_numbers = #tpu.dot_dimension_numbers<[0], [0], [1], [1], [0, 1, 1, 1], [], []>} : vector<64x512xf32>, vector<64x128xf32>, vector<512x128xf32> -> vector<512x128xf32>
    %c0_18 = arith.constant 0 : index
    %c0_19 = arith.constant 0 : index
    %38 = vector.load %arg8[%c0_18, %c0_19] : memref<64x128xf32, #tpu.memory_space<vmem>>, vector<64x128xf32>
    %39 = arith.mulf %37, %35 : vector<512x128xf32>
    %cst_20 = arith.constant dense<0.000000e+00> : vector<64x128xf32>
    %40 = tpu.matmul %13, %39, %cst_20 {dimension_numbers = #tpu.dot_dimension_numbers<[1], [0], [0], [1], [0, 0, 1, 1], [], []>} : vector<64x512xf32>, vector<512x128xf32>, vector<64x128xf32> -> vector<64x128xf32>
    %41 = arith.addf %38, %40 : vector<64x128xf32>
    %c0_21 = arith.constant 0 : index
    %c0_22 = arith.constant 0 : index
    %42 = vector.load %arg8[%c0_21, %c0_22] : memref<64x128xf32, #tpu.memory_space<vmem>>, vector<64x128xf32>
    tpu.vector_store %arg8[%c0_21, %c0_22], %41 {strides = array<i32>} : memref<64x128xf32, #tpu.memory_space<vmem>>, vector<64x128xf32>,
    %c0_23 = arith.constant 0 : index
    %c0_24 = arith.constant 0 : index
    %43 = vector.load %arg12[%c0_23, %c0_24] : memref<64x128xf32, #tpu.memory_space<vmem>>, vector<64x128xf32>
    %cst_25 = arith.constant dense<0.000000e+00> : vector<64x128xf32>
    %44 = tpu.matmul %13, %35, %cst_25 {dimension_numbers = #tpu.dot_dimension_numbers<[1], [0], [0], [1], [0, 0, 1, 1], [], []>} : vector<64x512xf32>, vector<512x128xf32>, vector<64x128xf32> -> vector<64x128xf32>
    %45 = arith.addf %43, %44 : vector<64x128xf32>
    %c0_26 = arith.constant 0 : index
    %c0_27 = arith.constant 0 : index
    %46 = vector.load %arg12[%c0_26, %c0_27] : memref<64x128xf32, #tpu.memory_space<vmem>>, vector<64x128xf32>
    tpu.vector_store %arg12[%c0_26, %c0_27], %45 {strides = array<i32>} : memref<64x128xf32, #tpu.memory_space<vmem>>, vector<64x128xf32>,
    %c1_i32 = arith.constant 1 : i32
    %47 = arith.cmpi eq, %arg0, %c1_i32 : i32
    %48 = arith.extui %47 : i1 to i32
    %c0_i32_28 = arith.constant 0 : i32
    %49 = arith.cmpi ne, %48, %c0_i32_28 : i32
    scf.if %49 {
      %c0_29 = arith.constant 0 : index
      %c0_30 = arith.constant 0 : index
      %50 = vector.load %arg8[%c0_29, %c0_30] : memref<64x128xf32, #tpu.memory_space<vmem>>, vector<64x128xf32>
      %c0_31 = arith.constant 0 : index
      %c0_32 = arith.constant 0 : index
      %51 = vector.load %arg12[%c0_31, %c0_32] : memref<64x128xf32, #tpu.memory_space<vmem>>, vector<64x128xf32>
      %cst_33 = arith.constant 1.000000e-16 : f32
      %52 = vector.broadcast %cst_33 : f32 to vector<64x128xf32>
      %53 = arith.addf %51, %52 : vector<64x128xf32>
      %54 = arith.divf %50, %53 : vector<64x128xf32>
      %c0_34 = arith.constant 0 : index
      %c128 = arith.constant 128 : index
      %55 = vector.load %arg9[%c0_34, %c128] : memref<64x256xf32, #tpu.memory_space<vmem>>, vector<64x128xf32>
      %56 = arith.addf %54, %55 : vector<64x128xf32>
      %c0_35 = arith.constant 0 : index
      %c0_36 = arith.constant 0 : index
      %57 = vector.load %arg7[%c0_35, %c0_36] : memref<1x128xf32, #tpu.memory_space<vmem>>, vector<1x128xf32>
      %58 = vector.broadcast %57 : vector<1x128xf32> to vector<64x128xf32>
      %59 = arith.addf %56, %58 : vector<64x128xf32>
      %cst_37 = arith.constant 0.000000e+00 : f32
      %60 = vector.broadcast %cst_37 : f32 to vector<64x128xf32>
      %61 = arith.cmpf ogt, %59, %60 : vector<64x128xf32>
      %cst_38 = arith.constant 0.000000e+00 : f32
      %62 = vector.broadcast %cst_38 : f32 to vector<64x128xf32>
      %63 = arith.minimumf %59, %62 : vector<64x128xf32>
      %64 = math.exp %63 : vector<64x128xf32>
      %cst_39 = arith.constant 1.000000e+00 : f32
      %65 = vector.broadcast %cst_39 : f32 to vector<64x128xf32>
      %66 = arith.subf %64, %65 : vector<64x128xf32>
      %67 = arith.select %61, %59, %66 : vector<64x128xi1>, vector<64x128xf32>
      %c0_40 = arith.constant 0 : index
      %c0_41 = arith.constant 0 : index
      %68 = vector.load %arg8[%c0_40, %c0_41] : memref<64x128xf32, #tpu.memory_space<vmem>>, vector<64x128xf32>
      tpu.vector_store %arg8[%c0_40, %c0_41], %67 {strides = array<i32>} : memref<64x128xf32, #tpu.memory_space<vmem>>, vector<64x128xf32>,
    } else {
    }
    return
  }
  func.func @transform_0(%arg0: i32) -> (i32, i32) {
    %c0_i32 = arith.constant 0 : i32
    %c0_i32_0 = arith.constant 0 : i32
    %c0_i32_1 = arith.constant 0 : i32
    return %c0_i32, %c0_i32_0 : i32, i32
  }
  func.func @transform_1(%arg0: i32) -> (i32, i32) {
    %c0_i32 = arith.constant 0 : i32
    %c0_i32_0 = arith.constant 0 : i32
    %c0_i32_1 = arith.constant 0 : i32
    return %c0_i32, %c0_i32_0 : i32, i32
  }
  func.func @transform_2(%arg0: i32) -> (i32, i32) {
    %c0_i32 = arith.constant 0 : i32
    %c0_i32_0 = arith.constant 0 : i32
    %c0_i32_1 = arith.constant 0 : i32
    return %c0_i32, %c0_i32_0 : i32, i32
  }
  func.func @transform_3(%arg0: i32) -> (i32, i32) {
    %c0_i32 = arith.constant 0 : i32
    %c0_i32_0 = arith.constant 0 : i32
    %c0_i32_1 = arith.constant 0 : i32
    return %c0_i32, %c0_i32_0 : i32, i32
  }
  func.func @transform_4(%arg0: i32) -> (i32, i32) {
    %c0_i32 = arith.constant 0 : i32
    %c0_i32_0 = arith.constant 0 : i32
    %c0_i32_1 = arith.constant 0 : i32
    return %c0_i32, %c0_i32_0 : i32, i32
  }
  func.func @transform_5(%arg0: i32) -> (i32, i32) {
    %c0_i32 = arith.constant 0 : i32
    %c0_i32_0 = arith.constant 0 : i32
    return %c0_i32, %arg0 : i32, i32
  }
  func.func @transform_6(%arg0: i32) -> (i32, i32) {
    %c0_i32 = arith.constant 0 : i32
    %c0_i32_0 = arith.constant 0 : i32
    %c0_i32_1 = arith.constant 0 : i32
    return %c0_i32, %c0_i32_0 : i32, i32
  }
  func.func @transform_7(%arg0: i32) -> (i32, i32) {
    %c0_i32 = arith.constant 0 : i32
    %c0_i32_0 = arith.constant 0 : i32
    %c0_i32_1 = arith.constant 0 : i32
    return %c0_i32, %c0_i32_0 : i32, i32
  }
}

</mosaic_0001>

<bundles_post_ra>
// kernel: tpu_custom_call.1
= control target key start
LH: loop header
LB: loop body
LE: loop exit
PB: predicated region body
PF: predicated region fallthrough
CT: control target
= control target key end

     0   :  { %12 = vsyncpa [#allocation8], 0  ;;  %s5180_s24 = smov 0   ;;  %s6957_s0 = inlined_call_operand.vmem [shape: f32[64,48], index: 0, kind: input, shape index: {}]   ;;  %s6958_s1 = inlined_call_operand.vmem [shape: f32[48,256], index: 1, kind: input, shape index: {}]   ;;  %s6959_s2 = inlined_call_operand.vmem [shape: f32[48,4], index: 2, kind: input, shape index: {}]   ;;  %s6960_s3 = inlined_call_operand.vmem [shape: f32[48,4], index: 3, kind: input, shape index: {}]   ;;  %s6961_s4 = inlined_call_operand.vmem [shape: f32[4,128], index: 4, kind: input, shape index: {}]   ;;  %s6962_s5 = inlined_call_operand.vmem [shape: s32[2,1024], index: 5, kind: input, shape index: {}]   ;;  %s6963_s6 = inlined_call_operand.vmem [shape: f32[1,128], index: 6, kind: input, shape index: {}]   ;;  %s6964_s7 = inlined_call_operand.hbm [shape: f32[64,128], index: 7, kind: output, shape index: {}]  }
   0x1 LB: > { %s5186_s25 = sadd.s32 4294967295, %s5130_s24   ;;  %p3558_p0 = scmp.ge.s32.totalorder %s5130_s24, 1  ;;  %s5130_s24 = sphi %s5180_s24, %s18_s24  }
   0x2   : > { %p234_p1 = scmp.lt.s32.totalorder %s5130_s24, 3 }
   0x4   : > { %p235_p2 = pnand %p3558_p0, %p234_p1 }
   0x6   : > { %238 = sbr.rel (%p235_p2) target bundleno = 1702 (0x6a6), region = 48 }
   0xd   : > { %s3559_s26 = sshll.u32 %s5186_s25, 2  ;;  %p3561_p4 = scmp.ne.s32.totalorder %s5186_s25, 0 }
   0xe   : > { %p262_p3 = scmp.lt.s32.totalorder %s3559_s26, 7  ;;  %v445_v0 = vld [vmem:[%s6959_s2] sm:$0xff] (!%p3561_p4)  ;;  %v446_v1 = vld [vmem:[%s6959_s2 + $0x8] sm:$0xff] (!%p3561_p4)  ;;  %v447_v2 = vld [vmem:[%s6959_s2 + $0x10] sm:$0xff] (!%p3561_p4)  ;;  %vm291_vm0 = vcmask (!%p3561_p4), 392192   ;;  %v5132_v5 = vmov (!%p3561_p4), 0.0  }
   0xf   : > { %270 = sbr.rel (%p3561_p4) target bundleno = 438 (0x1b6), region = 52  ;;  %v4587_v3 = vpack.c.bf16 (!%p3561_p4), %v446_v1, %v445_v0  ;;  %v448_v4 = vld [vmem:[%s6959_s2 + $0x18] sm:$0xff] (!%p3561_p4)  ;;  %380 = vmatprep.mubr.f32.mxu0 (!%p3561_p4), %v5132_v5  ;;  %735 = vst [vmem:[#allocation5] sm:$0xff] (!%p3561_p4), %v5132_v5  ;;  %736 = vst [vmem:[#allocation5 + $0x8] sm:$0xff] (!%p3561_p4), %v5132_v5  ;;  %v449_v7 = vld [vmem:[%s6959_s2 + $0x20] sm:$0xff] (!%p3561_p4)  ;;  %vm667_vm1 = vcmask (!%p3561_p4), 31744  }
  0x10   : > { %s7124_s26 = smov (!%p262_p3, %s3559_s26), 7  ;;  %737 = vst [vmem:[#allocation5 + $0x10] sm:$0xff] (!%p3561_p4), %v5132_v5  ;;  %738 = vst [vmem:[#allocation5 + $0x18] sm:$0xff] (!%p3561_p4), %v5132_v5  ;;  %v4591_v6 = vpack.c.bf16 (!%p3561_p4), %v448_v4, %v447_v2  ;;  %v450_v8 = vld [vmem:[%s6959_s2 + $0x28] sm:$0xff] (!%p3561_p4)  ;;  %v5235_v9 = vld [vmem:[%s6957_s0] sm:$0xff] (!%p3561_p4)  ;;  %vm733_vm3 = vcmask (!%p3561_p4), 0  }
  0x11   : > { %s3560_s27 = sshll.u32 %s7124_s26, 1  ;;  %739 = vst [vmem:[#allocation5 + $0x20] sm:$0xff] (!%p3561_p4), %v5132_v5  ;;  %740 = vst [vmem:[#allocation5 + $0x28] sm:$0xff] (!%p3561_p4), %v5132_v5  ;;  %4588 = vmatprep.subr.bf16.mxu1 (!%p3561_p4), %v4587_v3  ;;  %4329 = vmatprep.mubr.msk.f32.mxu1 (!%p3561_p4), %vm291_vm0, %v5235_v9  ;;  %v4595_v10 = vpack.c.bf16 (!%p3561_p4), %v450_v8, %v449_v7  ;;  %v556_v11 = vld [vmem:[%s6960_s3] sm:$0xff] (!%p3561_p4)  ;;  %v557_v12 = vld [vmem:[%s6960_s3 + $0x8] sm:$0xff] (!%p3561_p4) }
  0x12   : > { %s5194_s30 = scalar_lea.vmem %s6962_s5, %s3560_s27  ;;  %741 = vst [vmem:[#allocation5 + $0x30] sm:$0xff] (!%p3561_p4), %v5132_v5  ;;  %742 = vst [vmem:[#allocation5 + $0x38] sm:$0xff] (!%p3561_p4), %v5132_v5  ;;  %4590 = vmatpush3.bf16.msra.mxu1 (!%p3561_p4), %v4587_v3  ;;  %v280_v13 = vld [vmem:[%s6958_s1 + $0x8] sm:$0xff] (!%p3561_p4)  ;;  %v282_v14 = vld [vmem:[%s6958_s1 + $0x18] sm:$0xff] (!%p3561_p4)  ;;  %v4599_v22 = vpack.c.bf16 (!%p3561_p4), %v557_v12, %v556_v11 }
  0x13   : > { %743 = vst [vmem:[#allocation7] sm:$0xff] (!%p3561_p4), %v5132_v5  ;;  %744 = vst [vmem:[#allocation7 + $0x8] sm:$0xff] (!%p3561_p4), %v5132_v5  ;;  %4592 = vmatprep.subr.bf16.mxu1 (!%p3561_p4), %v4591_v6  ;;  %v279_v15 = vld [vmem:[%s6958_s1] sm:$0xff] (!%p3561_p4)  ;;  %v281_v16 = vld [vmem:[%s6958_s1 + $0x10] sm:$0xff] (!%p3561_p4)  ;;  %v4575_v17 = vpack.c.bf16 (!%p3561_p4), %v282_v14, %v280_v13 }
  0x14   : > { %745 = vst [vmem:[#allocation7 + $0x10] sm:$0xff] (!%p3561_p4), %v5132_v5  ;;  %746 = vst [vmem:[#allocation7 + $0x18] sm:$0xff] (!%p3561_p4), %v5132_v5  ;;  %v4577_v18 = vpack.c.bf16 (!%p3561_p4), %v281_v16, %v279_v15  ;;  %v284_v19 = vld [vmem:[%s6958_s1 + $0x28] sm:$0xff] (!%p3561_p4)  ;;  %v286_v20 = vld [vmem:[%s6958_s1 + $0x38] sm:$0xff] (!%p3561_p4) }
  0x15   : > { %747 = vst [vmem:[#allocation7 + $0x20] sm:$0xff] (!%p3561_p4), %v5132_v5  ;;  %748 = vst [vmem:[#allocation7 + $0x28] sm:$0xff] (!%p3561_p4), %v5132_v5  ;;  %v283_v21 = vld [vmem:[%s6958_s1 + $0x20] sm:$0xff] (!%p3561_p4)  ;;  %v558_v23 = vld [vmem:[%s6960_s3 + $0x10] sm:$0xff] (!%p3561_p4)  ;;  %v4579_v24 = vpack.c.bf16 (!%p3561_p4), %v286_v20, %v284_v19  ;;  %4576 = vmatprep.subr.bf16.mxu0 (!%p3561_p4), %v4575_v17 }
  0x16   : > { %749 = vst [vmem:[#allocation7 + $0x30] sm:$0xff] %v5132_v5  ;;  %750 = vst [vmem:[#allocation7 + $0x38] sm:$0xff] %v5132_v5  ;;  %4594 = vmatpush3.bf16.msra.mxu1 %v4591_v6  ;;  %v285_v25 = vld [vmem:[%s6958_s1 + $0x30] sm:$0xff]  ;;  %v559_v26 = vld [vmem:[%s6960_s3 + $0x18] sm:$0xff]  ;;  %4578 = vmatpush1.bf16.msra.mxu0 %v4577_v18 }
  0x17   : > { %4596 = vmatprep.subr.bf16.mxu1 %v4595_v10  ;;  %v288_v27 = vld [vmem:[%s6958_s1 + $0x48] sm:$0xff]  ;;  %v290_v28 = vld [vmem:[%s6958_s1 + $0x58] sm:$0xff]  ;;  %v4581_v29 = vpack.c.bf16 %v285_v25, %v283_v21  ;;  %4580 = vmatprep.subr.bf16.mxu0 %v4579_v24  ;;  %v287_v31 = vld [vmem:[%s6958_s1 + $0x40] sm:$0xff]  ;;  %v4603_v34 = vpack.c.bf16 %v559_v26, %v558_v23 }
  0x18   : > { %v272_v30 = vld [vmem:[%s6957_s0 + $0x8] sm:$0xff]  ;;  %v289_v32 = vld [vmem:[%s6958_s1 + $0x50] sm:$0xff]  ;;  %v4583_v35 = vpack.c.bf16 %v290_v28, %v288_v27  ;;  %v560_v36 = vld [vmem:[%s6960_s3 + $0x20] sm:$0xff] }
  0x19   : > { %v273_v33 = vld [vmem:[%s6957_s0 + $0x10] sm:$0xff]  ;;  %v561_v37 = vld [vmem:[%s6960_s3 + $0x28] sm:$0xff]  ;;  %v4585_v38 = vpack.c.bf16 %v289_v32, %v287_v31  ;;  %v274_v39 = vld [vmem:[%s6957_s0 + $0x18] sm:$0xff] }
  0x1a   : > { %4598 = vmatpush3.bf16.msra.mxu1 %v4595_v10  ;;  %4582 = vmatpush1.bf16.msra.mxu0 %v4581_v29  ;;  %v275_v40 = vld [vmem:[%s6957_s0 + $0x20] sm:$0xff]  ;;  %v4607_v41 = vpack.c.bf16 %v561_v37, %v560_v36  ;;  %v276_v42 = vld [vmem:[%s6957_s0 + $0x28] sm:$0xff]  ;;  %v277_v43 = vld [vmem:[%s6957_s0 + $0x30] sm:$0xff] }
  0x1b   : > { %4600 = vmatprep.subr.bf16.mxu1 %v4599_v22  ;;  %4584 = vmatprep.subr.bf16.mxu0 %v4583_v35  ;;  %v278_v44 = vld [vmem:[%s6957_s0 + $0x38] sm:$0xff] }
  0x1d   : > { %4330 = vmatmul.mubr.msk.f32.vlgmr.msra.gmra.mrb[0].mxu1 %vm291_vm0, %v272_v30 }
  0x1e   : > { %4602 = vmatpush3.bf16.msra.mxu1 %v4599_v22  ;;  %4332 = vmatprep.mubr.msk.f32.mxu1 %vm291_vm0, %v273_v33 }
  0x1f   : > { %4604 = vmatprep.subr.bf16.mxu1 %v4603_v34  ;;  %4586 = vmatpush1.bf16.msra.mxu0 %v4585_v38 }
  0x21   : > { %4333 = vmatmul.mubr.msk.f32.gmra.mrb[2].mxu1 %vm291_vm0, %v274_v39 }
  0x22   : > { %4335 = vmatprep.mubr.msk.f32.mxu1 %vm291_vm0, %v275_v40  ;;  %4606 = vmatpush3.bf16.msra.mxu1 %v4603_v34 }
  0x23   : > { %4608 = vmatprep.subr.bf16.mxu1 %v4607_v41  ;;  %3562 = vmatmul.mubr.msk.f32.vlgmr.msra.gmra.mrb[0].mxu0 %vm291_vm0, %v5235_v9 }
  0x24   : > { %386 = vmatprep.mubr.f32.mxu0 %v5132_v5 }
  0x25   : > { %4336 = vmatmul.mubr.msk.f32.gmra.mrb[4].mxu1 %vm291_vm0, %v276_v42 }
  0x26   : > { %4338 = vmatprep.mubr.msk.f32.mxu1 %vm291_vm0, %v277_v43  ;;  %4610 = vmatpush3.bf16.msra.mxu1 %v4607_v41 }
  0x27   : > { %3563 = vmatmul.mubr.msk.f32.gmra.mrb[2].mxu0 %vm291_vm0, %v272_v30 }
  0x28   : > { %392 = vmatprep.mubr.f32.mxu0 %v5132_v5 }
  0x29   : > { %4339 = vmatmul.mubr.msk.f32.gmra.mrb[6].mxu1 %vm291_vm0, %v278_v44 }
  0x2a   : > { %4353 = vmatprep.mubr.msk.f32.mxu1 %vm291_vm0, %v5235_v9 }
  0x2b   : > { %3564 = vmatmul.mubr.msk.f32.gmra.mrb[4].mxu0 %vm291_vm0, %v273_v33 }
  0x2c   : > { %398 = vmatprep.mubr.f32.mxu0 %v5132_v5 }
  0x2d   : > { %4354 = vmatmul.mubr.msk.f32.vlgmr.msra.gmra.mrb[8].mxu1 %vm291_vm0, %v272_v30 }
  0x2e   : > { %4356 = vmatprep.mubr.msk.f32.mxu1 %vm291_vm0, %v273_v33 }
  0x2f   : > { %3565 = vmatmul.mubr.msk.f32.gmra.mrb[6].mxu0 %vm291_vm0, %v274_v39 }
  0x30   : > { %404 = vmatprep.mubr.f32.mxu0 %v5132_v5 }
  0x31   : > { %4357 = vmatmul.mubr.msk.f32.gmra.mrb[10].mxu1 %vm291_vm0, %v274_v39 }
  0x32   : > { %4359 = vmatprep.mubr.msk.f32.mxu1 %vm291_vm0, %v275_v40 }
  0x33   : > { %3566 = vmatmul.mubr.msk.f32.gmra.mrb[8].mxu0 %vm291_vm0, %v275_v40 }
  0x34   : > { %410 = vmatprep.mubr.f32.mxu0 %v5132_v5 }
  0x35   : > { %4360 = vmatmul.mubr.msk.f32.gmra.mrb[12].mxu1 %vm291_vm0, %v276_v42 }
  0x36   : > { %4362 = vmatprep.mubr.msk.f32.mxu1 %vm291_vm0, %v277_v43 }
  0x37   : > { %3567 = vmatmul.mubr.msk.f32.gmra.mrb[10].mxu0 %vm291_vm0, %v276_v42 }
  0x38   : > { %416 = vmatprep.mubr.f32.mxu0 %v5132_v5 }
  0x39   : > { %4363 = vmatmul.mubr.msk.f32.gmra.mrb[14].mxu1 %vm291_vm0, %v278_v44 }
  0x3b   : > { %3568 = vmatmul.mubr.msk.f32.gmra.mrb[12].mxu0 %vm291_vm0, %v277_v43 }
  0x3c   : > { %422 = vmatprep.mubr.f32.mxu0 %v5132_v5 }
  0x3f   : > { %3569 = vmatmul.mubr.msk.f32.gmra.mrb[14].mxu0 %vm291_vm0, %v278_v44 }
  0xf0   : > { %v4331_v45 = vpop.f32.mrb[0].mxu1 }
  0xf1   : > { %669 = vst.msk [vmem:[#allocation3 + $0x8] sm:$0xff] %vm667_vm1, %v4331_v45  ;;  %v517_v46 = vpop.f32.mrb[1].mxu1  ;;  %v685_v52 = vsel %vm667_vm1, %v4331_v45, -inf }
  0xf2   : > { %668 = vst.msk [vmem:[#allocation3] sm:$0xff] %vm667_vm1, %v517_v46  ;;  %v684_v55 = vsel %vm667_vm1, %v517_v46, -inf }
  0xf4   : > { %v4334_v47 = vpop.f32.mrb[2].mxu1 }
  0xf5   : > { %671 = vst.msk [vmem:[#allocation3 + $0x18] sm:$0xff] %vm667_vm1, %v4334_v47  ;;  %v527_v48 = vpop.f32.mrb[3].mxu1  ;;  %v687_v62 = vsel %vm667_vm1, %v4334_v47, -inf }
  0xf6   : > { %670 = vst.msk [vmem:[#allocation3 + $0x10] sm:$0xff] %vm667_vm1, %v527_v48  ;;  %v382_v49 = vpop.f32.mrb[0].mxu0  ;;  %v686_v2 = vsel %vm667_vm1, %v527_v48, -inf }
  0xf7   : > { %429 = vst [vmem:[#allocation2] sm:$0xff] %v382_v49  ;;  %v384_v51 = vpop.f32.mrb[1].mxu0 }
  0xf8   : > { %v4337_v50 = vpop.f32.mrb[4].mxu1  ;;  %430 = vst [vmem:[#allocation2 + $0x8] sm:$0xff] %v384_v51 }
  0xf9   : > { %673 = vst.msk [vmem:[#allocation3 + $0x28] sm:$0xff] %vm667_vm1, %v4337_v50  ;;  %v690_v53 = vsel %vm667_vm1, %v4337_v50, -inf  ;;  %v537_v54 = vpop.f32.mrb[5].mxu1 }
  0xfa   : > { %v691_v56 = vmax.f32 %v685_v52, %v690_v53  ;;  %672 = vst.msk [vmem:[#allocation3 + $0x20] sm:$0xff] %vm667_vm1, %v537_v54  ;;  %v688_v57 = vsel %vm667_vm1, %v537_v54, -inf  ;;  %v388_v59 = vpop.f32.mrb[2].mxu0 }
  0xfb   : > { %v689_v58 = vmax.f32 %v684_v55, %v688_v57  ;;  %431 = vst [vmem:[#allocation2 + $0x10] sm:$0xff] %v388_v59  ;;  %v390_v61 = vpop.f32.mrb[3].mxu0 }
  0xfc   : > { %v4340_v60 = vpop.f32.mrb[6].mxu1  ;;  %432 = vst [vmem:[#allocation2 + $0x18] sm:$0xff] %v390_v61 }
  0xfd   : > { %v696_v63 = vmax.f32 %v689_v58, %v691_v56  ;;  %675 = vst.msk [vmem:[#allocation3 + $0x38] sm:$0xff] %vm667_vm1, %v4340_v60  ;;  %v694_v0 = vsel %vm667_vm1, %v4340_v60, -inf  ;;  %v547_v1 = vpop.f32.mrb[7].mxu1 }
  0xfe   : > { %v695_v3 = vmax.f32 %v687_v62, %v694_v0  ;;  %674 = vst.msk [vmem:[#allocation3 + $0x30] sm:$0xff] %vm667_vm1, %v547_v1  ;;  %v692_v4 = vsel %vm667_vm1, %v547_v1, -inf  ;;  %v394_v6 = vpop.f32.mrb[4].mxu0 }
  0xff   : > { %v693_v5 = vmax.f32 %v686_v2, %v692_v4  ;;  %433 = vst [vmem:[#allocation2 + $0x20] sm:$0xff] %v394_v6  ;;  %v396_v8 = vpop.f32.mrb[5].mxu0 }
 0x100   : > { %v4355_v7 = vpop.f32.mrb[8].mxu1  ;;  %434 = vst [vmem:[#allocation2 + $0x28] sm:$0xff] %v396_v8 }
 0x101   : > { %v697_v9 = vmax.f32 %v693_v5, %v695_v3  ;;  %677 = vst.msk [vmem:[#allocation4 + $0x8] sm:$0xff] %vm667_vm1, %v4355_v7  ;;  %v628_v10 = vpop.f32.mrb[9].mxu1  ;;  %v706_v19 = vsel %vm667_vm1, %v4355_v7, -inf }
 0x102   : > { %676 = vst.msk [vmem:[#allocation4] sm:$0xff] %vm667_vm1, %v628_v10  ;;  %v400_v12 = vpop.f32.mrb[6].mxu0  ;;  %v705_v22 = vsel %vm667_vm1, %v628_v10, -inf }
 0x103   : > { %v698_v11 = vmax.f32 %v696_v63, %v697_v9  ;;  %435 = vst [vmem:[#allocation2 + $0x30] sm:$0xff] %v400_v12  ;;  %v402_v14 = vpop.f32.mrb[7].mxu0 }
 0x104   : > { %v4358_v13 = vpop.f32.mrb[10].mxu1  ;;  %436 = vst [vmem:[#allocation2 + $0x38] sm:$0xff] %v402_v14 }
 0x105   : > { %679 = vst.msk [vmem:[#allocation4 + $0x18] sm:$0xff] %vm667_vm1, %v4358_v13  ;;  %v638_v15 = vpop.f32.mrb[11].mxu1  ;;  %v699_v25 = vrot.slane %v698_v11, 4  ;;  %v708_v30 = vsel %vm667_vm1, %v4358_v13, -inf }
 0x106   : > { %678 = vst.msk [vmem:[#allocation4 + $0x10] sm:$0xff] %vm667_vm1, %v638_v15  ;;  %v406_v16 = vpop.f32.mrb[8].mxu0  ;;  %v707_v34 = vsel %vm667_vm1, %v638_v15, -inf }
 0x107   : > { %437 = vst [vmem:[#allocation2 + $0x40] sm:$0xff] %v406_v16  ;;  %v408_v18 = vpop.f32.mrb[9].mxu0  ;;  %v700_v37 = vmax.f32 %v698_v11, %v699_v25 }
 0x108   : > { %v4361_v17 = vpop.f32.mrb[12].mxu1  ;;  %438 = vst [vmem:[#allocation2 + $0x48] sm:$0xff] %v408_v18 }
 0x109   : > { %681 = vst.msk [vmem:[#allocation4 + $0x28] sm:$0xff] %vm667_vm1, %v4361_v17  ;;  %v711_v20 = vsel %vm667_vm1, %v4361_v17, -inf  ;;  %v648_v21 = vpop.f32.mrb[13].mxu1  ;;  %v701_v42 = vrot.slane %v700_v37, 2 }
 0x10a   : > { %v712_v23 = vmax.f32 %v706_v19, %v711_v20  ;;  %680 = vst.msk [vmem:[#allocation4 + $0x20] sm:$0xff] %vm667_vm1, %v648_v21  ;;  %v709_v24 = vsel %vm667_vm1, %v648_v21, -inf  ;;  %v412_v27 = vpop.f32.mrb[10].mxu0 }
 0x10b   : > { %v710_v26 = vmax.f32 %v705_v22, %v709_v24  ;;  %439 = vst [vmem:[#allocation2 + $0x50] sm:$0xff] %v412_v27  ;;  %v414_v29 = vpop.f32.mrb[11].mxu0  ;;  %v702_v48 = vmax.f32 %v700_v37, %v701_v42 }
 0x10c   : > { %v4364_v28 = vpop.f32.mrb[14].mxu1  ;;  %440 = vst [vmem:[#allocation2 + $0x58] sm:$0xff] %v414_v29 }
 0x10d   : > { %v717_v31 = vmax.f32 %v710_v26, %v712_v23  ;;  %683 = vst.msk [vmem:[#allocation4 + $0x38] sm:$0xff] %vm667_vm1, %v4364_v28  ;;  %v715_v32 = vsel %vm667_vm1, %v4364_v28, -inf  ;;  %v658_v33 = vpop.f32.mrb[15].mxu1  ;;  %v703_v50 = vrot.slane %v702_v48, 1 }
 0x10e   : > { %v716_v35 = vmax.f32 %v708_v30, %v715_v32  ;;  %682 = vst.msk [vmem:[#allocation4 + $0x30] sm:$0xff] %vm667_vm1, %v658_v33  ;;  %v713_v36 = vsel %vm667_vm1, %v658_v33, -inf  ;;  %v418_v39 = vpop.f32.mrb[12].mxu0 }
 0x10f   : > { %v714_v38 = vmax.f32 %v707_v34, %v713_v36  ;;  %441 = vst [vmem:[#allocation2 + $0x60] sm:$0xff] %v418_v39  ;;  %v420_v40 = vpop.f32.mrb[13].mxu0  ;;  %v704_v53 = vmax.f32 %v702_v48, %v703_v50 }
 0x110   : > { %442 = vst [vmem:[#allocation2 + $0x68] sm:$0xff] %v420_v40 }
 0x111   : > { %v718_v41 = vmax.f32 %v714_v38, %v716_v35 }
 0x112   : > { %v424_v44 = vpop.f32.mrb[14].mxu0 }
 0x113   : > { %v719_v43 = vmax.f32 %v717_v31, %v718_v41  ;;  %443 = vst [vmem:[#allocation2 + $0x70] sm:$0xff] %v424_v44  ;;  %v426_v45 = vpop.f32.mrb[15].mxu0 }
 0x114   : > { %444 = vst [vmem:[#allocation2 + $0x78] sm:$0xff] %v426_v45 }
 0x115   : > { %v720_v46 = vrot.slane %v719_v43, 4 }
 0x117   : > { %v721_v47 = vmax.f32 %v719_v43, %v720_v46 }
 0x119   : > { %v722_v49 = vrot.slane %v721_v47, 2 }
 0x11b   : > { %v723_v51 = vmax.f32 %v721_v47, %v722_v49 }
 0x11d   : > { %v724_v52 = vrot.slane %v723_v51, 1 }
 0x11f   : > { %v725_v54 = vmax.f32 %v723_v51, %v724_v52 }
 0x121   : > { %v726_v55 = vadd.f32 %v725_v54, %v704_v53 }
 0x123   : > { %vm727_vm2 = vcmp.gt.f32.partialorder %v726_v55, 0.0  ;;  %v728_v56 = vmul.f32 0.2, %v726_v55 }
 0x125   : > { %v729_v57 = vsel %vm727_vm2, %v726_v55, %v728_v56 }
 0x126   : > { %v730_v58 = vsel %vm667_vm1, %v729_v57, -inf }
 0x127   : > { %731 = vmax.xlane.f32.xlu0 %v730_v58 }
 0x1b4   : > { %v732_v59 = vpop.xlane.xlu0 %731 }
 0x1b5   : > { %734 = vst.msk [vmem:[#allocation6] sm:$0x1] %vm733_vm3, %v732_v59 }
 0x1b6 PF: > { %v995_v60 = vld [vmem:[#allocation4] sm:$0xff]  ;;  %v754_v61 = vlaneseq  ;;  %v5133_v63 = vmov 0.0   ;;  %v996_v0 = vld [vmem:[#allocation4 + $0x8] sm:$0xff]  ;;  %v997_v8 = vld [vmem:[#allocation4 + $0x10] sm:$0xff]  ;;  %v5134_v18 = vmov 1.0|1.0  }
 0x1b7   : > { %1003 = vxpose.xlu0.b32.start [1/8] (short) (narrow) %v995_v60, 8  ;;  %v987_v62 = vld [vmem:[#allocation3] sm:$0xff]  ;;  %1103 = vmatprep.mubr.f32.mxu0 %v5133_v63  ;;  %v988_v2 = vld [vmem:[#allocation3 + $0x8] sm:$0xff]  ;;  %v989_v13 = vld [vmem:[#allocation3 + $0x10] sm:$0xff]  ;;  %p3914_p5 = scmp.ne.s32.totalorder %s5186_s25, 1 }
 0x1b8   : > { %1181 = vxpose.xlu1.b32.start [1/8] (short) (narrow) %v987_v62, 8  ;;  %v5380_v1 = vshrl.u32 %v754_v61, 7  ;;  %1174 = vmatprep.mubr.f32.mxu1 %v5133_v63  ;;  %v3586_v6 = vld [vmem:[%s5194_s30 + $0x1] ss:$2 sm:$0xf]  ;;  %v998_v17 = vld [vmem:[#allocation4 + $0x18] sm:$0xff] }
 0x1b9   : > { %v990_v21 = vld [vmem:[#allocation3 + $0x18] sm:$0xff]  ;;  %v999_v22 = vld [vmem:[#allocation4 + $0x20] sm:$0xff]  ;;  %v1000_v27 = vld [vmem:[#allocation4 + $0x28] sm:$0xff] }
 0x1ba   : > { %v5384_v3 = vadd.s32 8, %v5380_v1  ;;  %v5387_v4 = vsub.s32 1, %v5380_v1  ;;  %v5390_v5 = vsub.s32 3, %v5380_v1  ;;  %v5394_v7 = vsub.s32 0, %v5380_v1  ;;  %v991_v25 = vld [vmem:[#allocation3 + $0x20] sm:$0xff]  ;;  %v992_v29 = vld [vmem:[#allocation3 + $0x28] sm:$0xff] }
 0x1bb   : > { %1004 = vxpose.xlu0.b32.cont [2/8] (short) (narrow) %v996_v0, 8  ;;  %v5403_v11 = vsub.s32 2, %v5380_v1  ;;  %v5406_v12 = vadd.s32 16, %v5380_v1  ;;  %v5412_v15 = vadd.s32 24, %v5380_v1  ;;  %v5447_v19 = vadd.s32 32, %v5380_v1  ;;  %v1001_v32 = vld [vmem:[#allocation4 + $0x30] sm:$0xff] }
 0x1bc   : > { %1182 = vxpose.xlu1.b32.cont [2/8] (short) (narrow) %v988_v2, 8  ;;  %v5397_v9 = vrot.slane %v3586_v6, %v5387_v4  ;;  %v5400_v10 = vrot.slane %v3586_v6, %v5390_v5  ;;  %v5409_v14 = vrot.slane %v3586_v6, %v5394_v7  ;;  %v5450_v20 = vadd.s32 40, %v5380_v1  ;;  %v5518_v26 = vld [vmem:[%s5194_s30] ss:$2 sm:$0xf]  ;;  %v993_v33 = vld [vmem:[#allocation3 + $0x30] sm:$0xff] }
 0x1bd   : > { %v5433_v16 = vrot.slane %v3586_v6, %v5403_v11  ;;  %7015 = vst [vmem:[#allocation11_spill] sm:$0xff] %v5447_v19  ;;  %v5501_v23 = vadd.s32 48, %v5380_v1  ;;  %v5504_v24 = vadd.s32 56, %v5380_v1  ;;  %v5555_v28 = vrot.slane %v5518_v26, %v5387_v4  ;;  %v1002_v34 = vld [vmem:[#allocation4 + $0x38] sm:$0xff]  ;;  %v2135_v36 = vld [vmem:[#allocation2 + $0x40] sm:$0xff] }
 0x1be   : > { %vm6995_vm4 = vcmp.eq.s32.totalorder %v5380_v1, %v5397_v9  ;;  %vm6989_vm5 = vcmp.eq.s32.totalorder %v5384_v3, %v5397_v9  ;;  %vm6996_vm6 = vcmp.eq.s32.totalorder %v5380_v1, %v5400_v10  ;;  %vm6966_vm7 = vcmp.eq.s32.totalorder %v5384_v3, %v5400_v10  ;;  %7016 = vst [vmem:[#allocation12_spill] sm:$0xff] %v5450_v20  ;;  %v994_v35 = vld [vmem:[#allocation3 + $0x38] sm:$0xff]  ;;  %v2137_v39 = vld [vmem:[#allocation2 + $0x60] sm:$0xff] }
 0x1bf   : > { %1005 = vxpose.xlu0.b32.cont [3/8] (short) (narrow) %v997_v8, 8  ;;  %vm4611_vm8 = vmpackc.low %vm6989_vm5, %vm6995_vm4  ;;  %vm6992_vm9 = vcmp.eq.s32.totalorder %v5380_v1, %v5409_v14  ;;  %vm6986_vm10 = vcmp.eq.s32.totalorder %v5384_v3, %v5409_v14  ;;  %7014 = vst [vmem:[#allocation10_spill] sm:$0xff] %v5433_v16  ;;  %vm6973_vm12 = vcmp.eq.s32.totalorder %v5406_v12, %v5397_v9 }
 0x1c0   : > { %1183 = vxpose.xlu1.b32.cont [3/8] (short) (narrow) %v989_v13, 8  ;;  %4612 = vmatprep.subr.msk.bf16.mxu0 %vm4611_vm8, %v5134_v18  ;;  %vm4627_vm11 = vmpackc.low %vm6966_vm7, %vm6996_vm6  ;;  %vm6968_vm13 = vcmp.eq.s32.totalorder %v5412_v15, %v5397_v9  ;;  %vm6967_vm15 = vcmp.eq.s32.totalorder %v5380_v1, %v5433_v16  ;;  %vm6965_vm0 = vcmp.eq.s32.totalorder %v5384_v3, %v5433_v16  ;;  %v3719_v13 = vld [vmem:[#allocation6] ss:$0 sm:$0xff] }
 0x1c1   : > { %4628 = vmatprep.subr.msk.bf16.mxu1 %vm4627_vm11, %v5134_v18  ;;  %vm4613_vm14 = vmpackc.low %vm6986_vm10, %vm6992_vm9  ;;  %vm6970_vm1 = vcmp.eq.s32.totalorder %v5406_v12, %v5400_v10  ;;  %vm6969_vm2 = vcmp.eq.s32.totalorder %v5412_v15, %v5400_v10  ;;  %vm6972_vm8 = vcmp.eq.s32.totalorder %v5406_v12, %v5409_v14  ;;  %vm6971_vm11 = vcmp.eq.s32.totalorder %v5412_v15, %v5409_v14 }
 0x1c2   : > { %4614 = vmatpush1.bf16.msk.msra.mxu0 %vm4613_vm14, %v5134_v18  ;;  %vm4629_vm3 = vmpackc.low %vm6965_vm0, %vm6967_vm15  ;;  %vm6975_vm0 = vcmp.eq.s32.totalorder %v5406_v12, %v5433_v16  ;;  %vm6974_vm7 = vcmp.eq.s32.totalorder %v5412_v15, %v5433_v16  ;;  %vm6983_vm15 = vcmp.eq.s32.totalorder %v5447_v19, %v5397_v9  ;;  %7017 = vst [vmem:[#allocation13_spill] sm:$0xff] %v5501_v23 }
 0x1c3   : > { %1006 = vxpose.xlu0.b32.cont [4/8] (short) (narrow) %v998_v17, 8  ;;  %4630 = vmatpush1.bf16.msk.msra.mxu1 %vm4629_vm3, %v5134_v18  ;;  %vm4615_vm14 = vmpackc.low %vm6968_vm13, %vm6973_vm12  ;;  %vm6976_vm13 = vcmp.eq.s32.totalorder %v5450_v20, %v5397_v9  ;;  %7018 = vst [vmem:[#allocation14_spill] sm:$0xff] %v5504_v24  ;;  %vm6982_vm12 = vcmp.eq.s32.totalorder %v5447_v19, %v5433_v16  ;;  %v5135_v17 = vmov 0  }
 0x1c4   : > { %1184 = vxpose.xlu1.b32.cont [4/8] (short) (narrow) %v990_v21, 8  ;;  %4616 = vmatprep.subr.msk.bf16.mxu0 %vm4615_vm14, %v5134_v18  ;;  %vm4631_vm3 = vmpackc.low %vm6969_vm2, %vm6970_vm1  ;;  %vm6978_vm2 = vcmp.eq.s32.totalorder %v5447_v19, %v5400_v10  ;;  %vm6977_vm1 = vcmp.eq.s32.totalorder %v5450_v20, %v5400_v10  ;;  %v5570_v30 = vrot.slane %v5518_v26, %v5390_v5 }
 0x1c5   : > { %4632 = vmatprep.subr.msk.bf16.mxu1 %vm4631_vm3, %v5134_v18  ;;  %vm4617_vm14 = vmpackc.low %vm6971_vm11, %vm6972_vm8  ;;  %vm6980_vm11 = vcmp.eq.s32.totalorder %v5447_v19, %v5409_v14  ;;  %vm6979_vm8 = vcmp.eq.s32.totalorder %v5450_v20, %v5409_v14  ;;  %v5585_v31 = vrot.slane %v5518_v26, %v5394_v7  ;;  %v5818_v21 = vrot.slane %v5518_v26, %v5403_v11 }
 0x1c6   : > { %4618 = vmatpush1.bf16.msk.msra.mxu0 %vm4617_vm14, %v5134_v18  ;;  %vm4633_vm3 = vmpackc.low %vm6974_vm7, %vm6975_vm0  ;;  %vm6981_vm7 = vcmp.eq.s32.totalorder %v5450_v20, %v5433_v16  ;;  %vm6985_vm0 = vcmp.eq.s32.totalorder %v5501_v23, %v5397_v9 }
 0x1c7   : > { %1007 = vxpose.xlu0.b32.cont [5/8] (short) (narrow) %v999_v22, 8  ;;  %4634 = vmatpush1.bf16.msk.msra.mxu1 %vm4633_vm3, %v5134_v18  ;;  %vm4619_vm14 = vmpackc.low %vm6976_vm13, %vm6983_vm15  ;;  %vm6984_vm13 = vcmp.eq.s32.totalorder %v5504_v24, %v5397_v9  ;;  %vm779_vm5 = vcmp.eq.s32.totalorder %v5380_v1, %v5585_v31  ;;  %vm795_vm4 = vcmp.eq.s32.totalorder %v5447_v19, %v5585_v31 }
 0x1c8   : > { %1185 = vxpose.xlu1.b32.cont [5/8] (short) (narrow) %v991_v25, 8  ;;  %4620 = vmatprep.subr.msk.bf16.mxu0 %vm4619_vm14, %v5134_v18  ;;  %vm4635_vm3 = vmpackc.low %vm6977_vm1, %vm6978_vm2  ;;  %vm6988_vm1 = vcmp.eq.s32.totalorder %v5501_v23, %v5400_v10  ;;  %vm6987_vm2 = vcmp.eq.s32.totalorder %v5504_v24, %v5400_v10  ;;  %v3587_v37 = vsel %vm779_vm5, 1.0, %v5133_v63  ;;  %vm7000_vm9 = vcmp.eq.s32.totalorder %v5450_v20, %v5585_v31 }
 0x1c9   : > { %4636 = vmatprep.subr.msk.bf16.mxu1 %vm4635_vm3, %v5134_v18  ;;  %vm4621_vm14 = vmpackc.low %vm6979_vm8, %vm6980_vm11  ;;  %vm6991_vm8 = vcmp.eq.s32.totalorder %v5501_v23, %v5409_v14  ;;  %vm6990_vm11 = vcmp.eq.s32.totalorder %v5504_v24, %v5409_v14  ;;  %vm803_vm15 = vcmp.eq.s32.totalorder %v5501_v23, %v5585_v31  ;;  %v3603_v55 = vsel %vm795_vm4, 1.0, %v5133_v63 }
 0x1ca   : > { %4622 = vmatpush1.bf16.msk.msra.mxu0 %vm4621_vm14, %v5134_v18  ;;  %vm4637_vm3 = vmpackc.low %vm6981_vm7, %vm6982_vm12  ;;  %vm6994_vm7 = vcmp.eq.s32.totalorder %v5501_v23, %v5433_v16  ;;  %vm6993_vm12 = vcmp.eq.s32.totalorder %v5504_v24, %v5433_v16  ;;  %v3611_v61 = vsel %vm803_vm15, 1.0, %v5133_v63 }
 0x1cb   : > { %1008 = vxpose.xlu0.b32.cont [6/8] (short) (narrow) %v1000_v27, 8  ;;  %4638 = vmatpush1.bf16.msk.msra.mxu1 %vm4637_vm3, %v5134_v18  ;;  %vm4623_vm14 = vmpackc.low %vm6984_vm13, %vm6985_vm0  ;;  %vm780_vm13 = vcmp.eq.s32.totalorder %v5380_v1, %v5555_v28  ;;  %vm784_vm0 = vcmp.eq.s32.totalorder %v5384_v3, %v5555_v28 }
 0x1cc   : > { %1186 = vxpose.xlu1.b32.cont [6/8] (short) (narrow) %v992_v29, 8  ;;  %4624 = vmatprep.subr.msk.bf16.mxu0 %vm4623_vm14, %v5134_v18  ;;  %vm4639_vm3 = vmpackc.low %vm6987_vm2, %vm6988_vm1  ;;  %vm6998_vm2 = vcmp.eq.s32.totalorder %v5380_v1, %v5570_v30  ;;  %vm6997_vm1 = vcmp.eq.s32.totalorder %v5384_v3, %v5570_v30  ;;  %v3588_v38 = vsel %vm780_vm13, 1.0, %v5133_v63  ;;  %v3592_v43 = vsel %vm784_vm0, 1.0, %v5133_v63  ;;  %v2132_v29 = vld [vmem:[#allocation2 + $0x10] sm:$0xff] }
 0x1cd   : > { %4640 = vmatprep.subr.msk.bf16.mxu1 %vm4639_vm3, %v5134_v18  ;;  %vm4625_vm14 = vmpackc.low %vm6990_vm11, %vm6991_vm8  ;;  %vm783_vm11 = vcmp.eq.s32.totalorder %v5384_v3, %v5585_v31  ;;  %v4862_v40 = vpack.i.bf16 %v3588_v38, %v3587_v37  ;;  %v2136_v37 = vld [vmem:[#allocation2 + $0x50] sm:$0xff] }
 0x1ce   : > { %4626 = vmatpush1.bf16.msk.msra.mxu0 %vm4625_vm14, %v5134_v18  ;;  %vm4641_vm3 = vmpackc.low %vm6993_vm12, %vm6994_vm7  ;;  %vm788_vm12 = vcmp.eq.s32.totalorder %v5406_v12, %v5555_v28  ;;  %vm792_vm7 = vcmp.eq.s32.totalorder %v5412_v15, %v5555_v28  ;;  %v3591_v42 = vsel %vm783_vm11, 1.0, %v5133_v63  ;;  %v4683_v38 = vpack.c.bf16 %v2136_v37, %v2135_v36 }
 0x1cf   : > { %1009 = vxpose.xlu0.b32.cont [7/8] (short) (narrow) %v1001_v32, 8  ;;  %4642 = vmatpush1.bf16.msk.msra.mxu1 %vm4641_vm3, %v5134_v18  ;;  %vm4643_vm14 = vmpackc.low %vm784_vm0, %vm780_vm13  ;;  %vm6999_vm13 = vcmp.eq.s32.totalorder %v5450_v20, %v5555_v28  ;;  %vm808_vm0 = vcmp.eq.s32.totalorder %v5504_v24, %v5555_v28  ;;  %v4864_v45 = vpack.i.bf16 %v3592_v43, %v3591_v42  ;;  %v3596_v48 = vsel %vm788_vm12, 1.0, %v5133_v63 }
 0x1d0   : > { %1187 = vxpose.xlu1.b32.cont [7/8] (short) (narrow) %v993_v33, 8  ;;  %4644 = vmatprep.subr.msk.bf16.mxu0 %vm4643_vm14, %v5134_v18  ;;  %vm4659_vm3 = vmpackc.low %vm6997_vm1, %vm6998_vm2  ;;  %vm791_vm1 = vcmp.eq.s32.totalorder %v5412_v15, %v5585_v31  ;;  %v3600_v53 = vsel %vm792_vm7, 1.0, %v5133_v63  ;;  %v3616_v6 = vsel %vm808_vm0, 1.0, %v5133_v63  ;;  %v2134_v33 = vld [vmem:[#allocation2 + $0x30] sm:$0xff] }
 0x1d1   : > { %4660 = vmatprep.subr.msk.bf16.mxu1 %vm4659_vm3, %v5134_v18  ;;  %vm5668_vm14 = vmpackc.low %vm783_vm11, %vm779_vm5  ;;  %vm787_vm3 = vcmp.eq.s32.totalorder %v5406_v12, %v5585_v31  ;;  %vm796_vm5 = vcmp.eq.s32.totalorder %v5447_v19, %v5555_v28  ;;  %vm804_vm11 = vcmp.eq.s32.totalorder %v5501_v23, %v5555_v28  ;;  %v3599_v52 = vsel %vm791_vm1, 1.0, %v5133_v63 }
 0x1d2   : > { %vm5690_vm2 = vmpackc.low %vm792_vm7, %vm788_vm12  ;;  %v3595_v47 = vsel %vm787_vm3, 1.0, %v5133_v63  ;;  %v4868_v54 = vpack.i.bf16 %v3600_v53, %v3599_v52  ;;  %v3604_v56 = vsel %vm796_vm5, 1.0, %v5133_v63  ;;  %vm7034_vm7 = vcmp.eq.s32.totalorder %v5450_v20, %v5555_v28  ;;  %v2131_v28 = vld [vmem:[#allocation2] sm:$0xff] }
 0x1d3   : > { %1010 = vxpose.xlu0.b32.end [8/8] (short) (narrow) %v1002_v34, 8  ;;  %vm5704_vm6 = vmpackc.low %vm791_vm1, %vm787_vm3  ;;  %v4866_v50 = vpack.i.bf16 %v3596_v48, %v3595_v47  ;;  %v4870_v57 = vpack.i.bf16 %v3604_v56, %v3603_v55  ;;  %vm7033_vm1 = vcmp.eq.s32.totalorder %v5450_v20, %v5585_v31  ;;  %v3608_v59 = vsel %vm7034_vm7, 1.0, %v5133_v63 }
 0x1d4   : > { %1188 = vxpose.xlu1.b32.end [8/8] (short) (narrow) %v994_v35, 8  ;;  %vm5726_vm8 = vmpackc.low %vm6999_vm13, %vm796_vm5  ;;  %vm807_vm13 = vcmp.eq.s32.totalorder %v5504_v24, %v5585_v31  ;;  %v3607_v58 = vsel %vm7033_vm1, 1.0, %v5133_v63  ;;  %v3612_v62 = vsel %vm804_vm11, 1.0, %v5133_v63  ;;  %vm1035_vm3 = vcmask 523264   ;;  %v2133_v31 = vld [vmem:[#allocation2 + $0x20] sm:$0xff] }
 0x1d5   : > { %vm5740_vm10 = vmpackc.low %vm7000_vm9, %vm795_vm4  ;;  %v4872_v60 = vpack.i.bf16 %v3608_v59, %v3607_v58  ;;  %v4874_v0 = vpack.i.bf16 %v3612_v62, %v3611_v61  ;;  %v3615_v2 = vsel %vm807_vm13, 1.0, %v5133_v63  ;;  %vm781_vm4 = vcmp.eq.s32.totalorder %v5380_v1, %v5818_v21 }
 0x1d6   : > { %vm5762_vm9 = vmpackc.low %vm808_vm0, %vm804_vm11  ;;  %v4876_v8 = vpack.i.bf16 %v3616_v6, %v3615_v2  ;;  %vm7036_vm11 = vcmp.eq.s32.totalorder %v5412_v15, %v5570_v30  ;;  %vm789_vm1 = vcmp.eq.s32.totalorder %v5406_v12, %v5818_v21  ;;  %vm793_vm7 = vcmp.eq.s32.totalorder %v5412_v15, %v5818_v21 }
 0x1d7   : > { %vm5772_vm12 = vmpackc.low %vm807_vm13, %vm803_vm15  ;;  %vm7001_vm15 = vcmp.eq.s32.totalorder %v5384_v3, %v5818_v21  ;;  %vm7035_vm13 = vcmp.eq.s32.totalorder %v5406_v12, %v5570_v30  ;;  %v4675_v34 = vpack.c.bf16 %v2132_v29, %v2131_v28  ;;  %v4679_v35 = vpack.c.bf16 %v2134_v33, %v2133_v31 }
 0x1d8   : > { %4863 = vxpose.xlu1.b32.start [1/8] (short) %v4862_v40, 128  ;;  %vm4661_vm5 = vmpackc.low %vm7001_vm15, %vm781_vm4  ;;  %vm797_vm15 = vcmp.eq.s32.totalorder %v5447_v19, %v5818_v21  ;;  %v2138_v40 = vld [vmem:[#allocation2 + $0x70] sm:$0xff] }
 0x1d9   : > { %vm4663_vm0 = vmpackc.low %vm7036_vm11, %vm7035_vm13  ;;  %vm7037_vm11 = vcmp.eq.s32.totalorder %v5447_v19, %v5570_v30  ;;  %v4687_v42 = vpack.c.bf16 %v2138_v40, %v2137_v39 }
 0x1da   : > { %vm4665_vm13 = vmpackc.low %vm793_vm7, %vm789_vm1 }
 0x1dc   : > { %4865 = vxpose.xlu1.b32.cont [2/8] (short) %v4864_v45, 128 }
 0x1e0   : > { %4867 = vxpose.xlu1.b32.cont [3/8] (short) %v4866_v50, 128 }
 0x1e4   : > { %4869 = vxpose.xlu1.b32.cont [4/8] (short) %v4868_v54, 128 }
 0x1e8   : > { %4871 = vxpose.xlu1.b32.cont [5/8] (short) %v4870_v57, 128 }
 0x1ec   : > { %4873 = vxpose.xlu1.b32.cont [6/8] (short) %v4872_v60, 128 }
 0x1f0   : > { %4875 = vxpose.xlu1.b32.cont [7/8] (short) %v4874_v0, 128 }
 0x1f4   : > { %4877 = vxpose.xlu1.b32.end [8/8] (short) %v4876_v8, 128 }
 0x1fc   : > { %4861 = vset.pattern.permute.xlu0 %v5135_v17 }
 0x1fd   : > { %1377 = vperm.xlu0 %4861, %v3719_v13  }
 0x237   : > { %v1019_v22 = vpop.trf.xlu0 }
 0x238   : > { %3667 = vmatmul.mubr.msk.f32.vlgmr.msra.gmra.mrb[0].mxu0 %vm1035_vm3, %v1019_v22  ;;  %3684 = vmatmul.mubr.msk.f32.vlgmr.msra.gmra.mrb[0].mxu1 %vm1035_vm3, %v1019_v22  ;;  %v1197_v25 = vpop.trf.xlu1 }
 0x239   : > { %4646 = vmatpush1.bf16.msk.msra.mxu0 %vm5668_vm14, %v5134_v18  ;;  %4662 = vmatpush1.bf16.msk.msra.mxu1 %vm4661_vm5, %v5134_v18  ;;  %vm7038_vm14 = vcmp.eq.s32.totalorder %v5450_v20, %v5570_v30 }
 0x23a   : > { %4648 = vmatprep.subr.msk.bf16.mxu0 %vm5690_vm2, %v5134_v18  ;;  %4664 = vmatprep.subr.msk.bf16.mxu1 %vm4663_vm0, %v5134_v18  ;;  %vm4667_vm5 = vmpackc.low %vm7038_vm14, %vm7037_vm11  ;;  %vm801_vm2 = vcmp.eq.s32.totalorder %v5450_v20, %v5818_v21  ;;  %vm7039_vm11 = vcmp.eq.s32.totalorder %v5501_v23, %v5570_v30  ;;  %vm805_vm14 = vcmp.eq.s32.totalorder %v5501_v23, %v5818_v21 }
 0x23b   : > { %1280 = vmatprep.mubr.f32.mxu0 %v5133_v63  ;;  %1351 = vmatprep.mubr.f32.mxu1 %v5133_v63  ;;  %vm4669_vm0 = vmpackc.low %vm801_vm2, %vm797_vm15 }
 0x23d   : > { %4650 = vmatpush1.bf16.msk.msra.mxu0 %vm5704_vm6, %v5134_v18  ;;  %4666 = vmatpush1.bf16.msk.msra.mxu1 %vm4665_vm13, %v5134_v18  ;;  %vm7040_vm6 = vcmp.eq.s32.totalorder %v5504_v24, %v5570_v30 }
 0x23e   : > { %4652 = vmatprep.subr.msk.bf16.mxu0 %vm5726_vm8, %v5134_v18  ;;  %4668 = vmatprep.subr.msk.bf16.mxu1 %vm4667_vm5, %v5134_v18  ;;  %vm4671_vm13 = vmpackc.low %vm7040_vm6, %vm7039_vm11  ;;  %vm809_vm8 = vcmp.eq.s32.totalorder %v5504_v24, %v5818_v21  ;;  %vm1742_vm11 = vcmask 1043456  }
 0x23f   : > { %vm4673_vm5 = vmpackc.low %vm809_vm8, %vm805_vm14 }
 0x241   : > { %4654 = vmatpush1.bf16.msk.msra.mxu0 %vm5740_vm10, %v5134_v18  ;;  %4670 = vmatpush1.bf16.msk.msra.mxu1 %vm4669_vm0, %v5134_v18  ;;  %vm1392_vm0 = vcmp.lt.s32.totalorder %v5518_v26, 64  ;;  %v1420_v26 = vld [vmem:[%s6961_s4] sm:$0xf] }
 0x242   : > { %4656 = vmatprep.subr.msk.bf16.mxu0 %vm5762_vm9, %v5134_v18  ;;  %4672 = vmatprep.subr.msk.bf16.mxu1 %vm4671_vm13, %v5134_v18  ;;  %vm7041_vm13 = vcmp.eq.s32.totalorder %v5380_v1, %v5570_v30 }
 0x245   : > { %4658 = vmatpush1.bf16.msk.msra.mxu0 %vm5772_vm12, %v5134_v18  ;;  %4674 = vmatpush1.bf16.msk.msra.mxu1 %vm4673_vm5, %v5134_v18  ;;  %vm7042_vm5 = vcmp.eq.s32.totalorder %v5384_v3, %v5818_v21 }
 0x246   : > { %4676 = vmatprep.subr.bf16.mxu1 %v4675_v34  ;;  %4365 = vmatprep.subr.msk.mxu0 %vm1742_vm11, %v1420_v26 }
 0x248   : > { %3701 = vmatmul.mubr.msk.f32.vlgmr.msra.gmra.mrb[0].mxu0 %vm1035_vm3, %v1197_v25  ;;  %3718 = vmatmul.mubr.msk.f32.vlgmr.msra.gmra.mrb[0].mxu1 %vm1035_vm3, %v1197_v25 }
 0x249   : > { %4678 = vmatpush3.bf16.msra.mxu1 %v4675_v34  ;;  %4366 = vmatpush3.msk.msra.mxu0 %vm1742_vm11, %v1420_v26  ;;  %vm7063_vm11 = vcmp.eq.s32.totalorder %v5384_v3, %v5409_v14 }
 0x24a   : > { %4680 = vmatprep.subr.bf16.mxu1 %v4679_v35 }
 0x24d   : > { %4682 = vmatpush3.bf16.msra.mxu1 %v4679_v35 }
 0x24e   : > { %4684 = vmatprep.subr.bf16.mxu1 %v4683_v38 }
 0x251   : > { %4686 = vmatpush3.bf16.msra.mxu1 %v4683_v38 }
 0x252   : > { %4688 = vmatprep.subr.bf16.mxu1 %v4687_v42 }
 0x255   : > { %4690 = vmatpush3.bf16.msra.mxu1 %v4687_v42 }
 0x258   : > { %v5912_v27 = vpop.trf.xlu1 }
 0x259   : > { %v4879_v32 = vunpack.i.l.bf16 %v5912_v27  ;;  %v4882_v22 = vunpack.i.h.bf16 %v5912_v27 }
 0x25b   : > { %4479 = vmatprep.mubr.msk.f32.mxu1 %vm1035_vm3, %v4879_v32 }
 0x25c   : > { %v5916_v18 = vpop.trf.xlu1 }
 0x25d   : > { %v4884_v44 = vunpack.i.l.bf16 %v5916_v18  ;;  %v4887_v29 = vunpack.i.h.bf16 %v5916_v18 }
 0x25f   : > { %4480 = vmatmul.mubr.msk.f32.vlgmr.msra.gmra.mrb[2].mxu1 %vm1035_vm3, %v4884_v44 }
 0x260   : > { %v4888_v41 = vpop.trf.xlu1 }
 0x261   : > { %v4889_v46 = vunpack.i.l.bf16 %v4888_v41  ;;  %v4892_v31 = vunpack.i.h.bf16 %v4888_v41 }
 0x263   : > { %4482 = vmatprep.mubr.msk.f32.mxu1 %vm1035_vm3, %v4889_v46 }
 0x264   : > { %v4893_v43 = vpop.trf.xlu1 }
 0x265   : > { %v4894_v47 = vunpack.i.l.bf16 %v4893_v43  ;;  %v4897_v32 = vunpack.i.h.bf16 %v4893_v43 }
 0x267   : > { %4483 = vmatmul.mubr.msk.f32.gmra.mrb[4].mxu1 %vm1035_vm3, %v4894_v47 }
 0x268   : > { %v4898_v45 = vpop.trf.xlu1 }
 0x269   : > { %v4899_v49 = vunpack.i.l.bf16 %v4898_v45  ;;  %v4902_v33 = vunpack.i.h.bf16 %v4898_v45 }
 0x26b   : > { %4485 = vmatprep.mubr.msk.f32.mxu1 %vm1035_vm3, %v4899_v49 }
 0x26c   : > { %v4903_v48 = vpop.trf.xlu1 }
 0x26d   : > { %v4904_v50 = vunpack.i.l.bf16 %v4903_v48  ;;  %v4907_v34 = vunpack.i.h.bf16 %v4903_v48 }
 0x26f   : > { %4486 = vmatmul.mubr.msk.f32.gmra.mrb[6].mxu1 %vm1035_vm3, %v4904_v50 }
 0x270   : > { %v4908_v51 = vpop.trf.xlu1 }
 0x271   : > { %v4909_v52 = vunpack.i.l.bf16 %v4908_v51  ;;  %v4912_v35 = vunpack.i.h.bf16 %v4908_v51 }
 0x273   : > { %4488 = vmatprep.mubr.msk.f32.mxu1 %vm1035_vm3, %v4909_v52 }
 0x274   : > { %v4913_v53 = vpop.trf.xlu1 }
 0x275   : > { %v4914_v54 = vunpack.i.l.bf16 %v4913_v53  ;;  %v4917_v27 = vunpack.i.h.bf16 %v4913_v53 }
 0x277   : > { %4489 = vmatmul.mubr.msk.f32.gmra.mrb[8].mxu1 %vm1035_vm3, %v4914_v54 }
 0x278   : > { %v4918_v55 = vpop.trf.xlu1 }
 0x279   : > { %v4919_v56 = vunpack.i.l.bf16 %v4918_v55  ;;  %v4922_v36 = vunpack.i.h.bf16 %v4918_v55 }
 0x27b   : > { %4491 = vmatprep.mubr.msk.f32.mxu1 %vm1035_vm3, %v4919_v56 }
 0x27c   : > { %v4923_v57 = vpop.trf.xlu1  ;;  %v1378_v46 = vpop.permute.xlu0 %1377 }
 0x27d   : > { %v4924_v58 = vunpack.i.l.bf16 %v4923_v57  ;;  %v4927_v37 = vunpack.i.h.bf16 %v4923_v57 }
 0x27f   : > { %4492 = vmatmul.mubr.msk.f32.gmra.mrb[10].mxu1 %vm1035_vm3, %v4924_v58 }
 0x280   : > { %v4928_v59 = vpop.trf.xlu1 }
 0x281   : > { %v4929_v60 = vunpack.i.l.bf16 %v4928_v59  ;;  %v4932_v18 = vunpack.i.h.bf16 %v4928_v59 }
 0x283   : > { %4494 = vmatprep.mubr.msk.f32.mxu1 %vm1035_vm3, %v4929_v60  ;;  %v3720_v60 = vsel %vm1392_vm0, 1.0, %v5133_v63  ;;  %vm7061_vm0 = vcmp.eq.s32.totalorder %v5384_v3, %v5397_v9 }
 0x284   : > { %v4933_v61 = vpop.trf.xlu1 }
 0x285   : > { %v4934_v62 = vunpack.i.l.bf16 %v4933_v61  ;;  %v4937_v38 = vunpack.i.h.bf16 %v4933_v61  ;;  %v1399_v61 = vrot.slane %v3720_v60, %v5394_v7 }
 0x287   : > { %4495 = vmatmul.mubr.msk.f32.gmra.mrb[12].mxu1 %vm1035_vm3, %v4934_v62  ;;  %v1403_v62 = vrot.slane %v3720_v60, %v5387_v4 }
 0x288   : > { %v4938_v0 = vpop.trf.xlu1 }
 0x289   : > { %v4939_v2 = vunpack.i.l.bf16 %v4938_v0  ;;  %v4942_v39 = vunpack.i.h.bf16 %v4938_v0 }
 0x28b   : > { %4497 = vmatprep.mubr.msk.f32.mxu1 %vm1035_vm3, %v4939_v2  ;;  %v1411_v2 = vrot.slane %v3720_v60, %v5390_v5  ;;  %v3589_v5 = vsel %vm781_vm4, 1.0, %v5133_v63  ;;  %vm7044_vm4 = vcmp.eq.s32.totalorder %v5406_v12, %v5570_v30 }
 0x28c   : > { %v4943_v6 = vpop.trf.xlu1 }
 0x28d   : > { %v4944_v8 = vunpack.i.l.bf16 %v4943_v6  ;;  %v4947_v40 = vunpack.i.h.bf16 %v4943_v6 }
 0x28f   : > { %4498 = vmatmul.mubr.msk.f32.gmra.mrb[14].mxu1 %vm1035_vm3, %v4944_v8 }
 0x290   : > { %v4948_v13 = vpop.trf.xlu1 }
 0x291   : > { %v4949_v17 = vunpack.i.l.bf16 %v4948_v13  ;;  %v4952_v41 = vunpack.i.h.bf16 %v4948_v13 }
 0x293   : > { %4500 = vmatprep.mubr.msk.f32.mxu1 %vm1035_vm3, %v4949_v17 }
 0x294   : > { %v4953_v25 = vpop.trf.xlu1 }
 0x295   : > { %v4954_v28 = vunpack.i.l.bf16 %v4953_v25  ;;  %v4957_v42 = vunpack.i.h.bf16 %v4953_v25 }
 0x297   : > { %4501 = vmatmul.mubr.msk.f32.gmra.mrb[16].mxu1 %vm1035_vm3, %v4954_v28 }
 0x298   : > { %4503 = vmatprep.mubr.msk.f32.mxu1 %vm1035_vm3, %v4882_v22 }
 0x29b   : > { %4504 = vmatmul.mubr.msk.f32.gmra.mrb[18].mxu1 %vm1035_vm3, %v4887_v29  ;;  %v3590_v29 = vsel %vm7041_vm13, 1.0, %v5133_v63  ;;  %vm7067_vm13 = vcmp.eq.s32.totalorder %v5406_v12, %v5409_v14 }
 0x29c   : > { %4506 = vmatprep.mubr.msk.f32.mxu1 %vm1035_vm3, %v4892_v31  ;;  %v1407_v31 = vrot.slane %v3720_v60, %v5403_v11  ;;  %v3597_v11 = vsel %vm789_vm1, 1.0, %v5133_v63  ;;  %vm7046_vm1 = vcmp.eq.s32.totalorder %v5447_v19, %v5570_v30 }
 0x29f   : > { %4507 = vmatmul.mubr.msk.f32.gmra.mrb[20].mxu1 %vm1035_vm3, %v4897_v32  ;;  %v4958_v32 = vpack.i.bf16 %v3590_v29, %v3589_v5 }
 0x2a0   : > { %4509 = vmatprep.mubr.msk.f32.mxu1 %vm1035_vm3, %v4902_v33 }
 0x2a3   : > { %4510 = vmatmul.mubr.msk.f32.gmra.mrb[22].mxu1 %vm1035_vm3, %v4907_v34  ;;  %v3593_v34 = vsel %vm7042_vm5, 1.0, %v5133_v63  ;;  %vm7069_vm5 = vcmp.eq.s32.totalorder %v5412_v15, %v5397_v9 }
 0x2a4   : > { %4512 = vmatprep.mubr.msk.f32.mxu1 %vm1035_vm3, %v4912_v35 }
 0x2a7   : > { %4513 = vmatmul.mubr.msk.f32.gmra.mrb[24].mxu1 %vm1035_vm3, %v4917_v27 }
 0x2a8   : > { %4515 = vmatprep.mubr.msk.f32.mxu1 %vm1035_vm3, %v4922_v36 }
 0x2ab   : > { %4516 = vmatmul.mubr.msk.f32.gmra.mrb[26].mxu1 %vm1035_vm3, %v4927_v37  ;;  %v3598_v37 = vsel %vm7044_vm4, 1.0, %v5133_v63 }
 0x2ac   : > { %4518 = vmatprep.mubr.msk.f32.mxu1 %vm1035_vm3, %v4932_v18  ;;  %v4962_v18 = vpack.i.bf16 %v3598_v37, %v3597_v11 }
 0x2af   : > { %4519 = vmatmul.mubr.msk.f32.gmra.mrb[28].mxu1 %vm1035_vm3, %v4937_v38  ;;  %v3601_v38 = vsel %vm793_vm7, 1.0, %v5133_v63  ;;  %vm7047_vm7 = vcmp.eq.s32.totalorder %v5450_v20, %v5570_v30 }
 0x2b0   : > { %4521 = vmatprep.mubr.msk.f32.mxu1 %vm1035_vm3, %v4942_v39 }
 0x2b3   : > { %4522 = vmatmul.mubr.msk.f32.gmra.mrb[30].mxu1 %vm1035_vm3, %v4947_v40 }
 0x2b4   : > { %4524 = vmatprep.mubr.msk.f32.mxu1 %vm1035_vm3, %v4952_v41  ;;  %v3605_v41 = vsel %vm797_vm15, 1.0, %v5133_v63  ;;  %vm7048_vm15 = vcmp.eq.s32.totalorder %v5501_v23, %v5570_v30 }
 0x2b7   : > { %4525 = vmatmul.mubr.msk.f32.gmra.mrb[32].mxu1 %vm1035_vm3, %v4957_v42  ;;  %v3606_v42 = vsel %vm7046_vm1, 1.0, %v5133_v63 }
 0x31b   : > { %v1282_v43 = vpop.f32.mrb[0].mxu0  ;;  %v1353_v44 = vpop.f32.mrb[0].mxu1 }
 0x31c   : > { %vm1358_vm9 = vcmp.gt.f32.partialorder %v1282_v43, 0.0  ;;  %v1362_v45 = vmul.f32 0.2, %v1282_v43  ;;  %v1284_v47 = vpop.f32.mrb[1].mxu0  ;;  %v1355_v48 = vpop.f32.mrb[1].mxu1  ;;  %vm1360_vm6 = vcmp.gt.f32.partialorder %v1353_v44, 0.0 }
 0x31d   : > { %vm1359_vm10 = vcmp.gt.f32.partialorder %v1284_v47, 0.0  ;;  %v1363_v50 = vmul.f32 0.2, %v1284_v47  ;;  %vm1361_vm12 = vcmp.gt.f32.partialorder %v1355_v48, 0.0  ;;  %v1365_v51 = vmul.f32 0.2, %v1355_v48 }
 0x31e   : > { %v1366_v49 = vsel %vm1358_vm9, %v1282_v43, %v1362_v45  ;;  %v1364_v7 = vmul.f32 0.2, %v1353_v44  ;;  %vm7043_vm9 = vcmp.eq.s32.totalorder %v5384_v3, %v5570_v30  ;;  %v4966_v43 = vpack.i.bf16 %v3606_v42, %v3605_v41 }
 0x31f   : > { %v1380_v52 = vsub.f32 %v1366_v49, %v1378_v46  ;;  %v1367_v53 = vsel %vm1359_vm10, %v1284_v47, %v1363_v50  ;;  %v1369_v54 = vsel %vm1361_vm12, %v1355_v48, %v1365_v51  ;;  %v3594_v35 = vsel %vm7043_vm9, 1.0, %v5133_v63 }
 0x320   : > { %v1381_v55 = vsub.f32 %v1367_v53, %v1378_v46  ;;  %v1383_v57 = vsub.f32 %v1369_v54, %v1378_v46  ;;  %v1368_v4 = vsel %vm1360_vm6, %v1353_v44, %v1364_v7  ;;  %v4960_v36 = vpack.i.bf16 %v3594_v35, %v3593_v34 }
 0x321   : > { %v1384_v56 = vmul.f32 1.442695, %v1380_v52  ;;  %v1382_v25 = vsub.f32 %v1368_v4, %v1378_v46  ;;  %vm7045_vm10 = vcmp.eq.s32.totalorder %v5412_v15, %v5570_v30  ;;  %v3609_v44 = vsel %vm801_vm2, 1.0, %v5133_v63 }
 0x322   : > { %v1386_v58 = vmul.f32 1.442695, %v1381_v55  ;;  %v1390_v59 = vmul.f32 1.442695, %v1383_v57  ;;  %v3602_v39 = vsel %vm7045_vm10, 1.0, %v5133_v63  ;;  %v3610_v45 = vsel %vm7047_vm7, 1.0, %v5133_v63 }
 0x323   : > { %5054 = vpow2.f32 %v1384_v56  ;;  %v1388_v28 = vmul.f32 1.442695, %v1382_v25  ;;  %v4964_v40 = vpack.i.bf16 %v3602_v39, %v3601_v38  ;;  %v4968_v46 = vpack.i.bf16 %v3610_v45, %v3609_v44 }
 0x324   : > { %5056 = vpow2.f32 %v1386_v58  ;;  %v3613_v47 = vsel %vm805_vm14, 1.0, %v5133_v63  ;;  %v3614_v48 = vsel %vm7048_vm15, 1.0, %v5133_v63  ;;  %v3617_v50 = vsel %vm809_vm8, 1.0, %v5133_v63 }
 0x325   : > { %5058 = vpow2.f32 %v1390_v59  ;;  %v4970_v49 = vpack.i.bf16 %v3614_v48, %v3613_v47  ;;  %vm7049_vm2 = vcmp.eq.s32.totalorder %v5504_v24, %v5570_v30  ;;  %vm1549_vm14 = vcmask 31744  }
 0x326   : > { %5060 = vpow2.f32 %v1388_v28  ;;  %v3618_v51 = vsel %vm7049_vm2, 1.0, %v5133_v63  ;;  %vm7051_vm8 = vcmp.eq.s32.totalorder %v5380_v1, %v5397_v9  ;;  %vm7059_vm12 = vcmp.eq.s32.totalorder %v5380_v1, %v5409_v14 }
 0x327   : > { %v4972_v52 = vpack.i.bf16 %v3618_v51, %v3617_v50  ;;  %vm7065_vm6 = vcmp.eq.s32.totalorder %v5406_v12, %v5397_v9  ;;  %vm7071_vm9 = vcmp.eq.s32.totalorder %v5412_v15, %v5409_v14 }
 0x32d   : > { %v5055_v0 = vpop.eup %5054 }
 0x32e   : > { %v1416_v6 = vmul.f32 %v5055_v0, %v1399_v61  ;;  %v5057_v8 = vpop.eup %5056 }
 0x32f   : > { %v5059_v13 = vpop.eup %5058  ;;  %v1417_v17 = vmul.f32 %v5057_v8, %v1403_v62 }
 0x330   : > { %1421 = vxpose.xlu1.b32.start.end [1/1] (short) %v1416_v6, 128  ;;  %v1419_v22 = vmul.f32 %v5059_v13, %v1411_v2  ;;  %v5061_v33 = vpop.eup %5060 }
 0x331   : > { %1453 = vxpose.xlu0.b32.start.end [1/1] (short) %v1417_v17, 128  ;;  %v1418_v27 = vmul.f32 %v5061_v33, %v1407_v31 }
 0x332   : > { %v6034_v63 = vpop.f32.mrb[2].mxu1 }
 0x333   : > { %v6039_v59 = vpop.f32.mrb[3].mxu1 }
 0x33a   : > { %v6041_v60 = vpop.f32.mrb[4].mxu1 }
 0x33b   : > { %v6043_v62 = vpop.f32.mrb[5].mxu1 }
 0x342   : > { %v6046_v0 = vpop.f32.mrb[6].mxu1 }
 0x343   : > { %v6050_v6 = vpop.f32.mrb[7].mxu1 }
 0x34a   : > { %v6052_v8 = vpop.f32.mrb[8].mxu1 }
 0x34b   : > { %v6054_v17 = vpop.f32.mrb[9].mxu1 }
 0x36d   : > { %4959 = vxpose.xlu1.b32.start [1/8] (short) %v4958_v32, 128 }
 0x36e   : > { %1485 = vxpose.xlu0.b32.start.end [1/1] (short) %v1418_v27, 128 }
 0x371   : > { %4961 = vxpose.xlu1.b32.cont [2/8] (short) %v4960_v36, 128 }
 0x375   : > { %4963 = vxpose.xlu1.b32.cont [3/8] (short) %v4962_v18, 128 }
 0x379   : > { %4965 = vxpose.xlu1.b32.cont [4/8] (short) %v4964_v40, 128 }
 0x37d   : > { %4967 = vxpose.xlu1.b32.cont [5/8] (short) %v4966_v43, 128 }
 0x381   : > { %4969 = vxpose.xlu1.b32.cont [6/8] (short) %v4968_v46, 128 }
 0x385   : > { %4971 = vxpose.xlu1.b32.cont [7/8] (short) %v4970_v49, 128 }
 0x389   : > { %4973 = vxpose.xlu1.b32.end [8/8] (short) %v4972_v52, 128 }
 0x3ab   : > { %1517 = vxpose.xlu0.b32.start.end [1/1] (short) %v1419_v22, 128  ;;  %v6057_v22 = vpop.f32.mrb[10].mxu1 }
 0x3ac   : > { %v6061_v7 = vpop.f32.mrb[11].mxu1 }
 0x3ad   : > { %v6063_v4 = vpop.f32.mrb[12].mxu1 }
 0x3ae   : > { %v6065_v28 = vpop.f32.mrb[13].mxu1 }
 0x3af   : > { %v6068_v5 = vpop.f32.mrb[14].mxu1 }
 0x3b0   : > { %v1437_v53 = vpop.trf.xlu1  ;;  %v6072_v31 = vpop.f32.mrb[15].mxu1 }
 0x3b1   : > { %4367 = vmatprep.mubr.msk.f32.mxu0 %vm1549_vm14, %v1437_v53  ;;  %v6026_v54 = vpop.trf.xlu0  ;;  %v6074_v32 = vpop.f32.mrb[16].mxu1 }
 0x3b2   : > { %v6076_v34 = vpop.f32.mrb[17].mxu1 }
 0x3b3   : > { %v6079_v35 = vpop.f32.mrb[18].mxu1 }
 0x3b4   : > { %v1438_v55 = vpop.trf.xlu1  ;;  %v6081_v36 = vpop.f32.mrb[19].mxu1 }
 0x3b5   : > { %4368 = vmatmul.mubr.msk.f32.vlgmr.msra.gmra.mrb[2].mxu0 %vm1549_vm14, %v1438_v55  ;;  %v6029_v21 = vpop.trf.xlu0  ;;  %v6084_v18 = vpop.f32.mrb[20].mxu1 }
 0x3b6   : > { %v6087_v40 = vpop.f32.mrb[21].mxu1 }
 0x3b7   : > { %v6090_v43 = vpop.f32.mrb[22].mxu1 }
 0x3b8   : > { %v1439_v56 = vpop.trf.xlu1  ;;  %v6093_v46 = vpop.f32.mrb[23].mxu1 }
 0x3b9   : > { %4370 = vmatprep.mubr.msk.f32.mxu0 %vm1549_vm14, %v1439_v56  ;;  %v6032_v30 = vpop.trf.xlu0  ;;  %v6096_v49 = vpop.f32.mrb[24].mxu1 }
 0x3ba   : > { %v6099_v52 = vpop.f32.mrb[25].mxu1 }
 0x3bb   : > { %v6102_v56 = vpop.f32.mrb[26].mxu1 }
 0x3bc   : > { %v1440_v57 = vpop.trf.xlu1 }
 0x3bd   : > { %4371 = vmatmul.mubr.msk.f32.gmra.mrb[4].mxu0 %vm1549_vm14, %v1440_v57  ;;  %v6037_v58 = vpop.trf.xlu0 }
 0x3c0   : > { %v1441_v61 = vpop.trf.xlu1 }
 0x3c1   : > { %4373 = vmatprep.mubr.msk.f32.mxu0 %vm1549_vm14, %v1441_v61  ;;  %v6048_v2 = vpop.trf.xlu0 }
 0x3c4   : > { %v1442_v13 = vpop.trf.xlu1 }
 0x3c5   : > { %4374 = vmatmul.mubr.msk.f32.gmra.mrb[6].mxu0 %vm1549_vm14, %v1442_v13  ;;  %v6059_v26 = vpop.trf.xlu0  ;;  %v6107_v13 = vpop.f32.mrb[27].mxu1 }
 0x3c8   : > { %v1443_v25 = vpop.trf.xlu1 }
 0x3c9   : > { %4376 = vmatprep.mubr.msk.f32.mxu0 %vm1549_vm14, %v1443_v25  ;;  %v6070_v29 = vpop.trf.xlu0  ;;  %v6109_v25 = vpop.f32.mrb[28].mxu1 }
 0x3cc   : > { %v1444_v33 = vpop.trf.xlu1 }
 0x3cd   : > { %4377 = vmatmul.mubr.msk.f32.gmra.mrb[8].mxu0 %vm1549_vm14, %v1444_v33  ;;  %v1476_v27 = vpop.trf.xlu0 }
 0x3d0   : > { %v1445_v11 = vpop.trf.xlu1 }
 0x3d1   : > { %4379 = vmatprep.mubr.msk.f32.mxu0 %vm1549_vm14, %v1445_v11  ;;  %v1477_v37 = vpop.trf.xlu0  ;;  %v6113_v11 = vpop.f32.mrb[29].mxu1 }
 0x3d4   : > { %v1446_v38 = vpop.trf.xlu1 }
 0x3d5   : > { %4380 = vmatmul.mubr.msk.f32.gmra.mrb[10].mxu0 %vm1549_vm14, %v1446_v38  ;;  %v1478_v39 = vpop.trf.xlu0 }
 0x3d8   : > { %v1447_v41 = vpop.trf.xlu1 }
 0x3d9   : > { %4382 = vmatprep.mubr.msk.f32.mxu0 %vm1549_vm14, %v1447_v41  ;;  %v1479_v42 = vpop.trf.xlu0  ;;  %v6118_v41 = vpop.f32.mrb[30].mxu1 }
 0x3dc   : > { %v1448_v44 = vpop.trf.xlu1 }
 0x3dd   : > { %4383 = vmatmul.mubr.msk.f32.gmra.mrb[12].mxu0 %vm1549_vm14, %v1448_v44  ;;  %v1480_v45 = vpop.trf.xlu0 }
 0x3e0   : > { %v1449_v47 = vpop.trf.xlu1 }
 0x3e1   : > { %4385 = vmatprep.mubr.msk.f32.mxu0 %vm1549_vm14, %v1449_v47  ;;  %v1481_v48 = vpop.trf.xlu0 }
 0x3e4   : > { %v1450_v50 = vpop.trf.xlu1 }
 0x3e5   : > { %4386 = vmatmul.mubr.msk.f32.gmra.mrb[14].mxu0 %vm1549_vm14, %v1450_v50  ;;  %v1482_v51 = vpop.trf.xlu0 }
 0x3e8   : > { %v1451_v53 = vpop.trf.xlu1 }
 0x3e9   : > { %4388 = vmatprep.mubr.msk.f32.mxu0 %vm1549_vm14, %v1451_v53  ;;  %v1483_v55 = vpop.trf.xlu0 }
 0x3ec   : > { %v1452_v57 = vpop.trf.xlu1 }
 0x3ed   : > { %4389 = vmatmul.mubr.msk.f32.gmra.mrb[16].mxu0 %vm1549_vm14, %v1452_v57  ;;  %v1484_v61 = vpop.trf.xlu0 }
 0x3ee   : > { %4391 = vmatprep.mubr.msk.f32.mxu0 %vm1549_vm14, %v6026_v54  ;;  %v6122_v54 = vpop.f32.mrb[31].mxu1 }
 0x3ef   : > { %v6125_v47 = vpop.f32.mrb[32].mxu1 }
 0x3f0   : > { %v6111_v33 = vpop.trf.xlu1  ;;  %v6129_v53 = vpop.f32.mrb[33].mxu1 }
 0x3f1   : > { %v4975_v38 = vunpack.i.l.bf16 %v6111_v33  ;;  %4392 = vmatmul.mubr.msk.f32.gmra.mrb[18].mxu0 %vm1549_vm14, %v6029_v21  ;;  %v1501_v44 = vpop.trf.xlu0 }
 0x3f2   : > { %4394 = vmatprep.mubr.msk.f32.mxu0 %vm1549_vm14, %v6032_v30 }
 0x3f3   : > { %4527 = vmatprep.mubr.msk.f32.mxu1 %vm1035_vm3, %v4975_v38 }
 0x3f4   : > { %v6127_v50 = vpop.trf.xlu1 }
 0x3f5   : > { %v4980_v57 = vunpack.i.l.bf16 %v6127_v50  ;;  %4395 = vmatmul.mubr.msk.f32.gmra.mrb[20].mxu0 %vm1549_vm14, %v6037_v58  ;;  %v1502_v21 = vpop.trf.xlu0 }
 0x3f6   : > { %4397 = vmatprep.mubr.msk.f32.mxu0 %vm1549_vm14, %v6048_v2 }
 0x3f7   : > { %4528 = vmatmul.mubr.msk.f32.gmra.mrb[34].mxu1 %vm1035_vm3, %v4980_v57 }
 0x3f8   : > { %v6137_v30 = vpop.trf.xlu1 }
 0x3f9   : > { %v4985_v38 = vunpack.i.l.bf16 %v6137_v30  ;;  %4398 = vmatmul.mubr.msk.f32.gmra.mrb[22].mxu0 %vm1549_vm14, %v6059_v26  ;;  %v1503_v16 = vpop.trf.xlu0 }
 0x3fa   : > { %4400 = vmatprep.mubr.msk.f32.mxu0 %vm1549_vm14, %v6070_v29 }
 0x3fb   : > { %4530 = vmatprep.mubr.msk.f32.mxu1 %vm1035_vm3, %v4985_v38 }
 0x3fc   : > { %v6145_v58 = vpop.trf.xlu1 }
 0x3fd   : > { %v4990_v24 = vunpack.i.l.bf16 %v6145_v58  ;;  %4401 = vmatmul.mubr.msk.f32.gmra.mrb[24].mxu0 %vm1549_vm14, %v1476_v27  ;;  %v1504_v2 = vpop.trf.xlu0 }
 0x3fe   : > { %4403 = vmatprep.mubr.msk.f32.mxu0 %vm1549_vm14, %v1477_v37 }
 0x3ff   : > { %4531 = vmatmul.mubr.msk.f32.gmra.mrb[36].mxu1 %vm1035_vm3, %v4990_v24 }
 0x400   : > { %v6151_v57 = vpop.trf.xlu1 }
 0x401   : > { %v4995_v26 = vunpack.i.l.bf16 %v6151_v57  ;;  %4404 = vmatmul.mubr.msk.f32.gmra.mrb[26].mxu0 %vm1549_vm14, %v1478_v39  ;;  %v1505_v29 = vpop.trf.xlu0 }
 0x402   : > { %4406 = vmatprep.mubr.msk.f32.mxu0 %vm1549_vm14, %v1479_v42 }
 0x403   : > { %4533 = vmatprep.mubr.msk.f32.mxu1 %vm1035_vm3, %v4995_v26 }
 0x404   : > { %v6157_v38 = vpop.trf.xlu1 }
 0x405   : > { %v5000_v27 = vunpack.i.l.bf16 %v6157_v38  ;;  %4407 = vmatmul.mubr.msk.f32.gmra.mrb[28].mxu0 %vm1549_vm14, %v1480_v45  ;;  %v1506_v37 = vpop.trf.xlu0 }
 0x406   : > { %4409 = vmatprep.mubr.msk.f32.mxu0 %vm1549_vm14, %v1481_v48 }
 0x407   : > { %4534 = vmatmul.mubr.msk.f32.gmra.mrb[38].mxu1 %vm1035_vm3, %v5000_v27 }
 0x408   : > { %v6163_v24 = vpop.trf.xlu1 }
 0x409   : > { %v5005_v39 = vunpack.i.l.bf16 %v6163_v24  ;;  %4410 = vmatmul.mubr.msk.f32.gmra.mrb[30].mxu0 %vm1549_vm14, %v1482_v51  ;;  %v1507_v42 = vpop.trf.xlu0 }
 0x40a   : > { %4412 = vmatprep.mubr.msk.f32.mxu0 %vm1549_vm14, %v1483_v55 }
 0x40b   : > { %4536 = vmatprep.mubr.msk.f32.mxu1 %vm1035_vm3, %v5005_v39 }
 0x40c   : > { %v6169_v26 = vpop.trf.xlu1 }
 0x40d   : > { %v5010_v45 = vunpack.i.l.bf16 %v6169_v26  ;;  %4413 = vmatmul.mubr.msk.f32.gmra.mrb[32].mxu0 %vm1549_vm14, %v1484_v61  ;;  %v1508_v48 = vpop.trf.xlu0 }
 0x40e   : > { %4415 = vmatprep.mubr.msk.f32.mxu0 %vm1549_vm14, %v1501_v44 }
 0x40f   : > { %4537 = vmatmul.mubr.msk.f32.gmra.mrb[40].mxu1 %vm1035_vm3, %v5010_v45 }
 0x410   : > { %v6175_v27 = vpop.trf.xlu1 }
 0x411   : > { %v5015_v51 = vunpack.i.l.bf16 %v6175_v27  ;;  %4416 = vmatmul.mubr.msk.f32.gmra.mrb[34].mxu0 %vm1549_vm14, %v1502_v21  ;;  %v1509_v55 = vpop.trf.xlu0 }
 0x412   : > { %4418 = vmatprep.mubr.msk.f32.mxu0 %vm1549_vm14, %v1503_v16 }
 0x413   : > { %4539 = vmatprep.mubr.msk.f32.mxu1 %vm1035_vm3, %v5015_v51 }
 0x414   : > { %v6181_v39 = vpop.trf.xlu1 }
 0x415   : > { %v5020_v61 = vunpack.i.l.bf16 %v6181_v39  ;;  %4419 = vmatmul.mubr.msk.f32.gmra.mrb[36].mxu0 %vm1549_vm14, %v1504_v2  ;;  %v1510_v44 = vpop.trf.xlu0 }
 0x416   : > { %4421 = vmatprep.mubr.msk.f32.mxu0 %vm1549_vm14, %v1505_v29 }
 0x417   : > { %4540 = vmatmul.mubr.msk.f32.gmra.mrb[42].mxu1 %vm1035_vm3, %v5020_v61 }
 0x418   : > { %v6187_v45 = vpop.trf.xlu1 }
 0x419   : > { %v5025_v21 = vunpack.i.l.bf16 %v6187_v45  ;;  %4422 = vmatmul.mubr.msk.f32.gmra.mrb[38].mxu0 %vm1549_vm14, %v1506_v37  ;;  %v1511_v16 = vpop.trf.xlu0 }
 0x41a   : > { %4424 = vmatprep.mubr.msk.f32.mxu0 %vm1549_vm14, %v1507_v42 }
 0x41b   : > { %4542 = vmatprep.mubr.msk.f32.mxu1 %vm1035_vm3, %v5025_v21 }
 0x41c   : > { %v6193_v51 = vpop.trf.xlu1 }
 0x41d   : > { %v5030_v2 = vunpack.i.l.bf16 %v6193_v51  ;;  %4425 = vmatmul.mubr.msk.f32.gmra.mrb[40].mxu0 %vm1549_vm14, %v1508_v48  ;;  %v1512_v29 = vpop.trf.xlu0 }
 0x41e   : > { %4427 = vmatprep.mubr.msk.f32.mxu0 %vm1549_vm14, %v1509_v55 }
 0x41f   : > { %4543 = vmatmul.mubr.msk.f32.gmra.mrb[44].mxu1 %vm1035_vm3, %v5030_v2 }
 0x420   : > { %v5034_v61 = vpop.trf.xlu1 }
 0x421   : > { %v5035_v23 = vunpack.i.l.bf16 %v5034_v61  ;;  %4428 = vmatmul.mubr.msk.f32.gmra.mrb[42].mxu0 %vm1549_vm14, %v1510_v44  ;;  %v1513_v37 = vpop.trf.xlu0 }
 0x422   : > { %4430 = vmatprep.mubr.msk.f32.mxu0 %vm1549_vm14, %v1511_v16  ;;  %v4978_v16 = vunpack.i.h.bf16 %v6111_v33  ;;  %v4993_v33 = vunpack.i.h.bf16 %v6145_v58  ;;  %v5013_v58 = vunpack.i.h.bf16 %v6169_v26  ;;  %v5033_v26 = vunpack.i.h.bf16 %v6193_v51 }
 0x423   : > { %4545 = vmatprep.mubr.msk.f32.mxu1 %vm1035_vm3, %v5035_v23 }
 0x424   : > { %v5039_v42 = vpop.trf.xlu1 }
 0x425   : > { %v5040_v21 = vunpack.i.l.bf16 %v5039_v42  ;;  %4431 = vmatmul.mubr.msk.f32.gmra.mrb[44].mxu0 %vm1549_vm14, %v1512_v29  ;;  %v1514_v20 = vpop.trf.xlu0  ;;  %v4983_v29 = vunpack.i.h.bf16 %v6127_v50  ;;  %v5003_v50 = vunpack.i.h.bf16 %v6157_v38  ;;  %v5023_v38 = vunpack.i.h.bf16 %v6181_v39 }
 0x426   : > { %4433 = vmatprep.mubr.msk.f32.mxu0 %vm1549_vm14, %v1513_v37  ;;  %v5043_v39 = vunpack.i.h.bf16 %v5039_v42 }
 0x427   : > { %4546 = vmatmul.mubr.msk.f32.gmra.mrb[46].mxu1 %vm1035_vm3, %v5040_v21  ;;  %v4998_v21 = vunpack.i.h.bf16 %v6151_v57  ;;  %v5018_v57 = vunpack.i.h.bf16 %v6175_v27  ;;  %v5038_v27 = vunpack.i.h.bf16 %v5034_v61 }
 0x428   : > { %v5044_v48 = vpop.trf.xlu1 }
 0x429   : > { %v5045_v55 = vunpack.i.l.bf16 %v5044_v48  ;;  %4434 = vmatmul.mubr.msk.f32.gmra.mrb[46].mxu0 %vm1549_vm14, %v1514_v20  ;;  %v1515_v2 = vpop.trf.xlu0  ;;  %v4988_v20 = vunpack.i.h.bf16 %v6137_v30  ;;  %v5008_v30 = vunpack.i.h.bf16 %v6163_v24  ;;  %v5028_v24 = vunpack.i.h.bf16 %v6187_v45 }
 0x42a   : > { %4436 = vmatprep.mubr.msk.f32.mxu0 %vm1549_vm14, %v1515_v2 }
 0x42b   : > { %4548 = vmatprep.mubr.msk.f32.mxu1 %vm1035_vm3, %v5045_v55 }
 0x42c   : > { %v5049_v44 = vpop.trf.xlu1 }
 0x42d   : > { %v5050_v23 = vunpack.i.l.bf16 %v5049_v44  ;;  %v1516_v19 = vpop.trf.xlu0 }
 0x42e   : > { %4437 = vmatmul.mubr.msk.f32.gmra.mrb[48].mxu0 %vm1549_vm14, %v1516_v19 }
 0x42f   : > { %4549 = vmatmul.mubr.msk.f32.gmra.mrb[48].mxu1 %vm1035_vm3, %v5050_v23 }
 0x430   : > { %4551 = vmatprep.mubr.msk.f32.mxu1 %vm1035_vm3, %v4978_v16 }
 0x431   : > { %v1533_v37 = vpop.trf.xlu0 }
 0x432   : > { %4439 = vmatprep.mubr.msk.f32.mxu0 %vm1549_vm14, %v1533_v37 }
 0x433   : > { %4552 = vmatmul.mubr.msk.f32.gmra.mrb[50].mxu1 %vm1035_vm3, %v4983_v29  ;;  %v5048_v29 = vunpack.i.h.bf16 %v5044_v48 }
 0x434   : > { %4554 = vmatprep.mubr.msk.f32.mxu1 %vm1035_vm3, %v4988_v20  ;;  %v5053_v20 = vunpack.i.h.bf16 %v5049_v44 }
 0x435   : > { %v1534_v19 = vpop.trf.xlu0 }
 0x436   : > { %4440 = vmatmul.mubr.msk.f32.gmra.mrb[50].mxu0 %vm1549_vm14, %v1534_v19  ;;  %v7012_v19 = vmov 1.0  }
 0x437   : > { %4555 = vmatmul.mubr.msk.f32.gmra.mrb[52].mxu1 %vm1035_vm3, %v4993_v33 }
 0x438   : > { %4557 = vmatprep.mubr.msk.f32.mxu1 %vm1035_vm3, %v4998_v21 }
 0x439   : > { %v1535_v55 = vpop.trf.xlu0 }
 0x43a   : > { %4442 = vmatprep.mubr.msk.f32.mxu0 %vm1549_vm14, %v1535_v55 }
 0x43b   : > { %4558 = vmatmul.mubr.msk.f32.gmra.mrb[54].mxu1 %vm1035_vm3, %v5003_v50 }
 0x43c   : > { %4560 = vmatprep.mubr.msk.f32.mxu1 %vm1035_vm3, %v5008_v30 }
 0x43d   : > { %v1536_v2 = vpop.trf.xlu0 }
 0x43e   : > { %4443 = vmatmul.mubr.msk.f32.gmra.mrb[52].mxu0 %vm1549_vm14, %v1536_v2 }
 0x43f   : > { %4561 = vmatmul.mubr.msk.f32.gmra.mrb[56].mxu1 %vm1035_vm3, %v5013_v58 }
 0x440   : > { %4563 = vmatprep.mubr.msk.f32.mxu1 %vm1035_vm3, %v5018_v57 }
 0x441   : > { %v1537_v23 = vpop.trf.xlu0 }
 0x442   : > { %4445 = vmatprep.mubr.msk.f32.mxu0 %vm1549_vm14, %v1537_v23 }
 0x443   : > { %4564 = vmatmul.mubr.msk.f32.gmra.mrb[58].mxu1 %vm1035_vm3, %v5023_v38 }
 0x444   : > { %4566 = vmatprep.mubr.msk.f32.mxu1 %vm1035_vm3, %v5028_v24 }
 0x445   : > { %v1538_v16 = vpop.trf.xlu0 }
 0x446   : > { %4446 = vmatmul.mubr.msk.f32.gmra.mrb[54].mxu0 %vm1549_vm14, %v1538_v16 }
 0x447   : > { %4567 = vmatmul.mubr.msk.f32.gmra.mrb[60].mxu1 %vm1035_vm3, %v5033_v26 }
 0x448   : > { %4569 = vmatprep.mubr.msk.f32.mxu1 %vm1035_vm3, %v5038_v27 }
 0x449   : > { %v1539_v45 = vpop.trf.xlu0 }
 0x44a   : > { %4448 = vmatprep.mubr.msk.f32.mxu0 %vm1549_vm14, %v1539_v45 }
 0x44b   : > { %4570 = vmatmul.mubr.msk.f32.gmra.mrb[62].mxu1 %vm1035_vm3, %v5043_v39 }
 0x44c   : > { %4572 = vmatprep.mubr.msk.f32.mxu1 %vm1035_vm3, %v5048_v29 }
 0x44d   : > { %v1540_v37 = vpop.trf.xlu0 }
 0x44e   : > { %4449 = vmatmul.mubr.msk.f32.gmra.mrb[56].mxu0 %vm1549_vm14, %v1540_v37 }
 0x44f   : > { %4573 = vmatmul.mubr.msk.f32.gmra.mrb[64].mxu1 %vm1035_vm3, %v5053_v20  ;;  %vm7050_vm3 = vcmp.eq.s32.totalorder %v5380_v1, %v5400_v10 }
 0x450   : > { %3866 = vmatprep.mubr.msk.f32.mxu1 %vm7050_vm3, %v7012_v19 }
 0x451   : > { %v1541_v51 = vpop.trf.xlu0 }
 0x452   : > { %4451 = vmatprep.mubr.msk.f32.mxu0 %vm1549_vm14, %v1541_v51 }
 0x455   : > { %v1542_v61 = vpop.trf.xlu0 }
 0x456   : > { %4452 = vmatmul.mubr.msk.f32.gmra.mrb[58].mxu0 %vm1549_vm14, %v1542_v61 }
 0x459   : > { %v1543_v42 = vpop.trf.xlu0 }
 0x45a   : > { %4454 = vmatprep.mubr.msk.f32.mxu0 %vm1549_vm14, %v1543_v42 }
 0x45d   : > { %v1544_v48 = vpop.trf.xlu0 }
 0x45e   : > { %4455 = vmatmul.mubr.msk.f32.gmra.mrb[60].mxu0 %vm1549_vm14, %v1544_v48 }
 0x461   : > { %v1545_v44 = vpop.trf.xlu0 }
 0x462   : > { %4457 = vmatprep.mubr.msk.f32.mxu0 %vm1549_vm14, %v1545_v44 }
 0x465   : > { %v1546_v33 = vpop.trf.xlu0 }
 0x466   : > { %4458 = vmatmul.mubr.msk.f32.gmra.mrb[62].mxu0 %vm1549_vm14, %v1546_v33 }
 0x469   : > { %v1547_v21 = vpop.trf.xlu0 }
 0x46a   : > { %4460 = vmatprep.mubr.msk.f32.mxu0 %vm1549_vm14, %v1547_v21 }
 0x46d   : > { %v1548_v50 = vpop.trf.xlu0 }
 0x46e   : > { %4461 = vmatmul.mubr.msk.f32.gmra.mrb[64].mxu0 %vm1549_vm14, %v1548_v50 }
 0x46f   : > { %3850 = vmatprep.mubr.msk.f32.mxu0 %vm7051_vm8, %v7012_v19 }
 0x488   : > { %v6262_v30 = vpop.f32.mrb[2].mxu0 }
 0x489   : > { %v2853_v55 = vmul.f32 %v6034_v63, %v6262_v30  ;;  %v6266_v58 = vpop.f32.mrb[3].mxu0 }
 0x48a   : > { %v2852_v57 = vmul.f32 %v6039_v59, %v6266_v58 }
 0x48c   : > { %v4693_v38 = vpack.c.bf16 %v2853_v55, %v2852_v57 }
 0x490   : > { %v6272_v24 = vpop.f32.mrb[4].mxu0 }
 0x491   : > { %v6276_v23 = vmul.f32 %v6041_v60, %v6272_v24  ;;  %v6278_v26 = vpop.f32.mrb[5].mxu0 }
 0x492   : > { %v2854_v63 = vmul.f32 %v6043_v62, %v6278_v26 }
 0x494   : > { %v4697_v59 = vpack.c.bf16 %v6276_v23, %v2854_v63 }
 0x498   : > { %v6285_v16 = vpop.f32.mrb[6].mxu0 }
 0x499   : > { %v6289_v39 = vmul.f32 %v6046_v0, %v6285_v16  ;;  %v6291_v29 = vpop.f32.mrb[7].mxu0 }
 0x49a   : > { %v6295_v60 = vmul.f32 %v6050_v6, %v6291_v29 }
 0x49c   : > { %v4701_v45 = vpack.c.bf16 %v6289_v39, %v6295_v60 }
 0x4a0   : > { %v6301_v20 = vpop.f32.mrb[8].mxu0 }
 0x4a1   : > { %v6305_v37 = vmul.f32 %v6052_v8, %v6301_v20  ;;  %v6307_v0 = vpop.f32.mrb[9].mxu0 }
 0x4a2   : > { %v6311_v51 = vmul.f32 %v6054_v17, %v6307_v0 }
 0x4a8   : > { %v6317_v42 = vpop.f32.mrb[10].mxu0 }
 0x4a9   : > { %v6321_v48 = vmul.f32 %v6057_v22, %v6317_v42  ;;  %v6323_v8 = vpop.f32.mrb[11].mxu0 }
 0x4aa   : > { %v6327_v44 = vmul.f32 %v6061_v7, %v6323_v8 }
 0x4b0   : > { %v6333_v21 = vpop.f32.mrb[12].mxu0 }
 0x4b1   : > { %v6337_v50 = vmul.f32 %v6063_v4, %v6333_v21  ;;  %v6339_v22 = vpop.f32.mrb[13].mxu0 }
 0x4b2   : > { %v6343_v55 = vmul.f32 %v6065_v28, %v6339_v22 }
 0x4b8   : > { %v6349_v23 = vpop.f32.mrb[14].mxu0 }
 0x4b9   : > { %v6353_v63 = vmul.f32 %v6068_v5, %v6349_v23  ;;  %v6355_v4 = vpop.f32.mrb[15].mxu0 }
 0x4ba   : > { %v6359_v39 = vmul.f32 %v6072_v31, %v6355_v4 }
 0x4c0   : > { %v6365_v7 = vpop.f32.mrb[16].mxu0 }
 0x4c1   : > { %v6369_v17 = vmul.f32 %v6074_v32, %v6365_v7  ;;  %v6371_v5 = vpop.f32.mrb[17].mxu0 }
 0x4c2   : > { %v6375_v6 = vmul.f32 %v6076_v34, %v6371_v5 }
 0x4c4   : > { %v6381_v62 = vpop.f32.mrb[18].mxu0 }
 0x4c5   : > { %v2869_v27 = vmul.f32 %v6079_v35, %v6381_v62  ;;  %v6385_v2 = vpop.f32.mrb[19].mxu0 }
 0x4c6   : > { %v2868_v32 = vmul.f32 %v6081_v36, %v6385_v2 }
 0x4c8   : > { %v4691_v19 = vpack.c.bf16 %v2869_v27, %v2868_v32  ;;  %v6391_v60 = vpop.f32.mrb[20].mxu0 }
 0x4c9   : > { %v2871_v31 = vmul.f32 %v6084_v18, %v6391_v60  ;;  %v6395_v28 = vpop.f32.mrb[21].mxu0 }
 0x4ca   : > { %v2870_v57 = vmul.f32 %v6087_v40, %v6395_v28  ;;  %4692 = vmatprep.subr.bf16.mxu0 %v4691_v19  ;;  %v4529_v33 = vpop.f32.mrb[34].mxu1 }
 0x4cb   : > { %4694 = vmatpush3.bf16.msra.mxu0 %v4693_v38  ;;  %v2685_v36 = vpop.f32.mrb[35].mxu1 }
 0x4cc   : > { %v4695_v61 = vpack.c.bf16 %v2871_v31, %v2870_v57  ;;  %v6401_v34 = vpop.f32.mrb[22].mxu0 }
 0x4cd   : > { %v2873_v27 = vmul.f32 %v6090_v43, %v6401_v34  ;;  %v6405_v32 = vpop.f32.mrb[23].mxu0 }
 0x4ce   : > { %v2872_v18 = vmul.f32 %v6093_v46, %v6405_v32  ;;  %4696 = vmatprep.subr.bf16.mxu0 %v4695_v61 }
 0x4cf   : > { %4698 = vmatpush3.bf16.msra.mxu0 %v4697_v59 }
 0x4d0   : > { %v4699_v19 = vpack.c.bf16 %v2873_v27, %v2872_v18  ;;  %v6411_v35 = vpop.f32.mrb[24].mxu0 }
 0x4d1   : > { %v2875_v38 = vmul.f32 %v6096_v49, %v6411_v35  ;;  %v6415_v57 = vpop.f32.mrb[25].mxu0 }
 0x4d2   : > { %v2874_v43 = vmul.f32 %v6099_v52, %v6415_v57  ;;  %4700 = vmatprep.subr.bf16.mxu0 %v4699_v19  ;;  %v4532_v46 = vpop.f32.mrb[36].mxu1  ;;  %v7052_v19 = vpack.c.bf16 %v6305_v37, %v6311_v51  ;;  %v7053_v37 = vpack.c.bf16 %v6321_v48, %v6327_v44  ;;  %v7054_v48 = vpack.c.bf16 %v6337_v50, %v6343_v55 }
 0x4d3   : > { %4702 = vmatpush3.bf16.msra.mxu0 %v4701_v45  ;;  %v2695_v40 = vpop.f32.mrb[37].mxu1  ;;  %v7055_v50 = vpack.c.bf16 %v6353_v63, %v6359_v39  ;;  %v7057_v39 = vpack.c.bf16 %v6381_v62, %v6385_v2 }
 0x4d4   : > { %v4703_v61 = vpack.c.bf16 %v2875_v38, %v2874_v43  ;;  %v6421_v59 = vpop.f32.mrb[26].mxu0 }
 0x4d5   : > { %v2877_v27 = vmul.f32 %v6102_v56, %v6421_v59  ;;  %v6425_v18 = vpop.f32.mrb[27].mxu0 }
 0x4d6   : > { %v2876_v49 = vmul.f32 %v6107_v13, %v6425_v18  ;;  %v4771_v52 = vpack.c.bf16 %v6421_v59, %v6425_v18  ;;  %4704 = vmatprep.subr.bf16.mxu0 %v4703_v61  ;;  %v7077_v59 = vld [vmem:[#allocation12_spill] sm:$0xff] }
 0x4d7   : > { %4706 = vmatpush3.bf16.msra.mxu0 %v7052_v19  ;;  %vm7078_vm1 = vcmp.eq.s32.totalorder %v7077_v59, %v5397_v9  ;;  %vm7080_vm7 = vcmp.eq.s32.totalorder %v7077_v59, %v5409_v14 }
 0x4d8   : > { %v4707_v45 = vpack.c.bf16 %v2877_v27, %v2876_v49  ;;  %v6434_v38 = vpop.f32.mrb[28].mxu0 }
 0x4d9   : > { %v2879_v43 = vmul.f32 %v6109_v25, %v6434_v38  ;;  %v6438_v56 = vpop.f32.mrb[29].mxu0 }
 0x4da   : > { %v2878_v31 = vmul.f32 %v6113_v11, %v6438_v56  ;;  %4708 = vmatprep.subr.bf16.mxu0 %v4707_v45  ;;  %v4535_v61 = vpop.f32.mrb[38].mxu1 }
 0x4db   : > { %4710 = vmatpush3.bf16.msra.mxu0 %v7053_v37  ;;  %v2705_v51 = vpop.f32.mrb[39].mxu1 }
 0x4dc   : > { %v4711_v27 = vpack.c.bf16 %v2879_v43, %v2878_v31  ;;  %v6447_v49 = vpop.f32.mrb[30].mxu0 }
 0x4dd   : > { %v2881_v25 = vmul.f32 %v6118_v41, %v6447_v49  ;;  %v6451_v19 = vpop.f32.mrb[31].mxu0 }
 0x4de   : > { %v2880_v11 = vmul.f32 %v6122_v54, %v6451_v19  ;;  %4712 = vmatprep.subr.bf16.mxu0 %v4711_v27 }
 0x4df   : > { %4714 = vmatpush3.bf16.msra.mxu0 %v7054_v48 }
 0x4e0   : > { %v4715_v44 = vpack.c.bf16 %v2881_v25, %v2880_v11  ;;  %v6460_v31 = vpop.f32.mrb[32].mxu0 }
 0x4e1   : > { %v2883_v43 = vmul.f32 %v6125_v47, %v6460_v31  ;;  %v6464_v41 = vpop.f32.mrb[33].mxu0 }
 0x4e2   : > { %v2882_v37 = vmul.f32 %v6129_v53, %v6464_v41  ;;  %v4783_v54 = vpack.c.bf16 %v6460_v31, %v6464_v41  ;;  %4716 = vmatprep.subr.bf16.mxu0 %v4715_v44  ;;  %v4538_v27 = vpop.f32.mrb[40].mxu1  ;;  %v7056_v53 = vpack.c.bf16 %v6369_v17, %v6375_v6  ;;  %v7060_v17 = vpack.c.bf16 %v6262_v30, %v6266_v58 }
 0x4e3   : > { %4718 = vmatpush3.bf16.msra.mxu0 %v7055_v50  ;;  %v2715_v55 = vpop.f32.mrb[41].mxu1  ;;  %v7058_v50 = vmov 1.0   ;;  %v7064_v58 = vpack.c.bf16 %v6272_v24, %v6278_v26 }
 0x4e4   : > { %v4719_v25 = vpack.c.bf16 %v2883_v43, %v2882_v37  ;;  %v4417_v11 = vpop.f32.mrb[34].mxu0 }
 0x4e5   : > { %v6473_v48 = vmul.f32 %v4529_v33, %v4417_v11  ;;  %v1972_v47 = vpop.f32.mrb[35].mxu0 }
 0x4e6   : > { %v6475_v45 = vmul.f32 %v2685_v36, %v1972_v47  ;;  %v6477_v13 = vpack.c.bf16 %v4417_v11, %v1972_v47  ;;  %4720 = vmatprep.subr.bf16.mxu0 %v4719_v25 }
 0x4e7   : > { %4722 = vmatpush3.bf16.msra.mxu0 %v7056_v53 }
 0x4e8   : > { %v4725_v44 = vpack.c.bf16 %v6473_v48, %v6475_v45  ;;  %v4420_v63 = vpop.f32.mrb[36].mxu0  ;;  %4756 = vmatprep.subr.bf16.mxu0 %v7057_v39  ;;  %v7068_v39 = vpack.c.bf16 %v6285_v16, %v6291_v29  ;;  %v7072_v29 = vpack.c.bf16 %v6301_v20, %v6307_v0 }
 0x4e9   : > { %v6487_v33 = vmul.f32 %v4532_v46, %v4420_v63  ;;  %v1982_v43 = vpop.f32.mrb[37].mxu0 }
 0x4ea   : > { %v6489_v36 = vmul.f32 %v2695_v40, %v1982_v43  ;;  %v6491_v37 = vpack.c.bf16 %v4420_v63, %v1982_v43  ;;  %3851 = vmatmul.mubr.msk.f32.vlgmr.msra.gmra.mrb[66].mxu0 %vm7059_vm12, %v7058_v50  ;;  %v4541_v6 = vpop.f32.mrb[42].mxu1  ;;  %v7062_v40 = vpack.c.bf16 %v6391_v60, %v6395_v28 }
 0x4eb   : > { %4758 = vmatpush3.bf16.msra.mxu0 %v7060_v17  ;;  %v2725_v25 = vpop.f32.mrb[43].mxu1  ;;  %3852 = vmatprep.mubr.msk.f32.mxu0 %vm7061_vm0, %v7058_v50 }
 0x4ec   : > { %v4729_v2 = vpack.c.bf16 %v6487_v33, %v6489_v36  ;;  %v4423_v62 = vpop.f32.mrb[38].mxu0  ;;  %4760 = vmatprep.subr.bf16.mxu0 %v7062_v40  ;;  %v7073_v40 = vld [vmem:[#allocation11_spill] sm:$0xff] }
 0x4ed   : > { %v6509_v46 = vmul.f32 %v4535_v61, %v4423_v62  ;;  %v1992_v11 = vpop.f32.mrb[39].mxu0  ;;  %v7066_v61 = vpack.c.bf16 %v6401_v34, %v6405_v32  ;;  %vm7074_vm4 = vcmp.eq.s32.totalorder %v7073_v40, %v5397_v9  ;;  %vm7075_vm10 = vcmp.eq.s32.totalorder %v7073_v40, %v5409_v14 }
 0x4ee   : > { %v6511_v47 = vmul.f32 %v2705_v51, %v1992_v11  ;;  %v6513_v30 = vpack.c.bf16 %v4423_v62, %v1992_v11  ;;  %3853 = vmatmul.mubr.msk.f32.gmra.mrb[68].mxu0 %vm7063_vm11, %v7058_v50 }
 0x4ef   : > { %4762 = vmatpush3.bf16.msra.mxu0 %v7064_v58  ;;  %3854 = vmatprep.mubr.msk.f32.mxu0 %vm7065_vm6, %v7058_v50  ;;  %v7076_v58 = vpack.c.bf16 %v6317_v42, %v6323_v8  ;;  %v7081_v8 = vpack.c.bf16 %v6333_v21, %v6339_v22 }
 0x4f0   : > { %v4733_v28 = vpack.c.bf16 %v6509_v46, %v6511_v47  ;;  %v4426_v60 = vpop.f32.mrb[40].mxu0  ;;  %4764 = vmatprep.subr.bf16.mxu0 %v7066_v61  ;;  %v7079_v61 = vpack.c.bf16 %v6434_v38, %v6438_v56  ;;  %v7084_v56 = vpack.c.bf16 %v6447_v49, %v6451_v19 }
 0x4f1   : > { %v6531_v51 = vmul.f32 %v4538_v27, %v4426_v60  ;;  %v2002_v53 = vpop.f32.mrb[41].mxu0  ;;  %v7070_v27 = vpack.c.bf16 %v6411_v35, %v6415_v57 }
 0x4f2   : > { %v6533_v63 = vmul.f32 %v2715_v55, %v2002_v53  ;;  %v6535_v24 = vpack.c.bf16 %v4426_v60, %v2002_v53  ;;  %v4544_v26 = vpop.f32.mrb[44].mxu1  ;;  %3855 = vmatmul.mubr.msk.f32.gmra.mrb[70].mxu0 %vm7067_vm13, %v7058_v50 }
 0x4f3   : > { %4766 = vmatpush3.bf16.msra.mxu0 %v7068_v39  ;;  %v2735_v43 = vpop.f32.mrb[45].mxu1  ;;  %3856 = vmatprep.mubr.msk.f32.mxu0 %vm7069_vm5, %v7058_v50 }
 0x4f4   : > { %v4737_v34 = vpack.c.bf16 %v6531_v51, %v6533_v63  ;;  %v4429_v32 = vpop.f32.mrb[42].mxu0  ;;  %4768 = vmatprep.subr.bf16.mxu0 %v7070_v27 }
 0x4f5   : > { %v6553_v55 = vmul.f32 %v4541_v6, %v4429_v32  ;;  %v2012_v17 = vpop.f32.mrb[43].mxu0 }
 0x4f6   : > { %v6555_v62 = vmul.f32 %v2725_v25, %v2012_v17  ;;  %v6557_v16 = vpack.c.bf16 %v4429_v32, %v2012_v17  ;;  %3857 = vmatmul.mubr.msk.f32.gmra.mrb[72].mxu0 %vm7071_vm9, %v7058_v50 }
 0x4f7   : > { %4770 = vmatpush3.bf16.msra.mxu0 %v7072_v29  ;;  %3858 = vmatprep.mubr.msk.f32.mxu0 %vm7074_vm4, %v7058_v50  ;;  %v7086_v29 = vpack.c.bf16 %v6349_v23, %v6355_v4  ;;  %v7090_v4 = vpack.c.bf16 %v6365_v7, %v6371_v5 }
 0x4f8   : > { %v4741_v35 = vpack.c.bf16 %v6553_v55, %v6555_v62  ;;  %v4432_v57 = vpop.f32.mrb[44].mxu0  ;;  %4772 = vmatprep.subr.bf16.mxu0 %v4771_v52 }
 0x4f9   : > { %v6575_v6 = vmul.f32 %v4544_v26, %v4432_v57  ;;  %v2022_v25 = vpop.f32.mrb[45].mxu0 }
 0x4fa   : > { %v6577_v11 = vmul.f32 %v2735_v43, %v2022_v25  ;;  %v6579_v20 = vpack.c.bf16 %v4432_v57, %v2022_v25  ;;  %v4547_v0 = vpop.f32.mrb[46].mxu1  ;;  %3859 = vmatmul.mubr.msk.f32.gmra.mrb[74].mxu0 %vm7075_vm10, %v7058_v50  ;;  %v7082_v43 = vld [vmem:[#allocation13_spill] sm:$0xff]  ;;  %v7087_v57 = vld [vmem:[#allocation14_spill] sm:$0xff] }
 0x4fb   : > { %4774 = vmatpush3.bf16.msra.mxu0 %v7076_v58  ;;  %v2745_v60 = vpop.f32.mrb[47].mxu1  ;;  %3860 = vmatprep.mubr.msk.f32.mxu0 %vm7078_vm1, %v7058_v50  ;;  %vm7083_vm15 = vcmp.eq.s32.totalorder %v7082_v43, %v5397_v9  ;;  %vm7085_vm2 = vcmp.eq.s32.totalorder %v7082_v43, %v5409_v14  ;;  %vm7088_vm14 = vcmp.eq.s32.totalorder %v7087_v57, %v5397_v9 }
 0x4fc   : > { %v4745_v18 = vpack.c.bf16 %v6575_v6, %v6577_v11  ;;  %v4435_v52 = vpop.f32.mrb[46].mxu0  ;;  %4776 = vmatprep.subr.bf16.mxu0 %v7079_v61  ;;  %vm7089_vm3 = vcmp.eq.s32.totalorder %v7087_v57, %v5409_v14 }
 0x4fd   : > { %v6597_v53 = vmul.f32 %v4547_v0, %v4435_v52  ;;  %v2032_v26 = vpop.f32.mrb[47].mxu0 }
 0x4fe   : > { %v6599_v39 = vpack.c.bf16 %v4435_v52, %v2032_v26  ;;  %v6601_v42 = vmul.f32 %v2745_v60, %v2032_v26  ;;  %3861 = vmatmul.mubr.msk.f32.gmra.mrb[76].mxu0 %vm7080_vm7, %v7058_v50 }
 0x4ff   : > { %4778 = vmatpush3.bf16.msra.mxu0 %v7081_v8  ;;  %3862 = vmatprep.mubr.msk.f32.mxu0 %vm7083_vm15, %v7058_v50 }
 0x500   : > { %v4749_v38 = vpack.c.bf16 %v6597_v53, %v6601_v42  ;;  %4780 = vmatprep.subr.bf16.mxu0 %v7084_v56 }
 0x501   : > { %v4438_v32 = vpop.f32.mrb[48].mxu0 }
 0x502   : > { %v4550_v27 = vpop.f32.mrb[48].mxu1  ;;  %3863 = vmatmul.mubr.msk.f32.gmra.mrb[78].mxu0 %vm7085_vm2, %v7058_v50  ;;  %v2042_v21 = vpop.f32.mrb[49].mxu0 }
 0x503   : > { %v6623_v22 = vmul.f32 %v4550_v27, %v4438_v32  ;;  %v2755_v17 = vpop.f32.mrb[49].mxu1  ;;  %4782 = vmatpush3.bf16.msra.mxu0 %v7086_v29  ;;  %3864 = vmatprep.mubr.msk.f32.mxu0 %vm7088_vm14, %v7058_v50  ;;  %v6632_v49 = vpack.c.bf16 %v4438_v32, %v2042_v21 }
 0x504   : > { %v6634_v19 = vmul.f32 %v2755_v17, %v2042_v21  ;;  %4784 = vmatprep.subr.bf16.mxu0 %v4783_v54 }
 0x506   : > { %v4753_v25 = vpack.c.bf16 %v6623_v22, %v6634_v19  ;;  %v4553_v0 = vpop.f32.mrb[50].mxu1  ;;  %3865 = vmatmul.mubr.msk.f32.gmra.mrb[80].mxu0 %vm7089_vm3, %v7058_v50 }
 0x507   : > { %v2765_v23 = vpop.f32.mrb[51].mxu1  ;;  %4786 = vmatpush3.bf16.msra.mxu0 %v7090_v4  ;;  %3882 = vmatprep.mubr.msk.f32.mxu0 %vm7051_vm8, %v7058_v50  ;;  %vm7091_vm8 = vcmp.eq.s32.totalorder %v5380_v1, %v5400_v10 }
 0x509   : > { %v4441_v31 = vpop.f32.mrb[50].mxu0 }
 0x50a   : > { %v4556_v41 = vpop.f32.mrb[52].mxu1  ;;  %3883 = vmatmul.mubr.msk.f32.vlgmr.msra.gmra.mrb[82].mxu0 %vm7059_vm12, %v7058_v50  ;;  %v2901_v54 = vmul.f32 %v4553_v0, %v4441_v31  ;;  %v2052_v58 = vpop.f32.mrb[51].mxu0 }
 0x50b   : > { %v2775_v60 = vpop.f32.mrb[53].mxu1  ;;  %3884 = vmatprep.mubr.msk.f32.mxu0 %vm7061_vm0, %v7058_v50  ;;  %v2900_v7 = vmul.f32 %v2765_v23, %v2052_v58  ;;  %v6660_v5 = vpack.c.bf16 %v4441_v31, %v2052_v58 }
 0x50d   : > { %v4723_v52 = vpack.c.bf16 %v2901_v54, %v2900_v7  ;;  %4788 = vmatprep.subr.bf16.mxu0 %v6660_v5 }
 0x50e   : > { %v4559_v61 = vpop.f32.mrb[54].mxu1  ;;  %3885 = vmatmul.mubr.msk.f32.gmra.mrb[84].mxu0 %vm7063_vm11, %v7058_v50  ;;  %vm7095_vm11 = vcmp.eq.s32.totalorder %v5384_v3, %v5400_v10 }
 0x50f   : > { %4790 = vmatpush3.bf16.msra.mxu0 %v6477_v13  ;;  %v2785_v26 = vpop.f32.mrb[55].mxu1  ;;  %3886 = vmatprep.mubr.msk.f32.mxu0 %vm7065_vm6, %v7058_v50 }
 0x510   : > { %4724 = vmatprep.subr.bf16.mxu1 %v4723_v52 }
 0x511   : > { %4726 = vmatpush3.bf16.msra.mxu1 %v4725_v44  ;;  %v4444_v8 = vpop.f32.mrb[52].mxu0 }
 0x512   : > { %v4562_v56 = vpop.f32.mrb[56].mxu1  ;;  %3887 = vmatmul.mubr.msk.f32.gmra.mrb[86].mxu0 %vm7067_vm13, %v7058_v50  ;;  %v2903_v32 = vmul.f32 %v4556_v41, %v4444_v8  ;;  %v2062_v27 = vpop.f32.mrb[53].mxu0  ;;  %vm7097_vm13 = vcmp.eq.s32.totalorder %v5406_v12, %v5400_v10 }
 0x513   : > { %v2795_v21 = vpop.f32.mrb[57].mxu1  ;;  %3888 = vmatprep.mubr.msk.f32.mxu0 %vm7069_vm5, %v7058_v50  ;;  %v2902_v17 = vmul.f32 %v2775_v60, %v2062_v27  ;;  %v6683_v29 = vpack.c.bf16 %v4444_v8, %v2062_v27 }
 0x515   : > { %v4727_v45 = vpack.c.bf16 %v2903_v32, %v2902_v17  ;;  %4792 = vmatprep.subr.bf16.mxu0 %v6683_v29 }
 0x516   : > { %v4565_v48 = vpop.f32.mrb[58].mxu1  ;;  %3889 = vmatmul.mubr.msk.f32.gmra.mrb[88].mxu0 %vm7071_vm9, %v7058_v50  ;;  %vm7099_vm9 = vcmp.eq.s32.totalorder %v5412_v15, %v5400_v10 }
 0x517   : > { %4794 = vmatpush3.bf16.msra.mxu0 %v6491_v37  ;;  %v2805_v44 = vpop.f32.mrb[59].mxu1  ;;  %3890 = vmatprep.mubr.msk.f32.mxu0 %vm7074_vm4, %v7058_v50 }
 0x518   : > { %4728 = vmatprep.subr.bf16.mxu1 %v4727_v45 }
 0x519   : > { %4730 = vmatpush3.bf16.msra.mxu1 %v4729_v2  ;;  %v4447_v0 = vpop.f32.mrb[54].mxu0 }
 0x51a   : > { %v4568_v23 = vpop.f32.mrb[60].mxu1  ;;  %3891 = vmatmul.mubr.msk.f32.gmra.mrb[90].mxu0 %vm7075_vm10, %v7058_v50  ;;  %v2905_v4 = vmul.f32 %v4559_v61, %v4447_v0  ;;  %v2072_v31 = vpop.f32.mrb[55].mxu0  ;;  %vm7101_vm10 = vcmp.eq.s32.totalorder %v7073_v40, %v5400_v10 }
 0x51b   : > { %v2815_v41 = vpop.f32.mrb[61].mxu1  ;;  %3892 = vmatprep.mubr.msk.f32.mxu0 %vm7078_vm1, %v7058_v50  ;;  %v2904_v54 = vmul.f32 %v2785_v26, %v2072_v31  ;;  %v6706_v58 = vpack.c.bf16 %v4447_v0, %v2072_v31 }
 0x51d   : > { %v4731_v33 = vpack.c.bf16 %v2905_v4, %v2904_v54  ;;  %4796 = vmatprep.subr.bf16.mxu0 %v6706_v58 }
 0x51e   : > { %v4571_v36 = vpop.f32.mrb[62].mxu1  ;;  %3893 = vmatmul.mubr.msk.f32.gmra.mrb[92].mxu0 %vm7080_vm7, %v7058_v50  ;;  %vm7103_vm7 = vcmp.eq.s32.totalorder %v7077_v59, %v5400_v10 }
 0x51f   : > { %4798 = vmatpush3.bf16.msra.mxu0 %v6513_v30  ;;  %v2825_v2 = vpop.f32.mrb[63].mxu1  ;;  %3894 = vmatprep.mubr.msk.f32.mxu0 %vm7083_vm15, %v7058_v50 }
 0x520   : > { %4732 = vmatprep.subr.bf16.mxu1 %v4731_v33 }
 0x521   : > { %4734 = vmatpush3.bf16.msra.mxu1 %v4733_v28  ;;  %v4450_v60 = vpop.f32.mrb[56].mxu0 }
 0x522   : > { %v4574_v7 = vpop.f32.mrb[64].mxu1  ;;  %3895 = vmatmul.mubr.msk.f32.gmra.mrb[94].mxu0 %vm7085_vm2, %v7058_v50  ;;  %v2907_v52 = vmul.f32 %v4562_v56, %v4450_v60  ;;  %v2082_v61 = vpop.f32.mrb[57].mxu0  ;;  %vm7105_vm2 = vcmp.eq.s32.totalorder %v7082_v43, %v5400_v10 }
 0x523   : > { %v2835_v26 = vpop.f32.mrb[65].mxu1  ;;  %3896 = vmatprep.mubr.msk.f32.mxu0 %vm7088_vm14, %v7058_v50  ;;  %v2906_v8 = vmul.f32 %v2795_v21, %v2082_v61  ;;  %v4799_v32 = vpack.c.bf16 %v4450_v60, %v2082_v61 }
 0x525   : > { %v4735_v27 = vpack.c.bf16 %v2907_v52, %v2906_v8  ;;  %4800 = vmatprep.subr.bf16.mxu0 %v4799_v32 }
 0x526   : > { %3897 = vmatmul.mubr.msk.f32.gmra.mrb[96].mxu0 %vm7089_vm3, %v7058_v50  ;;  %vm7107_vm3 = vcmp.eq.s32.totalorder %v7087_v57, %v5400_v10 }
 0x527   : > { %4802 = vmatpush3.bf16.msra.mxu0 %v6535_v24  ;;  %3898 = vmatprep.mubr.msk.f32.mxu0 %vm7091_vm8, %v7058_v50 }
 0x528   : > { %4736 = vmatprep.subr.bf16.mxu1 %v4735_v27 }
 0x529   : > { %4738 = vmatpush3.bf16.msra.mxu1 %v4737_v34  ;;  %v4453_v9 = vpop.f32.mrb[58].mxu0 }
 0x52a   : > { %v2909_v46 = vmul.f32 %v4565_v48, %v4453_v9  ;;  %v2092_v47 = vpop.f32.mrb[59].mxu0 }
 0x52b   : > { %v2908_v28 = vmul.f32 %v2805_v44, %v2092_v47  ;;  %v4803_v56 = vpack.c.bf16 %v4453_v9, %v2092_v47 }
 0x52d   : > { %v4739_v21 = vpack.c.bf16 %v2909_v46, %v2908_v28  ;;  %4804 = vmatprep.subr.bf16.mxu0 %v4803_v56 }
 0x52e   : > { %4806 = vmatpush3.bf16.msra.mxu0 %v6557_v16 }
 0x52f   : > { %4740 = vmatprep.subr.bf16.mxu1 %v4739_v21 }
 0x530   : > { %4742 = vmatpush3.bf16.msra.mxu1 %v4741_v35 }
 0x531   : > { %v4456_v14 = vpop.f32.mrb[60].mxu0 }
 0x532   : > { %v2911_v17 = vmul.f32 %v4568_v23, %v4456_v14  ;;  %v2102_v45 = vpop.f32.mrb[61].mxu0 }
 0x533   : > { %v2910_v0 = vmul.f32 %v2815_v41, %v2102_v45  ;;  %v4807_v51 = vpack.c.bf16 %v4456_v14, %v2102_v45 }
 0x535   : > { %v4743_v63 = vpack.c.bf16 %v2911_v17, %v2910_v0  ;;  %4808 = vmatprep.subr.bf16.mxu0 %v4807_v51 }
 0x536   : > { %4810 = vmatpush3.bf16.msra.mxu0 %v6579_v20 }
 0x537   : > { %4744 = vmatprep.subr.bf16.mxu1 %v4743_v63 }
 0x538   : > { %4746 = vmatpush3.bf16.msra.mxu1 %v4745_v18  ;;  %v7092_v18 = vld [vmem:[#allocation10_spill] sm:$0xff] }
 0x539   : > { %v4459_v34 = vpop.f32.mrb[62].mxu0  ;;  %vm7093_vm12 = vcmp.eq.s32.totalorder %v5380_v1, %v7092_v18  ;;  %vm7096_vm6 = vcmp.eq.s32.totalorder %v5384_v3, %v7092_v18  ;;  %vm7098_vm5 = vcmp.eq.s32.totalorder %v5406_v12, %v7092_v18  ;;  %vm7100_vm4 = vcmp.eq.s32.totalorder %v5412_v15, %v7092_v18 }
 0x53a   : > { %v2913_v48 = vmul.f32 %v4571_v36, %v4459_v34  ;;  %v2112_v44 = vpop.f32.mrb[63].mxu0  ;;  %vm7094_vm0 = vmmov %vm7093_vm12  ;;  %vm7102_vm1 = vcmp.eq.s32.totalorder %v7073_v40, %v7092_v18  ;;  %vm7104_vm15 = vcmp.eq.s32.totalorder %v7077_v59, %v7092_v18  ;;  %vm7106_vm14 = vcmp.eq.s32.totalorder %v7082_v43, %v7092_v18 }
 0x53b   : > { %v2912_v4 = vmul.f32 %v2825_v2, %v2112_v44  ;;  %v4811_v55 = vpack.c.bf16 %v4459_v34, %v2112_v44  ;;  %vm7108_vm8 = vcmp.eq.s32.totalorder %v7087_v57, %v7092_v18  ;;  %v3142_v44 = vld [vmem:[#allocation5] sm:$0xff]  ;;  %v2845_v18 = vld [vmem:[#allocation7 + $0x8] sm:$0xff] }
 0x53d   : > { %v4747_v62 = vpack.c.bf16 %v2913_v48, %v2912_v4  ;;  %4812 = vmatprep.subr.bf16.mxu0 %v4811_v55 }
 0x53e   : > { %4814 = vmatpush3.bf16.msra.mxu0 %v6599_v39 }
 0x53f   : > { %4748 = vmatprep.subr.bf16.mxu1 %v4747_v62  ;;  %v2844_v62 = vld [vmem:[#allocation7] sm:$0xff] }
 0x540   : > { %4750 = vmatpush3.bf16.msra.mxu1 %v4749_v38 }
 0x541   : > { %v4462_v35 = vpop.f32.mrb[64].mxu0 }
 0x542   : > { %v2915_v23 = vmul.f32 %v4574_v7, %v4462_v35  ;;  %v2122_v31 = vpop.f32.mrb[65].mxu0 }
 0x543   : > { %v2914_v41 = vmul.f32 %v2835_v26, %v2122_v31  ;;  %v4815_v6 = vpack.c.bf16 %v4462_v35, %v2122_v31 }
 0x545   : > { %v4751_v11 = vpack.c.bf16 %v2915_v23, %v2914_v41  ;;  %4816 = vmatprep.subr.bf16.mxu0 %v4815_v6 }
 0x546   : > { %4818 = vmatpush3.bf16.msra.mxu0 %v6632_v49 }
 0x547   : > { %4752 = vmatprep.subr.bf16.mxu1 %v4751_v11 }
 0x548   : > { %4754 = vmatpush3.bf16.msra.mxu1 %v4753_v25 }
 0x549   : > { %4819 = vmatprep.subr.bf16.mxu1 %v6660_v5  ;;  %3899 = vmatmul.mubr.msk.f32.vlgmr.msra.gmra.mrb[98].mxu0 %vm7093_vm12, %v7058_v50  ;;  %vm7109_vm12 = vmmov %vm7095_vm11 }
 0x54b   : > { %3867 = vmatmul.mubr.msk.f32.vlgmr.msra.gmra.mrb[66].mxu1 %vm7094_vm0, %v7058_v50  ;;  %vm7110_vm0 = vmmov %vm7096_vm6 }
 0x54c   : > { %4827 = vmatpush3.bf16.msra.mxu1 %v6477_v13  ;;  %3868 = vmatprep.mubr.msk.f32.mxu1 %vm7095_vm11, %v7058_v50  ;;  %vm7111_vm11 = vmmov %vm7097_vm13 }
 0x54d   : > { %4820 = vmatprep.subr.bf16.mxu1 %v6683_v29 }
 0x54f   : > { %3869 = vmatmul.mubr.msk.f32.gmra.mrb[68].mxu1 %vm7096_vm6, %v7058_v50  ;;  %vm7112_vm6 = vmmov %vm7098_vm5 }
 0x550   : > { %4828 = vmatpush3.bf16.msra.mxu1 %v6491_v37  ;;  %3870 = vmatprep.mubr.msk.f32.mxu1 %vm7097_vm13, %v7058_v50  ;;  %vm7113_vm13 = vmmov %vm7099_vm9 }
 0x551   : > { %4821 = vmatprep.subr.bf16.mxu1 %v6706_v58 }
 0x553   : > { %3871 = vmatmul.mubr.msk.f32.gmra.mrb[70].mxu1 %vm7098_vm5, %v7058_v50  ;;  %vm7114_vm5 = vmmov %vm7100_vm4 }
 0x554   : > { %4829 = vmatpush3.bf16.msra.mxu1 %v6513_v30  ;;  %3872 = vmatprep.mubr.msk.f32.mxu1 %vm7099_vm9, %v7058_v50  ;;  %vm7115_vm9 = vmmov %vm7101_vm10 }
 0x555   : > { %4822 = vmatprep.subr.bf16.mxu1 %v4799_v32 }
 0x557   : > { %3873 = vmatmul.mubr.msk.f32.gmra.mrb[72].mxu1 %vm7100_vm4, %v7058_v50  ;;  %vm7116_vm4 = vmmov %vm7102_vm1 }
 0x558   : > { %4830 = vmatpush3.bf16.msra.mxu1 %v6535_v24  ;;  %3874 = vmatprep.mubr.msk.f32.mxu1 %vm7101_vm10, %v7058_v50  ;;  %vm7117_vm10 = vmmov %vm7103_vm7 }
 0x559   : > { %4823 = vmatprep.subr.bf16.mxu1 %v4803_v56 }
 0x55b   : > { %3875 = vmatmul.mubr.msk.f32.gmra.mrb[74].mxu1 %vm7102_vm1, %v7058_v50  ;;  %vm7118_vm1 = vmmov %vm7104_vm15 }
 0x55c   : > { %4831 = vmatpush3.bf16.msra.mxu1 %v6557_v16  ;;  %3876 = vmatprep.mubr.msk.f32.mxu1 %vm7103_vm7, %v7058_v50  ;;  %vm7119_vm7 = vmmov %vm7105_vm2 }
 0x55d   : > { %4824 = vmatprep.subr.bf16.mxu1 %v4807_v51 }
 0x55f   : > { %3877 = vmatmul.mubr.msk.f32.gmra.mrb[76].mxu1 %vm7104_vm15, %v7058_v50  ;;  %vm7120_vm15 = vmmov %vm7106_vm14 }
 0x560   : > { %4832 = vmatpush3.bf16.msra.mxu1 %v6579_v20  ;;  %3878 = vmatprep.mubr.msk.f32.mxu1 %vm7105_vm2, %v7058_v50  ;;  %vm7121_vm2 = vmmov %vm7107_vm3 }
 0x561   : > { %4825 = vmatprep.subr.bf16.mxu1 %v4811_v55 }
 0x563   : > { %3879 = vmatmul.mubr.msk.f32.gmra.mrb[78].mxu1 %vm7106_vm14, %v7058_v50  ;;  %vm7122_vm14 = vmmov %vm7108_vm8 }
 0x564   : > { %4833 = vmatpush3.bf16.msra.mxu1 %v6599_v39  ;;  %3880 = vmatprep.mubr.msk.f32.mxu1 %vm7107_vm3, %v7058_v50 }
 0x565   : > { %4826 = vmatprep.subr.bf16.mxu1 %v4815_v6 }
 0x567   : > { %3881 = vmatmul.mubr.msk.f32.gmra.mrb[80].mxu1 %vm7108_vm8, %v7058_v50 }
 0x568   : > { %4834 = vmatpush3.bf16.msra.mxu1 %v6632_v49  ;;  %3900 = vmatprep.mubr.msk.f32.mxu1 %vm7109_vm12, %v7058_v50 }
 0x56b   : > { %3901 = vmatmul.mubr.msk.f32.vlgmr.msra.gmra.mrb[82].mxu1 %vm7110_vm0, %v7058_v50 }
 0x56c   : > { %3902 = vmatprep.mubr.msk.f32.mxu1 %vm7111_vm11, %v7058_v50 }
 0x56f   : > { %3903 = vmatmul.mubr.msk.f32.gmra.mrb[84].mxu1 %vm7112_vm6, %v7058_v50 }
 0x570   : > { %3904 = vmatprep.mubr.msk.f32.mxu1 %vm7113_vm13, %v7058_v50 }
 0x573   : > { %3905 = vmatmul.mubr.msk.f32.gmra.mrb[86].mxu1 %vm7114_vm5, %v7058_v50 }
 0x574   : > { %3906 = vmatprep.mubr.msk.f32.mxu1 %vm7115_vm9, %v7058_v50 }
 0x577   : > { %3907 = vmatmul.mubr.msk.f32.gmra.mrb[88].mxu1 %vm7116_vm4, %v7058_v50 }
 0x578   : > { %3908 = vmatprep.mubr.msk.f32.mxu1 %vm7117_vm10, %v7058_v50 }
 0x57b   : > { %3909 = vmatmul.mubr.msk.f32.gmra.mrb[90].mxu1 %vm7118_vm1, %v7058_v50 }
 0x57c   : > { %3910 = vmatprep.mubr.msk.f32.mxu1 %vm7119_vm7, %v7058_v50 }
 0x57f   : > { %3911 = vmatmul.mubr.msk.f32.gmra.mrb[92].mxu1 %vm7120_vm15, %v7058_v50 }
 0x580   : > { %3912 = vmatprep.mubr.msk.f32.mxu1 %vm7121_vm2, %v7058_v50 }
 0x583   : > { %3913 = vmatmul.mubr.msk.f32.gmra.mrb[94].mxu1 %vm7122_vm14, %v7058_v50 }
 0x5bd   : > { %v4125_v1 = vpop.f32.mrb[66].mxu0 }
 0x5be   : > { %v4126_v3 = vpop.f32.mrb[67].mxu0 }
 0x5bf   : > { %v4127_v12 = vadd.f32 %v4126_v3, %v4125_v1 }
 0x5c1   : > { %v4128_v15 = vpop.f32.mrb[68].mxu0 }
 0x5c2   : > { %v4129_v13 = vpop.f32.mrb[69].mxu0 }
 0x5c3   : > { %v4130_v37 = vadd.f32 %v4129_v13, %v4128_v15 }
 0x5c5   : > { %v4131_v30 = vpop.f32.mrb[70].mxu0 }
 0x5c6   : > { %v4132_v24 = vpop.f32.mrb[71].mxu0 }
 0x5c7   : > { %v6888_v16 = vadd.f32 %v4132_v24, %v4131_v30  ;;  %v2846_v24 = vld [vmem:[#allocation7 + $0x10] sm:$0xff] }
 0x5c9   : > { %v4134_v40 = vpop.f32.mrb[72].mxu0 }
 0x5ca   : > { %v4135_v20 = vpop.f32.mrb[73].mxu0 }
 0x5cb   : > { %v6890_v59 = vadd.f32 %v4135_v20, %v4134_v40 }
 0x5cd   : > { %v4137_v10 = vpop.f32.mrb[74].mxu0 }
 0x5ce   : > { %v4138_v53 = vpop.f32.mrb[75].mxu0 }
 0x5cf   : > { %v6892_v39 = vadd.f32 %v4138_v53, %v4137_v10 }
 0x5d1   : > { %v4140_v42 = vpop.f32.mrb[76].mxu0 }
 0x5d2   : > { %v4141_v50 = vpop.f32.mrb[77].mxu0 }
 0x5d3   : > { %v6894_v43 = vadd.f32 %v4141_v50, %v4140_v42  ;;  %v2847_v42 = vld [vmem:[#allocation7 + $0x18] sm:$0xff] }
 0x5d5   : > { %v4143_v38 = vpop.f32.mrb[78].mxu0 }
 0x5d6   : > { %v4144_v22 = vpop.f32.mrb[79].mxu0 }
 0x5d7   : > { %v6896_v57 = vadd.f32 %v4144_v22, %v4143_v38 }
 0x5d9   : > { %v4146_v49 = vpop.f32.mrb[80].mxu0 }
 0x5da   : > { %v4147_v19 = vpop.f32.mrb[81].mxu0 }
 0x5db   : > { %v6898_v25 = vadd.f32 %v4147_v19, %v4146_v49  ;;  %v2848_v19 = vld [vmem:[#allocation7 + $0x20] sm:$0xff] }
 0x5dd   : > { %v4237_v5 = vpop.f32.mrb[82].mxu0 }
 0x5de   : > { %v4238_v29 = vpop.f32.mrb[83].mxu0 }
 0x5df   : > { %v4239_v54 = vadd.f32 %v4238_v29, %v4237_v5 }
 0x5e1   : > { %v4240_v58 = vpop.f32.mrb[84].mxu0 }
 0x5e2   : > { %v4241_v33 = vpop.f32.mrb[85].mxu0 }
 0x5e3   : > { %v6900_v36 = vadd.f32 %v4241_v33, %v4240_v58  ;;  %v2849_v33 = vld [vmem:[#allocation7 + $0x28] sm:$0xff] }
 0x5e5   : > { %v4243_v2 = vpop.f32.mrb[86].mxu0 }
 0x5e6   : > { %v4244_v60 = vpop.f32.mrb[87].mxu0 }
 0x5e7   : > { %v6902_v7 = vadd.f32 %v4244_v60, %v4243_v2 }
 0x5e9   : > { %v4246_v52 = vpop.f32.mrb[88].mxu0 }
 0x5ea   : > { %v4247_v61 = vpop.f32.mrb[89].mxu0 }
 0x5eb   : > { %v6904_v26 = vadd.f32 %v4247_v61, %v4246_v52 }
 0x5ed   : > { %v4249_v8 = vpop.f32.mrb[90].mxu0 }
 0x5ee   : > { %v4250_v32 = vpop.f32.mrb[91].mxu0 }
 0x5ef   : > { %v6906_v27 = vadd.f32 %v4250_v32, %v4249_v8  ;;  %v2850_v8 = vld [vmem:[#allocation7 + $0x30] sm:$0xff] }
 0x5f1   : > { %v4252_v9 = vpop.f32.mrb[92].mxu0 }
 0x5f2   : > { %v4253_v46 = vpop.f32.mrb[93].mxu0 }
 0x5f3   : > { %v6908_v47 = vadd.f32 %v4253_v46, %v4252_v9 }
 0x5f5   : > { %v4255_v28 = vpop.f32.mrb[94].mxu0 }
 0x5f6   : > { %v4256_v56 = vpop.f32.mrb[95].mxu0 }
 0x5f7   : > { %v6910_v21 = vadd.f32 %v4256_v56, %v4255_v28  ;;  %v2851_v56 = vld [vmem:[#allocation7 + $0x38] sm:$0xff] }
 0x5f9   : > { %v4258_v14 = vpop.f32.mrb[96].mxu0 }
 0x5fa   : > { %v4259_v17 = vpop.f32.mrb[97].mxu0 }
 0x5fb   : > { %v6912_v45 = vadd.f32 %v4259_v17, %v4258_v14 }
 0x61c   : > { %v4293_v0 = vpop.f32.mrb[98].mxu0 }
 0x61d   : > { %v4294_v51 = vpop.f32.mrb[99].mxu0 }
 0x61e   : > { %v4181_v63 = vpop.f32.mrb[66].mxu1  ;;  %v4295_v34 = vadd.f32 %v4294_v51, %v4293_v0 }
 0x61f   : > { %v4182_v48 = vpop.f32.mrb[67].mxu1 }
 0x620   : > { %v4183_v4 = vadd.f32 %v4182_v48, %v4181_v63  ;;  %v3322_v55 = vadd.f32 %v4295_v34, %v4239_v54  ;;  %v3143_v63 = vld [vmem:[#allocation5 + $0x8] sm:$0xff] }
 0x622   : > { %v3088_v35 = vadd.f32 %v4183_v4, %v4127_v12  ;;  %v4184_v23 = vpop.f32.mrb[68].mxu1  ;;  %v3360_v31 = vadd.f32 %v3322_v55, %v3142_v44  ;;  %v3144_v55 = vld [vmem:[#allocation5 + $0x10] sm:$0xff] }
 0x623   : > { %v4185_v41 = vpop.f32.mrb[69].mxu1 }
 0x624   : > { %v3126_v6 = vadd.f32 %v3088_v35, %v2844_v62  ;;  %v4186_v11 = vadd.f32 %v4185_v41, %v4184_v23  ;;  %3368 = vst [vmem:[#allocation5] sm:$0xff] %v3360_v31  ;;  %v3145_v41 = vld [vmem:[#allocation5 + $0x18] sm:$0xff] }
 0x626   : > { %3134 = vst [vmem:[#allocation7] sm:$0xff] %v3126_v6  ;;  %v3093_v1 = vadd.f32 %v4186_v11, %v4130_v37  ;;  %v4187_v3 = vpop.f32.mrb[70].mxu1 }
 0x627   : > { %v4188_v15 = vpop.f32.mrb[71].mxu1 }
 0x628   : > { %v3127_v13 = vadd.f32 %v3093_v1, %v2845_v18  ;;  %v4189_v30 = vadd.f32 %v4188_v15, %v4187_v3  ;;  %v3146_v3 = vld [vmem:[#allocation5 + $0x20] sm:$0xff] }
 0x62a   : > { %3135 = vst [vmem:[#allocation7 + $0x8] sm:$0xff] %v3127_v13  ;;  %v3098_v40 = vadd.f32 %v4189_v30, %v6888_v16  ;;  %v4190_v20 = vpop.f32.mrb[72].mxu1 }
 0x62b   : > { %v4191_v10 = vpop.f32.mrb[73].mxu1 }
 0x62c   : > { %v3128_v12 = vadd.f32 %v3098_v40, %v2846_v24  ;;  %v4192_v53 = vadd.f32 %v4191_v10, %v4190_v20  ;;  %v3147_v40 = vld [vmem:[#allocation5 + $0x28] sm:$0xff] }
 0x62e   : > { %3136 = vst [vmem:[#allocation7 + $0x10] sm:$0xff] %v3128_v12  ;;  %v3103_v50 = vadd.f32 %v4192_v53, %v6890_v59  ;;  %v4193_v38 = vpop.f32.mrb[74].mxu1 }
 0x62f   : > { %v4194_v22 = vpop.f32.mrb[75].mxu1 }
 0x630   : > { %v3129_v49 = vadd.f32 %v3103_v50, %v2847_v42  ;;  %v4195_v37 = vadd.f32 %v4194_v22, %v4193_v38  ;;  %v3148_v42 = vld [vmem:[#allocation5 + $0x30] sm:$0xff] }
 0x632   : > { %3137 = vst [vmem:[#allocation7 + $0x18] sm:$0xff] %v3129_v49  ;;  %v3108_v5 = vadd.f32 %v4195_v37, %v6892_v39  ;;  %v4196_v29 = vpop.f32.mrb[76].mxu1  ;;  %v3149_v37 = vld [vmem:[#allocation5 + $0x38] sm:$0xff] }
 0x633   : > { %v4197_v54 = vpop.f32.mrb[77].mxu1 }
 0x634   : > { %v3130_v58 = vadd.f32 %v3108_v5, %v2848_v19  ;;  %v4198_v16 = vadd.f32 %v4197_v54, %v4196_v29 }
 0x636   : > { %3138 = vst [vmem:[#allocation7 + $0x20] sm:$0xff] %v3130_v58  ;;  %v3113_v2 = vadd.f32 %v4198_v16, %v6894_v43  ;;  %v4199_v60 = vpop.f32.mrb[78].mxu1 }
 0x637   : > { %v4200_v52 = vpop.f32.mrb[79].mxu1 }
 0x638   : > { %v3131_v61 = vadd.f32 %v3113_v2, %v2849_v33  ;;  %v4201_v59 = vadd.f32 %v4200_v52, %v4199_v60 }
 0x63a   : > { %3139 = vst [vmem:[#allocation7 + $0x28] sm:$0xff] %v3131_v61  ;;  %v3118_v32 = vadd.f32 %v4201_v59, %v6896_v57  ;;  %v4202_v9 = vpop.f32.mrb[80].mxu1 }
 0x63b   : > { %v4203_v46 = vpop.f32.mrb[81].mxu1 }
 0x63c   : > { %v3132_v28 = vadd.f32 %v3118_v32, %v2850_v8  ;;  %v4204_v39 = vadd.f32 %v4203_v46, %v4202_v9  ;;  %v3380_v46 = vld [vmem:[#allocation7] sm:$0xff] (!%p3914_p5) }
 0x63e   : > { %3140 = vst [vmem:[#allocation7 + $0x30] sm:$0xff] %v3132_v28  ;;  %v3123_v14 = vadd.f32 %v4204_v39, %v6898_v25  ;;  %v4296_v17 = vpop.f32.mrb[82].mxu1  ;;  %v3381_v28 = vld [vmem:[#allocation7 + $0x8] sm:$0xff] (!%p3914_p5) }
 0x63f   : > { %v4297_v0 = vpop.f32.mrb[83].mxu1 }
 0x640   : > { %v3133_v51 = vadd.f32 %v3123_v14, %v2851_v56  ;;  %v4298_v43 = vadd.f32 %v4297_v0, %v4296_v17  ;;  %v3420_v56 = vld [vmem:[#allocation2 + $0x8] sm:$0xff] (!%p3914_p5)  ;;  %v3382_v14 = vld [vmem:[#allocation7 + $0x10] sm:$0xff] (!%p3914_p5) }
 0x642   : > { %3141 = vst [vmem:[#allocation7 + $0x38] sm:$0xff] %v3133_v51  ;;  %v3327_v34 = vadd.f32 %v4298_v43, %v6900_v36  ;;  %v4299_v48 = vpop.f32.mrb[84].mxu1  ;;  %v3421_v51 = vld [vmem:[#allocation2 + $0x18] sm:$0xff] (!%p3914_p5) }
 0x643   : > { %v4300_v44 = vpop.f32.mrb[85].mxu1  ;;  %v3383_v43 = vld [vmem:[#allocation7 + $0x18] sm:$0xff] (!%p3914_p5) }
 0x644   : > { %v3361_v4 = vadd.f32 %v3327_v34, %v3143_v63  ;;  %v4301_v57 = vadd.f32 %v4300_v44, %v4299_v48  ;;  %v3915_v34 = vld [vmem:[%s6963_s6] ss:$0 sm:$0xff] (!%p3914_p5)  ;;  %v3422_v44 = vld [vmem:[#allocation2 + $0x28] sm:$0xff] (!%p3914_p5) }
 0x646   : > { %3369 = vst [vmem:[#allocation5 + $0x8] sm:$0xff] %v3361_v4  ;;  %v3332_v62 = vadd.f32 %v4301_v57, %v6902_v7  ;;  %v4302_v35 = vpop.f32.mrb[86].mxu1  ;;  %v3384_v4 = vld [vmem:[#allocation7 + $0x20] sm:$0xff] (!%p3914_p5) }
 0x647   : > { %v4303_v23 = vpop.f32.mrb[87].mxu1 }
 0x648   : > { %v3362_v31 = vadd.f32 %v3332_v62, %v3144_v55  ;;  %v4304_v25 = vadd.f32 %v4303_v23, %v4302_v35  ;;  %v3423_v35 = vld [vmem:[#allocation2 + $0x38] sm:$0xff] (!%p3914_p5)  ;;  %v3385_v23 = vld [vmem:[#allocation7 + $0x28] sm:$0xff] (!%p3914_p5) }
 0x64a   : > { %3370 = vst [vmem:[#allocation5 + $0x10] sm:$0xff] %v3362_v31  ;;  %v3337_v6 = vadd.f32 %v4304_v25, %v6904_v26  ;;  %v4305_v11 = vpop.f32.mrb[88].mxu1 }
 0x64b   : > { %v4306_v18 = vpop.f32.mrb[89].mxu1 }
 0x64c   : > { %v3363_v1 = vadd.f32 %v3337_v6, %v3145_v41  ;;  %v4307_v36 = vadd.f32 %v4306_v18, %v4305_v11  ;;  %v3424_v6 = vld [vmem:[#allocation2 + $0x48] sm:$0xff] (!%p3914_p5) }
 0x64d   : > { %v3389_v54 = vld [vmem:[#allocation5 + $0x8] sm:$0xff] (!%p3914_p5) }
 0x64e   : > { %3371 = vst [vmem:[#allocation5 + $0x18] sm:$0xff] %v3363_v1  ;;  %v3342_v15 = vadd.f32 %v4307_v36, %v6906_v27  ;;  %v4308_v13 = vpop.f32.mrb[90].mxu1  ;;  %v3397_v58 = vadd.f32 (!%p3914_p5), 1e-16, %v3389_v54 }
 0x64f   : > { %v4309_v30 = vpop.f32.mrb[91].mxu1 }
 0x650   : > { %v3364_v24 = vadd.f32 %v3342_v15, %v3146_v3  ;;  %v4310_v7 = vadd.f32 %v4309_v30, %v4308_v13  ;;  %v3425_v3 = vld [vmem:[#allocation2 + $0x58] sm:$0xff] (!%p3914_p5) }
 0x651   : > { %v3390_v16 = vld [vmem:[#allocation5 + $0x10] sm:$0xff] (!%p3914_p5) }
 0x652   : > { %3372 = vst [vmem:[#allocation5 + $0x20] sm:$0xff] %v3364_v24  ;;  %v3347_v20 = vadd.f32 %v4310_v7, %v6908_v47  ;;  %v4311_v10 = vpop.f32.mrb[92].mxu1  ;;  %v3388_v47 = vld [vmem:[#allocation5] sm:$0xff] (!%p3914_p5) }
 0x653   : > { %v4312_v12 = vpop.f32.mrb[93].mxu1  ;;  %v3396_v29 = vadd.f32 (!%p3914_p5), 1e-16, %v3388_v47 }
 0x654   : > { %v3365_v53 = vadd.f32 %v3347_v20, %v3147_v40  ;;  %v4313_v26 = vadd.f32 %v4312_v12, %v4311_v10 }
 0x655   : > { %5062 = vrcp.f32 (!%p3914_p5), %v3396_v29  ;;  %v3391_v33 = vld [vmem:[#allocation5 + $0x18] sm:$0xff] (!%p3914_p5) }
 0x656   : > { %3373 = vst [vmem:[#allocation5 + $0x28] sm:$0xff] %v3365_v53  ;;  %v3352_v50 = vadd.f32 %v4313_v26, %v6910_v21  ;;  %v4314_v38 = vpop.f32.mrb[94].mxu1  ;;  %v3398_v21 = vadd.f32 (!%p3914_p5), 1e-16, %v3390_v16  ;;  %5064 = vrcp.f32 (!%p3914_p5), %v3397_v58  ;;  %v3399_v2 = vadd.f32 (!%p3914_p5), 1e-16, %v3391_v33 }
 0x657   : > { %v4315_v22 = vpop.f32.mrb[95].mxu1  ;;  %v3426_v58 = vld [vmem:[#allocation2 + $0x68] sm:$0xff] (!%p3914_p5)  ;;  %v3427_v16 = vld [vmem:[#allocation2 + $0x78] sm:$0xff] (!%p3914_p5) }
 0x658   : > { %v3366_v49 = vadd.f32 %v3352_v50, %v3148_v42  ;;  %v4316_v27 = vadd.f32 %v4315_v22, %v4314_v38  ;;  %3379 = sbr.rel (%p3914_p5) target bundleno = 1676 (0x68c), region = 56  ;;  %5066 = vrcp.f32 (!%p3914_p5), %v3398_v21 }
 0x659   : > { %v3392_v60 = vld [vmem:[#allocation5 + $0x20] sm:$0xff] (!%p3914_p5)  ;;  %5068 = vrcp.f32 (!%p3914_p5), %v3399_v2 }
 0x65a   : > { %3374 = vst [vmem:[#allocation5 + $0x30] sm:$0xff] %v3366_v49  ;;  %v3357_v19 = vadd.f32 %v4316_v27, %v6912_v45  ;;  %v3400_v52 = vadd.f32 (!%p3914_p5), 1e-16, %v3392_v60 }
 0x65c   : > { %v3367_v5 = vadd.f32 %v3357_v19, %v3149_v37  ;;  %5070 = vrcp.f32 (!%p3914_p5), %v3400_v52  ;;  %v3386_v37 = vld [vmem:[#allocation7 + $0x30] sm:$0xff] (!%p3914_p5)  ;;  %v3387_v19 = vld [vmem:[#allocation7 + $0x38] sm:$0xff] (!%p3914_p5) }
 0x65d   : > { %v3393_v61 = vld [vmem:[#allocation5 + $0x28] sm:$0xff] (!%p3914_p5) }
 0x65e   : > { %3375 = vst [vmem:[#allocation5 + $0x38] sm:$0xff] %v3367_v5  ;;  %v3401_v45 = vadd.f32 (!%p3914_p5), 1e-16, %v3393_v61 }
 0x65f   : > { %v5063_v39 = vpop.eup %5062 }
 0x660   : > { %5072 = vrcp.f32 %v3401_v45  ;;  %v5065_v17 = vpop.eup %5064  ;;  %v3405_v0 = vmul.f32 %v5063_v39, %v3380_v46 }
 0x661   : > { %v3394_v59 = vld [vmem:[#allocation5 + $0x30] sm:$0xff]  ;;  %v3407_v48 = vmul.f32 %v5065_v17, %v3381_v28 }
 0x662   : > { %v3402_v32 = vadd.f32 1e-16, %v3394_v59  ;;  %v5067_v63 = vpop.eup %5066  ;;  %v3428_v55 = vadd.f32 %v3420_v56, %v3405_v0 }
 0x663   : > { %v5069_v57 = vpop.eup %5068  ;;  %v3409_v62 = vmul.f32 %v5067_v63, %v3382_v14  ;;  %v3429_v25 = vadd.f32 %v3421_v51, %v3407_v48 }
 0x664   : > { %5074 = vrcp.f32 %v3402_v32  ;;  %v3411_v41 = vmul.f32 %v5069_v57, %v3383_v43  ;;  %v3443_v18 = vadd.f32 %v3915_v34, %v3428_v55 }
 0x665   : > { %v3395_v8 = vld [vmem:[#allocation5 + $0x38] sm:$0xff]  ;;  %v3430_v1 = vadd.f32 %v3422_v44, %v3409_v62  ;;  %v3444_v15 = vadd.f32 %v3915_v34, %v3429_v25 }
 0x666   : > { %v3403_v9 = vadd.f32 1e-16, %v3395_v8  ;;  %v5071_v31 = vpop.eup %5070  ;;  %v3431_v13 = vadd.f32 %v3423_v35, %v3411_v41  ;;  %v3459_v24 = vmin.f32 %v3443_v18, 0.0  ;;  %vm3451_vm3 = vcmp.gt.f32.partialorder %v3443_v18, 0.0 }
 0x667   : > { %v3413_v36 = vmul.f32 %v5071_v31, %v3384_v4  ;;  %v3445_v7 = vadd.f32 %v3915_v34, %v3430_v1  ;;  %v3460_v20 = vmin.f32 %v3444_v15, 0.0  ;;  %vm3452_vm8 = vcmp.gt.f32.partialorder %v3444_v15, 0.0 }
 0x668   : > { %5076 = vrcp.f32 %v3403_v9  ;;  %v3446_v10 = vadd.f32 %v3915_v34, %v3431_v13  ;;  %v3467_v26 = vmul.f32 1.442695, %v3459_v24 }
 0x669   : > { %v3432_v40 = vadd.f32 %v3424_v6, %v3413_v36  ;;  %v3461_v42 = vmin.f32 %v3445_v7, 0.0  ;;  %v3469_v22 = vmul.f32 1.442695, %v3460_v20  ;;  %vm3453_vm12 = vcmp.gt.f32.partialorder %v3445_v7, 0.0 }
 0x66a   : > { %v5073_v11 = vpop.eup %5072  ;;  %v3462_v49 = vmin.f32 %v3446_v10, 0.0  ;;  %5078 = vpow2.f32 %v3467_v26  ;;  %vm3454_vm0 = vcmp.gt.f32.partialorder %v3446_v10, 0.0 }
 0x66b   : > { %v3415_v30 = vmul.f32 %v5073_v11, %v3385_v23  ;;  %v3447_v50 = vadd.f32 %v3915_v34, %v3432_v40  ;;  %v3471_v5 = vmul.f32 1.442695, %v3461_v42  ;;  %5080 = vpow2.f32 %v3469_v22 }
 0x66c   : > { %v3473_v29 = vmul.f32 1.442695, %v3462_v49 }
 0x66d   : > { %v3433_v12 = vadd.f32 %v3425_v3, %v3415_v30  ;;  %v3463_v47 = vmin.f32 %v3447_v50, 0.0  ;;  %5082 = vpow2.f32 %v3471_v5  ;;  %vm3455_vm11 = vcmp.gt.f32.partialorder %v3447_v50, 0.0 }
 0x66e   : > { %v5075_v53 = vpop.eup %5074  ;;  %5084 = vpow2.f32 %v3473_v29 }
 0x66f   : > { %v3448_v27 = vadd.f32 %v3915_v34, %v3433_v12  ;;  %v3475_v21 = vmul.f32 1.442695, %v3463_v47  ;;  %v3417_v33 = vmul.f32 %v5075_v53, %v3386_v37 }
 0x671   : > { %v3464_v54 = vmin.f32 %v3448_v27, 0.0  ;;  %5086 = vpow2.f32 %v3475_v21  ;;  %v3434_v52 = vadd.f32 %v3426_v58, %v3417_v33  ;;  %vm3456_vm6 = vcmp.gt.f32.partialorder %v3448_v27, 0.0 }
 0x672   : > { %v5077_v38 = vpop.eup %5076 }
 0x673   : > { %v3419_v2 = vmul.f32 %v5077_v38, %v3387_v19  ;;  %v3477_v60 = vmul.f32 1.442695, %v3464_v54  ;;  %v3449_v45 = vadd.f32 %v3915_v34, %v3434_v52 }
 0x674   : > { %v5079_v9 = vpop.eup %5078 }
 0x675   : > { %v3435_v61 = vadd.f32 %v3427_v16, %v3419_v2  ;;  %5088 = vpow2.f32 %v3477_v60  ;;  %v3465_v8 = vmin.f32 %v3449_v45, 0.0  ;;  %v5081_v39 = vpop.eup %5080  ;;  %v3916_v56 = vadd.f32 -1.0, %v5079_v9 }
 0x676   : > { %v3917_v17 = vadd.f32 -1.0, %v5081_v39  ;;  %vm3457_vm13 = vcmp.gt.f32.partialorder %v3449_v45, 0.0 }
 0x677   : > { %v3450_v59 = vadd.f32 %v3915_v34, %v3435_v61  ;;  %v3479_v46 = vmul.f32 1.442695, %v3465_v8  ;;  %v5083_v14 = vpop.eup %5082  ;;  %v3491_v51 = vsel %vm3451_vm3, %v3443_v18, %v3916_v56 }
 0x678   : > { %v5085_v0 = vpop.eup %5084  ;;  %v3918_v43 = vadd.f32 -1.0, %v5083_v14  ;;  %3499 = vst [vmem:[#allocation7] sm:$0xff] %v3491_v51  ;;  %v3492_v34 = vsel %vm3452_vm8, %v3444_v15, %v3917_v17 }
 0x679   : > { %v3466_v32 = vmin.f32 %v3450_v59, 0.0  ;;  %5090 = vpow2.f32 %v3479_v46  ;;  %v3919_v48 = vadd.f32 -1.0, %v5085_v0  ;;  %3500 = vst [vmem:[#allocation7 + $0x8] sm:$0xff] %v3492_v34  ;;  %vm3458_vm5 = vcmp.gt.f32.partialorder %v3450_v59, 0.0 }
 0x67a   : > { %v3493_v4 = vsel %vm3453_vm12, %v3445_v7, %v3918_v43 }
 0x67b   : > { %v3481_v28 = vmul.f32 1.442695, %v3466_v32  ;;  %v5087_v63 = vpop.eup %5086  ;;  %3501 = vst [vmem:[#allocation7 + $0x10] sm:$0xff] %v3493_v4  ;;  %v3494_v55 = vsel %vm3454_vm0, %v3446_v10, %v3919_v48 }
 0x67c   : > { %v3920_v57 = vadd.f32 -1.0, %v5087_v63  ;;  %3502 = vst [vmem:[#allocation7 + $0x18] sm:$0xff] %v3494_v55 }
 0x67d   : > { %5092 = vpow2.f32 %v3481_v28 }
 0x67e   : > { %v3495_v35 = vsel %vm3455_vm11, %v3447_v50, %v3920_v57 }
 0x67f   : > { %v5089_v44 = vpop.eup %5088  ;;  %3503 = vst [vmem:[#allocation7 + $0x20] sm:$0xff] %v3495_v35 }
 0x680   : > { %v3921_v62 = vadd.f32 -1.0, %v5089_v44 }
 0x682   : > { %v3496_v23 = vsel %vm3456_vm6, %v3448_v27, %v3921_v62 }
 0x683   : > { %3504 = vst [vmem:[#allocation7 + $0x28] sm:$0xff] %v3496_v23  ;;  %v5091_v31 = vpop.eup %5090 }
 0x684   : > { %v3922_v41 = vadd.f32 -1.0, %v5091_v31 }
 0x686   : > { %v3497_v11 = vsel %vm3457_vm13, %v3449_v45, %v3922_v41 }
 0x687   : > { %v5093_v25 = vpop.eup %5092  ;;  %3505 = vst [vmem:[#allocation7 + $0x30] sm:$0xff] %v3497_v11 }
 0x688   : > { %v3923_v6 = vadd.f32 -1.0, %v5093_v25 }
 0x68a   : > { %v3498_v18 = vsel %vm3458_vm5, %v3450_v59, %v3923_v6 }
 0x68b   : > { %3506 = vst [vmem:[#allocation7 + $0x38] sm:$0xff] %v3498_v18 }
 0x68c PF: > { %p4843_p6 = scmp.eq.s32.totalorder %s5186_s25, 1  ;;  %s5137_s15 = smov [#allocation7]  }
 0x68d   : > { %s3513_s16 = sshll.u32 %s5137_s15, 4  ;;  %s3514_s16 = int_to_ptr.vmem [resolvable:$true] %s3513_s16 }
 0x68e   : > { %s5094_s17 = scalar_lea.vmem %s3514_s16, 1024  ;;  %p5101_p10 = scmp.lt.s32.totalorder %s3514_s16, %s3514_s16 }
 0x68f   : > { %p5095_p7 = scmp.ne.s32.totalorder %s3514_s16, %s5094_s17  ;;  %p5102_p11 = scmp.lt.s32.totalorder %s5094_s17, %s5094_s17 }
 0x691   : > { %p5096_p8 = pnand %p5095_p7, %p4843_p6  ;;  %p5103_p12 = por %p5102_p11, %p5101_p10 }
 0x693   : > { %p5097_p9 = pneg %p5096_p8 }
 0x695   : > { %p5104_p13 = pnand %p5103_p12, %p5097_p9 }
 0x697   : > { %5107 = shalt.err (!%p5104_p13)
}
 0x698   : > { %s5108_s20 = scalar_lea.hbm %s6964_s7, 1024 }
 0x699   : > { %p5109_p0 = scmp.ne.s32.totalorder %s6964_s7, %s5108_s20  ;;  %p5114_p3 = scmp.lt.u32.totalorder %s5108_s20, %s6964_s7 }
 0x69b   : > { %p5110_p1 = pnand %p5109_p0, %p4843_p6 }
 0x69d   : > { %p5111_p2 = pneg %p5110_p1 }
 0x69f   : > { %p5116_p4 = pnand %p5114_p3, %p5111_p2 }
 0x6a1   : > { %5119 = shalt.err (!%p5116_p4)
}
 0x6a2   : > { %s5138_s27 = smov 128   ;;  %s5139_s28 = smov 8  }
 0x6a3   : > { %4840 = dma.vmem_to_hbm [thread:$0]  (%p4843_p6), %s3514_s16, 1024, %s6964_s7, [#allocation8], %s5138_s27, %s5138_s27, %s5139_s28  }
 0x6a4   : > { %5125 = dma.done.wait (%p4843_p6), [#allocation8], 1024  }
 0x6a5   : > { %5127 = vsyncadd (%p4843_p6), [#allocation8], 4294966272 }
 0x6a6 PF: > { %s18_s24 = sadd.s32 1, %s5130_s24  }
 0x6a7   : > { %p15_p5 = scmp.ge.s32.totalorder %s18_s24, 4  }
 0x6a9   :  { %17 = sbr.rel (!%p15_p5) target bundleno = 1 (0x1), region = 84 }
 0x6b0   :  { %3529 = vsyncpa [#allocation8], 1 }
 0x6b1   :  { %3531 = vsyncpa [#allocation8 + $0x1], 1 }

</bundles_post_ra>
